<compile_context>
chip_gen: v7x
topology: tpu7x:2x2x1
jax: 0.10.0
libtpu: 0.0.40
codegen_flags: <defaults>
</compile_context>

<pallas_src>
import functools

import jax
import jax.numpy as jnp
from jax.experimental import pallas as pl
from jax.experimental.pallas import tpu as pltpu

LANE = 128
SUBLANE = 8


def _round_up(x, m):
    return (x + m - 1) // m * m


def basic_block_kernel(x_ref, w1_ref, w2_ref, b1_ref, b2_ref, out_ref,
                       f_scr, col_scr, *, H, W):
    # x_ref  : (1, H+2, Wf, Cp) f32   zero-padded input frame (Wf = roundup(W+2, 8))
    # w*_ref : (9*Cp, Cp)       bf16  BN-scale-folded, im2col-flattened weights
    # b*_ref : (1, Cp)          f32   BN additive shifts
    # out_ref: (1, H*W, Cp)     f32   flat, lane-dense output
    # f_scr  : (H+2, Wf, Cp)    f32   padded conv2-activation frame (scratch)
    # col_scr: (H*W, 9*Cp)      bf16  shared im2col buffer (scratch)
    Cp = x_ref.shape[3]
    Hf = f_scr.shape[0]
    Wf = f_scr.shape[1]

    xf = x_ref[0]                                        # (Hf, Wf, Cp) f32

    # ---- conv1 im2col: 9 shifted (H*W, Cp) patches -> lane-blocks of col_scr
    for dy in range(3):
        for dx in range(3):
            k = dy * 3 + dx
            patch = xf[dy:dy + H, dx:dx + W, :].reshape(H * W, Cp)
            col_scr[:, k * Cp:(k + 1) * Cp] = patch.astype(jnp.bfloat16)

    # Residual (identity shortcut): pre-extract while xf is hot and park it in
    # the VMEM-resident output block together with the bn2 shift, so the final
    # epilogue is one dense flat pass.
    out_ref[0] = xf[1:H + 1, 1:W + 1, :].reshape(H * W, Cp) + b2_ref[...]

    # ---- conv1 (bn1 scale folded into w1) + bn1 shift + ReLU ----
    act1 = jnp.maximum(
        jnp.dot(col_scr[...], w1_ref[...],
                preferred_element_type=jnp.float32) + b1_ref[...],
        0.0)

    # ---- re-pad act1 for conv2: zero only the 1-px border that conv2 reads,
    #      then overwrite the interior (no full-frame zero sweep). ----
    zrow = jnp.zeros((1, Wf, Cp), jnp.float32)
    zcol = jnp.zeros((Hf, 1, Cp), jnp.float32)
    f_scr[0:1, :, :] = zrow
    f_scr[H + 1:H + 2, :, :] = zrow
    f_scr[:, 0:1, :] = zcol
    f_scr[:, W + 1:W + 2, :] = zcol
    f_scr[1:H + 1, 1:W + 1, :] = act1.reshape(H, W, Cp)

    # ---- conv2 im2col ----
    for dy in range(3):
        for dx in range(3):
            k = dy * 3 + dx
            patch = f_scr[dy:dy + H, dx:dx + W, :].reshape(H * W, Cp)
            col_scr[:, k * Cp:(k + 1) * Cp] = patch.astype(jnp.bfloat16)

    # ---- conv2 + (residual + bn2 shift already in out_ref) + ReLU ----
    out2 = jnp.dot(col_scr[...], w2_ref[...], preferred_element_type=jnp.float32)
    out_ref[0] = jnp.maximum(out_ref[0] + out2, 0.0)


def basic_block_forward(x_nchw, w1_oihw, w2_oihw, bn1, bn2, eps=1e-5):
    """BasicBlock forward (stride=1, identity shortcut, inference-mode BN).

    x_nchw : (N, C, H, W) f32;  w*_oihw: (C, C, 3, 3) f32
    bn*    : (gamma, beta, running_mean, running_var), each (C,)
    """
    N, C, H, W = x_nchw.shape
    Cp = _round_up(max(C, LANE), LANE)        # lane-dense channel count
    Wf = _round_up(W + 2, SUBLANE)            # frame width, multiple of 8 sublanes
    Hf = H + 2

    # ---- layout glue + BN folding (plain JAX) ----
    x = jnp.transpose(x_nchw, (0, 2, 3, 1)).astype(jnp.float32)           # NHWC
    x_pad = jnp.pad(x, ((0, 0), (1, 1), (1, Wf - W - 1), (0, Cp - C)))

    def fold(w_oihw, bn):
        gamma, beta, mean, var = bn
        s = gamma / jnp.sqrt(var + eps)                     # (C,)
        b = beta - mean * s                                 # (C,)
        w = jnp.transpose(w_oihw, (2, 3, 1, 0)) * s         # (3,3,Cin,Cout)*s[co]
        w = jnp.pad(w, ((0, 0), (0, 0), (0, Cp - C), (0, Cp - C)))
        w = w.reshape(9 * Cp, Cp).astype(jnp.bfloat16)      # im2col-flattened
        b = jnp.pad(b, (0, Cp - C)).reshape(1, Cp).astype(jnp.float32)
        return w, b

    w1f, b1 = fold(w1_oihw, bn1)
    w2f, b2 = fold(w2_oihw, bn2)

    # ---- scoped-VMEM limit sized from the actual block budget ----
    f32, bf16 = 4, 2
    budget = (2 * Hf * Wf * Cp * f32           # x block (double-buffered)
              + 2 * H * W * Cp * f32           # out block (double-buffered)
              + 2 * 2 * 9 * Cp * Cp * bf16     # w1f, w2f (double-buffered)
              + 2 * 2 * Cp * f32               # b1, b2
              + Hf * Wf * Cp * f32             # f_scr
              + H * W * 9 * Cp * bf16)         # col_scr
    vmem_limit = int(min(max(2 * budget, 32 * 1024 * 1024), 56 * 1024 * 1024))

    kernel = functools.partial(basic_block_kernel, H=H, W=W)

    out_flat = pl.pallas_call(
        kernel,
        out_shape=jax.ShapeDtypeStruct((N, H * W, Cp), jnp.float32),
        grid=(N,),
        in_specs=[
            pl.BlockSpec((1, Hf, Wf, Cp), lambda n: (n, 0, 0, 0)),
            pl.BlockSpec((9 * Cp, Cp), lambda n: (0, 0)),
            pl.BlockSpec((9 * Cp, Cp), lambda n: (0, 0)),
            pl.BlockSpec((1, Cp), lambda n: (0, 0)),
            pl.BlockSpec((1, Cp), lambda n: (0, 0)),
        ],
        out_specs=pl.BlockSpec((1, H * W, Cp), lambda n: (n, 0, 0)),
        scratch_shapes=[
            pltpu.VMEM((Hf, Wf, Cp), jnp.float32),        # conv2 activation frame
            pltpu.VMEM((H * W, 9 * Cp), jnp.bfloat16),    # shared im2col buffer
        ],
        compiler_params=pltpu.CompilerParams(
            dimension_semantics=("parallel",),
            vmem_limit_bytes=vmem_limit),
    )(x_pad, w1f, w2f, b1, b2)

    out = out_flat.reshape(N, H, W, Cp)[:, :, :, :C]
    return jnp.transpose(out, (0, 3, 1, 2))                # back to NCHW


def _reference(x_nchw, w1, w2, bn1, bn2, eps=1e-5):
    """Pure-JAX f32 reference of the same forward pass."""
    def conv(x, w):
        return jax.lax.conv_general_dilated(
            x, w, window_strides=(1, 1), padding=((1, 1), (1, 1)),
            dimension_numbers=("NCHW", "OIHW", "NCHW"))

    def bn(x, p):
        gamma, beta, mean, var = p
        s = gamma / jnp.sqrt(var + eps)
        return x * s[None, :, None, None] + (beta - mean * s)[None, :, None, None]

    out = jnp.maximum(bn(conv(x_nchw, w1), bn1), 0.0)
    out = bn(conv(out, w2), bn2) + x_nchw
    return jnp.maximum(out, 0.0)


if __name__ == "__main__":
    N, C, H, W = 2, 8, 16, 16   # in_channels == planes, stride=1, no downsample
    key = jax.random.PRNGKey(0)
    kx, kw1, kw2, kg1, kb1, km1, kv1, kg2, kb2, km2, kv2 = jax.random.split(key, 11)

    x = jax.random.normal(kx, (N, C, H, W), jnp.float32)
    w1 = jax.random.normal(kw1, (C, C, 3, 3), jnp.float32) * 0.2
    w2 = jax.random.normal(kw2, (C, C, 3, 3), jnp.float32) * 0.2

    bn1 = (jax.random.uniform(kg1, (C,), minval=0.5, maxval=1.5),
           jax.random.normal(kb1, (C,)) * 0.1,
           jax.random.normal(km1, (C,)) * 0.1,
           jax.random.uniform(kv1, (C,), minval=0.5, maxval=1.5))
    bn2 = (jax.random.uniform(kg2, (C,), minval=0.5, maxval=1.5),
           jax.random.normal(kb2, (C,)) * 0.1,
           jax.random.normal(km2, (C,)) * 0.1,
           jax.random.uniform(kv2, (C,), minval=0.5, maxval=1.5))

    out = jax.block_until_ready(basic_block_forward(x, w1, w2, bn1, bn2))
    ref = jax.block_until_ready(_reference(x, w1, w2, bn1, bn2))

    assert out.shape == (N, C, H, W)
    # bf16 MXU operands (f32 accumulation) -> expect ~5e-3 relative L2 error
    # versus the pure-f32 reference; flip the kernel/col/weight dtypes to f32
    # for exact (1e-4) agreement.
    rel_err = float(jnp.linalg.norm(out - ref) / jnp.linalg.norm(ref))
    assert rel_err < 2e-2, f"relative L2 error vs reference too large: {rel_err}"

    print("KERNEL_OK")
</pallas_src>

<mosaic_0001>
module attributes {stable_mosaic.version = 11 : i64} {
  func.func @basic_block_kernel(%arg0: i32, %arg1: memref<1x18x24x128xf32, #tpu.memory_space<vmem>>, %arg2: memref<1152x128xbf16, #tpu.memory_space<vmem>>, %arg3: memref<1152x128xbf16, #tpu.memory_space<vmem>>, %arg4: memref<1x128xf32, #tpu.memory_space<vmem>>, %arg5: memref<1x128xf32, #tpu.memory_space<vmem>>, %arg6: memref<1x256x128xf32, #tpu.memory_space<vmem>>, %arg7: memref<18x24x128xf32, #tpu.memory_space<vmem>>, %arg8: memref<256x1152xbf16, #tpu.memory_space<vmem>>) attributes {dimension_semantics = [#tpu.dimension_semantics<parallel>], iteration_bounds = array<i64: 2>, scalar_prefetch = 0 : i64, scratch_operands = 2 : i64, tpu.core_type = #tpu.core_type<tc>, window_params = [{transform_indices = @transform_0, window_bounds = array<i64: 1, 18, 24, 128>}, {pipeline_mode = #tpu.pipeline_mode<synchronous>, transform_indices = @transform_1, window_bounds = array<i64: 1152, 128>}, {pipeline_mode = #tpu.pipeline_mode<synchronous>, transform_indices = @transform_2, window_bounds = array<i64: 1152, 128>}, {pipeline_mode = #tpu.pipeline_mode<synchronous>, transform_indices = @transform_3, window_bounds = array<i64: 1, 128>}, {pipeline_mode = #tpu.pipeline_mode<synchronous>, transform_indices = @transform_4, window_bounds = array<i64: 1, 128>}, {transform_indices = @transform_5, window_bounds = array<i64: 1, 256, 128>}]} {
    %c0 = arith.constant 0 : index
    %c0_0 = arith.constant 0 : index
    %c0_1 = arith.constant 0 : index
    %c0_2 = arith.constant 0 : index
    %0 = vector.load %arg1[%c0, %c0_0, %c0_1, %c0_2] : memref<1x18x24x128xf32, #tpu.memory_space<vmem>>, vector<1x18x24x128xf32>
    %1 = vector.shape_cast %0 : vector<1x18x24x128xf32> to vector<18x24x128xf32>
    %2 = vector.extract_strided_slice %1 {offsets = [0, 0, 0], sizes = [16, 16, 128], strides = [1, 1, 1]} : vector<18x24x128xf32> to vector<16x16x128xf32>
    %3 = vector.shape_cast %2 : vector<16x16x128xf32> to vector<256x128xf32>
    %4 = arith.truncf %3 : vector<256x128xf32> to vector<256x128xbf16>
    %c0_3 = arith.constant 0 : index
    %c0_4 = arith.constant 0 : index
    %5 = vector.load %arg8[%c0_3, %c0_4] : memref<256x1152xbf16, #tpu.memory_space<vmem>>, vector<256x128xbf16>
    tpu.vector_store %arg8[%c0_3, %c0_4], %4 {strides = array<i32>} : memref<256x1152xbf16, #tpu.memory_space<vmem>>, vector<256x128xbf16>,
    %6 = vector.extract_strided_slice %1 {offsets = [0, 1, 0], sizes = [16, 16, 128], strides = [1, 1, 1]} : vector<18x24x128xf32> to vector<16x16x128xf32>
    %7 = vector.shape_cast %6 : vector<16x16x128xf32> to vector<256x128xf32>
    %8 = arith.truncf %7 : vector<256x128xf32> to vector<256x128xbf16>
    %c0_5 = arith.constant 0 : index
    %c128 = arith.constant 128 : index
    %9 = vector.load %arg8[%c0_5, %c128] : memref<256x1152xbf16, #tpu.memory_space<vmem>>, vector<256x128xbf16>
    tpu.vector_store %arg8[%c0_5, %c128], %8 {strides = array<i32>} : memref<256x1152xbf16, #tpu.memory_space<vmem>>, vector<256x128xbf16>,
    %10 = vector.extract_strided_slice %1 {offsets = [0, 2, 0], sizes = [16, 16, 128], strides = [1, 1, 1]} : vector<18x24x128xf32> to vector<16x16x128xf32>
    %11 = vector.shape_cast %10 : vector<16x16x128xf32> to vector<256x128xf32>
    %12 = arith.truncf %11 : vector<256x128xf32> to vector<256x128xbf16>
    %c0_6 = arith.constant 0 : index
    %c256 = arith.constant 256 : index
    %13 = vector.load %arg8[%c0_6, %c256] : memref<256x1152xbf16, #tpu.memory_space<vmem>>, vector<256x128xbf16>
    tpu.vector_store %arg8[%c0_6, %c256], %12 {strides = array<i32>} : memref<256x1152xbf16, #tpu.memory_space<vmem>>, vector<256x128xbf16>,
    %14 = vector.extract_strided_slice %1 {offsets = [1, 0, 0], sizes = [16, 16, 128], strides = [1, 1, 1]} : vector<18x24x128xf32> to vector<16x16x128xf32>
    %15 = vector.shape_cast %14 : vector<16x16x128xf32> to vector<256x128xf32>
    %16 = arith.truncf %15 : vector<256x128xf32> to vector<256x128xbf16>
    %c0_7 = arith.constant 0 : index
    %c384 = arith.constant 384 : index
    %17 = vector.load %arg8[%c0_7, %c384] : memref<256x1152xbf16, #tpu.memory_space<vmem>>, vector<256x128xbf16>
    tpu.vector_store %arg8[%c0_7, %c384], %16 {strides = array<i32>} : memref<256x1152xbf16, #tpu.memory_space<vmem>>, vector<256x128xbf16>,
    %18 = vector.extract_strided_slice %1 {offsets = [1, 1, 0], sizes = [16, 16, 128], strides = [1, 1, 1]} : vector<18x24x128xf32> to vector<16x16x128xf32>
    %19 = vector.shape_cast %18 : vector<16x16x128xf32> to vector<256x128xf32>
    %20 = arith.truncf %19 : vector<256x128xf32> to vector<256x128xbf16>
    %c0_8 = arith.constant 0 : index
    %c512 = arith.constant 512 : index
    %21 = vector.load %arg8[%c0_8, %c512] : memref<256x1152xbf16, #tpu.memory_space<vmem>>, vector<256x128xbf16>
    tpu.vector_store %arg8[%c0_8, %c512], %20 {strides = array<i32>} : memref<256x1152xbf16, #tpu.memory_space<vmem>>, vector<256x128xbf16>,
    %22 = vector.extract_strided_slice %1 {offsets = [1, 2, 0], sizes = [16, 16, 128], strides = [1, 1, 1]} : vector<18x24x128xf32> to vector<16x16x128xf32>
    %23 = vector.shape_cast %22 : vector<16x16x128xf32> to vector<256x128xf32>
    %24 = arith.truncf %23 : vector<256x128xf32> to vector<256x128xbf16>
    %c0_9 = arith.constant 0 : index
    %c640 = arith.constant 640 : index
    %25 = vector.load %arg8[%c0_9, %c640] : memref<256x1152xbf16, #tpu.memory_space<vmem>>, vector<256x128xbf16>
    tpu.vector_store %arg8[%c0_9, %c640], %24 {strides = array<i32>} : memref<256x1152xbf16, #tpu.memory_space<vmem>>, vector<256x128xbf16>,
    %26 = vector.extract_strided_slice %1 {offsets = [2, 0, 0], sizes = [16, 16, 128], strides = [1, 1, 1]} : vector<18x24x128xf32> to vector<16x16x128xf32>
    %27 = vector.shape_cast %26 : vector<16x16x128xf32> to vector<256x128xf32>
    %28 = arith.truncf %27 : vector<256x128xf32> to vector<256x128xbf16>
    %c0_10 = arith.constant 0 : index
    %c768 = arith.constant 768 : index
    %29 = vector.load %arg8[%c0_10, %c768] : memref<256x1152xbf16, #tpu.memory_space<vmem>>, vector<256x128xbf16>
    tpu.vector_store %arg8[%c0_10, %c768], %28 {strides = array<i32>} : memref<256x1152xbf16, #tpu.memory_space<vmem>>, vector<256x128xbf16>,
    %30 = vector.extract_strided_slice %1 {offsets = [2, 1, 0], sizes = [16, 16, 128], strides = [1, 1, 1]} : vector<18x24x128xf32> to vector<16x16x128xf32>
    %31 = vector.shape_cast %30 : vector<16x16x128xf32> to vector<256x128xf32>
    %32 = arith.truncf %31 : vector<256x128xf32> to vector<256x128xbf16>
    %c0_11 = arith.constant 0 : index
    %c896 = arith.constant 896 : index
    %33 = vector.load %arg8[%c0_11, %c896] : memref<256x1152xbf16, #tpu.memory_space<vmem>>, vector<256x128xbf16>
    tpu.vector_store %arg8[%c0_11, %c896], %32 {strides = array<i32>} : memref<256x1152xbf16, #tpu.memory_space<vmem>>, vector<256x128xbf16>,
    %34 = vector.extract_strided_slice %1 {offsets = [2, 2, 0], sizes = [16, 16, 128], strides = [1, 1, 1]} : vector<18x24x128xf32> to vector<16x16x128xf32>
    %35 = vector.shape_cast %34 : vector<16x16x128xf32> to vector<256x128xf32>
    %36 = arith.truncf %35 : vector<256x128xf32> to vector<256x128xbf16>
    %c0_12 = arith.constant 0 : index
    %c1024 = arith.constant 1024 : index
    %37 = vector.load %arg8[%c0_12, %c1024] : memref<256x1152xbf16, #tpu.memory_space<vmem>>, vector<256x128xbf16>
    tpu.vector_store %arg8[%c0_12, %c1024], %36 {strides = array<i32>} : memref<256x1152xbf16, #tpu.memory_space<vmem>>, vector<256x128xbf16>,
    %38 = vector.extract_strided_slice %1 {offsets = [1, 1, 0], sizes = [16, 16, 128], strides = [1, 1, 1]} : vector<18x24x128xf32> to vector<16x16x128xf32>
    %39 = vector.shape_cast %38 : vector<16x16x128xf32> to vector<256x128xf32>
    %c0_13 = arith.constant 0 : index
    %c0_14 = arith.constant 0 : index
    %40 = vector.load %arg5[%c0_13, %c0_14] : memref<1x128xf32, #tpu.memory_space<vmem>>, vector<1x128xf32>
    %41 = vector.broadcast %40 : vector<1x128xf32> to vector<256x128xf32>
    %42 = arith.addf %39, %41 : vector<256x128xf32>
    %c0_15 = arith.constant 0 : index
    %c0_16 = arith.constant 0 : index
    %c0_17 = arith.constant 0 : index
    %43 = vector.load %arg6[%c0_15, %c0_16, %c0_17] : memref<1x256x128xf32, #tpu.memory_space<vmem>>, vector<1x256x128xf32>
    %44 = vector.shape_cast %43 : vector<1x256x128xf32> to vector<256x128xf32>
    %45 = vector.shape_cast %42 : vector<256x128xf32> to vector<1x256x128xf32>
    tpu.vector_store %arg6[%c0_15, %c0_16, %c0_17], %45 {strides = array<i32>} : memref<1x256x128xf32, #tpu.memory_space<vmem>>, vector<1x256x128xf32>,
    %c0_18 = arith.constant 0 : index
    %c0_19 = arith.constant 0 : index
    %46 = vector.load %arg8[%c0_18, %c0_19] : memref<256x1152xbf16, #tpu.memory_space<vmem>>, vector<256x1152xbf16>
    %c0_20 = arith.constant 0 : index
    %c0_21 = arith.constant 0 : index
    %47 = vector.load %arg2[%c0_20, %c0_21] : memref<1152x128xbf16, #tpu.memory_space<vmem>>, vector<1152x128xbf16>
    %cst = arith.constant dense<0.000000e+00> : vector<256x128xf32>
    %48 = tpu.matmul %46, %47, %cst {dimension_numbers = #tpu.dot_dimension_numbers<[1], [0], [0], [1], [0, 0, 1, 1], [], []>} : vector<256x1152xbf16>, vector<1152x128xbf16>, vector<256x128xf32> -> vector<256x128xf32>
    %c0_22 = arith.constant 0 : index
    %c0_23 = arith.constant 0 : index
    %49 = vector.load %arg4[%c0_22, %c0_23] : memref<1x128xf32, #tpu.memory_space<vmem>>, vector<1x128xf32>
    %50 = vector.broadcast %49 : vector<1x128xf32> to vector<256x128xf32>
    %51 = arith.addf %48, %50 : vector<256x128xf32>
    %cst_24 = arith.constant 0.000000e+00 : f32
    %52 = vector.broadcast %cst_24 : f32 to vector<256x128xf32>
    %53 = arith.maximumf %51, %52 : vector<256x128xf32>
    %cst_25 = arith.constant 0.000000e+00 : f32
    %54 = vector.broadcast %cst_25 : f32 to vector<1x24x128xf32>
    %cst_26 = arith.constant 0.000000e+00 : f32
    %55 = vector.broadcast %cst_26 : f32 to vector<18x1x128xf32>
    %c0_27 = arith.constant 0 : index
    %c0_28 = arith.constant 0 : index
    %c0_29 = arith.constant 0 : index
    %56 = vector.load %arg7[%c0_27, %c0_28, %c0_29] : memref<18x24x128xf32, #tpu.memory_space<vmem>>, vector<1x24x128xf32>
    tpu.vector_store %arg7[%c0_27, %c0_28, %c0_29], %54 {strides = array<i32>} : memref<18x24x128xf32, #tpu.memory_space<vmem>>, vector<1x24x128xf32>,
    %c17 = arith.constant 17 : index
    %c0_30 = arith.constant 0 : index
    %c0_31 = arith.constant 0 : index
    %57 = vector.load %arg7[%c17, %c0_30, %c0_31] : memref<18x24x128xf32, #tpu.memory_space<vmem>>, vector<1x24x128xf32>
    tpu.vector_store %arg7[%c17, %c0_30, %c0_31], %54 {strides = array<i32>} : memref<18x24x128xf32, #tpu.memory_space<vmem>>, vector<1x24x128xf32>,
    %c0_32 = arith.constant 0 : index
    %c0_33 = arith.constant 0 : index
    %c0_34 = arith.constant 0 : index
    %58 = vector.load %arg7[%c0_32, %c0_33, %c0_34] : memref<18x24x128xf32, #tpu.memory_space<vmem>>, vector<18x1x128xf32>
    tpu.vector_store %arg7[%c0_32, %c0_33, %c0_34], %55 {strides = array<i32>} : memref<18x24x128xf32, #tpu.memory_space<vmem>>, vector<18x1x128xf32>,
    %c0_35 = arith.constant 0 : index
    %c17_36 = arith.constant 17 : index
    %c0_37 = arith.constant 0 : index
    %59 = vector.load %arg7[%c0_35, %c17_36, %c0_37] : memref<18x24x128xf32, #tpu.memory_space<vmem>>, vector<18x1x128xf32>
    tpu.vector_store %arg7[%c0_35, %c17_36, %c0_37], %55 {strides = array<i32>} : memref<18x24x128xf32, #tpu.memory_space<vmem>>, vector<18x1x128xf32>,
    %60 = vector.shape_cast %53 : vector<256x128xf32> to vector<16x16x128xf32>
    %c1 = arith.constant 1 : index
    %c1_38 = arith.constant 1 : index
    %c0_39 = arith.constant 0 : index
    %61 = vector.load %arg7[%c1, %c1_38, %c0_39] : memref<18x24x128xf32, #tpu.memory_space<vmem>>, vector<16x16x128xf32>
    tpu.vector_store %arg7[%c1, %c1_38, %c0_39], %60 {strides = array<i32>} : memref<18x24x128xf32, #tpu.memory_space<vmem>>, vector<16x16x128xf32>,
    %c0_40 = arith.constant 0 : index
    %c0_41 = arith.constant 0 : index
    %c0_42 = arith.constant 0 : index
    %62 = vector.load %arg7[%c0_40, %c0_41, %c0_42] : memref<18x24x128xf32, #tpu.memory_space<vmem>>, vector<16x16x128xf32>
    %63 = vector.shape_cast %62 : vector<16x16x128xf32> to vector<256x128xf32>
    %64 = arith.truncf %63 : vector<256x128xf32> to vector<256x128xbf16>
    %c0_43 = arith.constant 0 : index
    %c0_44 = arith.constant 0 : index
    %65 = vector.load %arg8[%c0_43, %c0_44] : memref<256x1152xbf16, #tpu.memory_space<vmem>>, vector<256x128xbf16>
    tpu.vector_store %arg8[%c0_43, %c0_44], %64 {strides = array<i32>} : memref<256x1152xbf16, #tpu.memory_space<vmem>>, vector<256x128xbf16>,
    %c0_45 = arith.constant 0 : index
    %c1_46 = arith.constant 1 : index
    %c0_47 = arith.constant 0 : index
    %66 = vector.load %arg7[%c0_45, %c1_46, %c0_47] : memref<18x24x128xf32, #tpu.memory_space<vmem>>, vector<16x16x128xf32>
    %67 = vector.shape_cast %66 : vector<16x16x128xf32> to vector<256x128xf32>
    %68 = arith.truncf %67 : vector<256x128xf32> to vector<256x128xbf16>
    %c0_48 = arith.constant 0 : index
    %c128_49 = arith.constant 128 : index
    %69 = vector.load %arg8[%c0_48, %c128_49] : memref<256x1152xbf16, #tpu.memory_space<vmem>>, vector<256x128xbf16>
    tpu.vector_store %arg8[%c0_48, %c128_49], %68 {strides = array<i32>} : memref<256x1152xbf16, #tpu.memory_space<vmem>>, vector<256x128xbf16>,
    %c0_50 = arith.constant 0 : index
    %c2 = arith.constant 2 : index
    %c0_51 = arith.constant 0 : index
    %70 = vector.load %arg7[%c0_50, %c2, %c0_51] : memref<18x24x128xf32, #tpu.memory_space<vmem>>, vector<16x16x128xf32>
    %71 = vector.shape_cast %70 : vector<16x16x128xf32> to vector<256x128xf32>
    %72 = arith.truncf %71 : vector<256x128xf32> to vector<256x128xbf16>
    %c0_52 = arith.constant 0 : index
    %c256_53 = arith.constant 256 : index
    %73 = vector.load %arg8[%c0_52, %c256_53] : memref<256x1152xbf16, #tpu.memory_space<vmem>>, vector<256x128xbf16>
    tpu.vector_store %arg8[%c0_52, %c256_53], %72 {strides = array<i32>} : memref<256x1152xbf16, #tpu.memory_space<vmem>>, vector<256x128xbf16>,
    %c1_54 = arith.constant 1 : index
    %c0_55 = arith.constant 0 : index
    %c0_56 = arith.constant 0 : index
    %74 = vector.load %arg7[%c1_54, %c0_55, %c0_56] : memref<18x24x128xf32, #tpu.memory_space<vmem>>, vector<16x16x128xf32>
    %75 = vector.shape_cast %74 : vector<16x16x128xf32> to vector<256x128xf32>
    %76 = arith.truncf %75 : vector<256x128xf32> to vector<256x128xbf16>
    %c0_57 = arith.constant 0 : index
    %c384_58 = arith.constant 384 : index
    %77 = vector.load %arg8[%c0_57, %c384_58] : memref<256x1152xbf16, #tpu.memory_space<vmem>>, vector<256x128xbf16>
    tpu.vector_store %arg8[%c0_57, %c384_58], %76 {strides = array<i32>} : memref<256x1152xbf16, #tpu.memory_space<vmem>>, vector<256x128xbf16>,
    %c1_59 = arith.constant 1 : index
    %c1_60 = arith.constant 1 : index
    %c0_61 = arith.constant 0 : index
    %78 = vector.load %arg7[%c1_59, %c1_60, %c0_61] : memref<18x24x128xf32, #tpu.memory_space<vmem>>, vector<16x16x128xf32>
    %79 = vector.shape_cast %78 : vector<16x16x128xf32> to vector<256x128xf32>
    %80 = arith.truncf %79 : vector<256x128xf32> to vector<256x128xbf16>
    %c0_62 = arith.constant 0 : index
    %c512_63 = arith.constant 512 : index
    %81 = vector.load %arg8[%c0_62, %c512_63] : memref<256x1152xbf16, #tpu.memory_space<vmem>>, vector<256x128xbf16>
    tpu.vector_store %arg8[%c0_62, %c512_63], %80 {strides = array<i32>} : memref<256x1152xbf16, #tpu.memory_space<vmem>>, vector<256x128xbf16>,
    %c1_64 = arith.constant 1 : index
    %c2_65 = arith.constant 2 : index
    %c0_66 = arith.constant 0 : index
    %82 = vector.load %arg7[%c1_64, %c2_65, %c0_66] : memref<18x24x128xf32, #tpu.memory_space<vmem>>, vector<16x16x128xf32>
    %83 = vector.shape_cast %82 : vector<16x16x128xf32> to vector<256x128xf32>
    %84 = arith.truncf %83 : vector<256x128xf32> to vector<256x128xbf16>
    %c0_67 = arith.constant 0 : index
    %c640_68 = arith.constant 640 : index
    %85 = vector.load %arg8[%c0_67, %c640_68] : memref<256x1152xbf16, #tpu.memory_space<vmem>>, vector<256x128xbf16>
    tpu.vector_store %arg8[%c0_67, %c640_68], %84 {strides = array<i32>} : memref<256x1152xbf16, #tpu.memory_space<vmem>>, vector<256x128xbf16>,
    %c2_69 = arith.constant 2 : index
    %c0_70 = arith.constant 0 : index
    %c0_71 = arith.constant 0 : index
    %86 = vector.load %arg7[%c2_69, %c0_70, %c0_71] : memref<18x24x128xf32, #tpu.memory_space<vmem>>, vector<16x16x128xf32>
    %87 = vector.shape_cast %86 : vector<16x16x128xf32> to vector<256x128xf32>
    %88 = arith.truncf %87 : vector<256x128xf32> to vector<256x128xbf16>
    %c0_72 = arith.constant 0 : index
    %c768_73 = arith.constant 768 : index
    %89 = vector.load %arg8[%c0_72, %c768_73] : memref<256x1152xbf16, #tpu.memory_space<vmem>>, vector<256x128xbf16>
    tpu.vector_store %arg8[%c0_72, %c768_73], %88 {strides = array<i32>} : memref<256x1152xbf16, #tpu.memory_space<vmem>>, vector<256x128xbf16>,
    %c2_74 = arith.constant 2 : index
    %c1_75 = arith.constant 1 : index
    %c0_76 = arith.constant 0 : index
    %90 = vector.load %arg7[%c2_74, %c1_75, %c0_76] : memref<18x24x128xf32, #tpu.memory_space<vmem>>, vector<16x16x128xf32>
    %91 = vector.shape_cast %90 : vector<16x16x128xf32> to vector<256x128xf32>
    %92 = arith.truncf %91 : vector<256x128xf32> to vector<256x128xbf16>
    %c0_77 = arith.constant 0 : index
    %c896_78 = arith.constant 896 : index
    %93 = vector.load %arg8[%c0_77, %c896_78] : memref<256x1152xbf16, #tpu.memory_space<vmem>>, vector<256x128xbf16>
    tpu.vector_store %arg8[%c0_77, %c896_78], %92 {strides = array<i32>} : memref<256x1152xbf16, #tpu.memory_space<vmem>>, vector<256x128xbf16>,
    %c2_79 = arith.constant 2 : index
    %c2_80 = arith.constant 2 : index
    %c0_81 = arith.constant 0 : index
    %94 = vector.load %arg7[%c2_79, %c2_80, %c0_81] : memref<18x24x128xf32, #tpu.memory_space<vmem>>, vector<16x16x128xf32>
    %95 = vector.shape_cast %94 : vector<16x16x128xf32> to vector<256x128xf32>
    %96 = arith.truncf %95 : vector<256x128xf32> to vector<256x128xbf16>
    %c0_82 = arith.constant 0 : index
    %c1024_83 = arith.constant 1024 : index
    %97 = vector.load %arg8[%c0_82, %c1024_83] : memref<256x1152xbf16, #tpu.memory_space<vmem>>, vector<256x128xbf16>
    tpu.vector_store %arg8[%c0_82, %c1024_83], %96 {strides = array<i32>} : memref<256x1152xbf16, #tpu.memory_space<vmem>>, vector<256x128xbf16>,
    %c0_84 = arith.constant 0 : index
    %c0_85 = arith.constant 0 : index
    %98 = vector.load %arg8[%c0_84, %c0_85] : memref<256x1152xbf16, #tpu.memory_space<vmem>>, vector<256x1152xbf16>
    %c0_86 = arith.constant 0 : index
    %c0_87 = arith.constant 0 : index
    %99 = vector.load %arg3[%c0_86, %c0_87] : memref<1152x128xbf16, #tpu.memory_space<vmem>>, vector<1152x128xbf16>
    %cst_88 = arith.constant dense<0.000000e+00> : vector<256x128xf32>
    %100 = tpu.matmul %98, %99, %cst_88 {dimension_numbers = #tpu.dot_dimension_numbers<[1], [0], [0], [1], [0, 0, 1, 1], [], []>} : vector<256x1152xbf16>, vector<1152x128xbf16>, vector<256x128xf32> -> vector<256x128xf32>
    %c0_89 = arith.constant 0 : index
    %c0_90 = arith.constant 0 : index
    %c0_91 = arith.constant 0 : index
    %101 = vector.load %arg6[%c0_89, %c0_90, %c0_91] : memref<1x256x128xf32, #tpu.memory_space<vmem>>, vector<1x256x128xf32>
    %102 = vector.shape_cast %101 : vector<1x256x128xf32> to vector<256x128xf32>
    %103 = arith.addf %102, %100 : vector<256x128xf32>
    %cst_92 = arith.constant 0.000000e+00 : f32
    %104 = vector.broadcast %cst_92 : f32 to vector<256x128xf32>
    %105 = arith.maximumf %103, %104 : vector<256x128xf32>
    %c0_93 = arith.constant 0 : index
    %c0_94 = arith.constant 0 : index
    %c0_95 = arith.constant 0 : index
    %106 = vector.load %arg6[%c0_93, %c0_94, %c0_95] : memref<1x256x128xf32, #tpu.memory_space<vmem>>, vector<1x256x128xf32>
    %107 = vector.shape_cast %106 : vector<1x256x128xf32> to vector<256x128xf32>
    %108 = vector.shape_cast %105 : vector<256x128xf32> to vector<1x256x128xf32>
    tpu.vector_store %arg6[%c0_93, %c0_94, %c0_95], %108 {strides = array<i32>} : memref<1x256x128xf32, #tpu.memory_space<vmem>>, vector<1x256x128xf32>,
    return
  }
  func.func @transform_0(%arg0: i32) -> (i32, i32, i32, i32) {
    %c0_i32 = arith.constant 0 : i32
    %c0_i32_0 = arith.constant 0 : i32
    %c0_i32_1 = arith.constant 0 : i32
    %c0_i32_2 = arith.constant 0 : i32
    return %arg0, %c0_i32, %c0_i32_0, %c0_i32_1 : i32, i32, i32, i32
  }
  func.func @transform_1(%arg0: i32) -> (i32, i32) {
    %c0_i32 = arith.constant 0 : i32
    %c0_i32_0 = arith.constant 0 : i32
    %c0_i32_1 = arith.constant 0 : i32
    return %c0_i32, %c0_i32_0 : i32, i32
  }
  func.func @transform_2(%arg0: i32) -> (i32, i32) {
    %c0_i32 = arith.constant 0 : i32
    %c0_i32_0 = arith.constant 0 : i32
    %c0_i32_1 = arith.constant 0 : i32
    return %c0_i32, %c0_i32_0 : i32, i32
  }
  func.func @transform_3(%arg0: i32) -> (i32, i32) {
    %c0_i32 = arith.constant 0 : i32
    %c0_i32_0 = arith.constant 0 : i32
    %c0_i32_1 = arith.constant 0 : i32
    return %c0_i32, %c0_i32_0 : i32, i32
  }
  func.func @transform_4(%arg0: i32) -> (i32, i32) {
    %c0_i32 = arith.constant 0 : i32
    %c0_i32_0 = arith.constant 0 : i32
    %c0_i32_1 = arith.constant 0 : i32
    return %c0_i32, %c0_i32_0 : i32, i32
  }
  func.func @transform_5(%arg0: i32) -> (i32, i32, i32) {
    %c0_i32 = arith.constant 0 : i32
    %c0_i32_0 = arith.constant 0 : i32
    %c0_i32_1 = arith.constant 0 : i32
    return %arg0, %c0_i32, %c0_i32_0 : i32, i32, i32
  }
}

</mosaic_0001>

<bundles_post_ra>
// kernel: tpu_custom_call.1
= control target key start
LH: loop header
LB: loop body
LE: loop exit
PB: predicated region body
PF: predicated region fallthrough
CT: control target
= control target key end

     0   :  { %10 = vsyncpa [#allocation5], 0  ;;  %s8203_s0 = inlined_call_operand.hbm [shape: f32[2,18,24,128], index: 0, kind: input, shape index: {}]   ;;  %s8204_s1 = inlined_call_operand.hbm [shape: bf16[1152,128], index: 1, kind: input, shape index: {}]   ;;  %s8205_s2 = inlined_call_operand.hbm [shape: bf16[1152,128], index: 2, kind: input, shape index: {}]   ;;  %s8206_s3 = inlined_call_operand.vmem [shape: f32[1,128], index: 3, kind: input, shape index: {}]   ;;  %s8207_s4 = inlined_call_operand.vmem [shape: f32[1,128], index: 4, kind: input, shape index: {}]   ;;  %s8208_s5 = inlined_call_operand.hbm [shape: f32[2,256,128], index: 5, kind: output, shape index: {}]  }
   0x1   :  { %12 = vsyncpa [#allocation5 + $0x1], 0 }
   0x2   :  { %13 = vsyncpa [#allocation8], 0 }
   0x3   :  { %14 = vsyncpa [#allocation6], 0 }
   0x4   :  { %16 = vsyncpa [#allocation6 + $0x1], 0  ;;  %s6504_s18 = smov 0   ;;  %s6506_s19 = smov 0  }
   0x5   :  { %s6508_s20 = smov 0   ;;  %s6510_s21 = smov 0  }
   0x6 LB: > { %s6525_s22 = sadd.s32 4294967295, %s6461_s21   ;;  %s4880_s23 = sadd.s32 4294967294, %s6461_s21   ;;  %s6461_s21 = sphi %s6510_s21, %s8292_s21   ;;  %s6457_s20 = sphi %s6508_s20, %s8291_s20   ;;  %s6453_s19 = sphi %s6506_s19, %s8290_s19   ;;  %s6449_s18 = sphi %s6504_s18, %s8289_s18  }
   0x7   : > { %p42_p0 = scmp.ne.s32.totalorder %s6453_s19, %s6449_s18  ;;  %p8209_p1 = scmp.eq.s32.totalorder %s6525_s22, 0 }
   0x8   : > { %p156_p3 = scmp.eq.s32.totalorder %s4880_s23, 1  ;;  %p4881_p5 = scmp.ge.s32.totalorder %s6461_s21, 1 }
   0x9   : > { %p6534_p4 = por %p8209_p1, %p42_p0  ;;  %p163_p7 = scmp.lt.s32.totalorder %s6461_s21, 3 }
   0xa   : > { %p6539_p6 = por %p156_p3, %p42_p0  ;;  %s6463_s27 = smov [#allocation7]  }
   0xb   : > { %s8238_s24 = scalar_select %p6534_p4, 1, 0 }
   0xc   : > { %s8239_s25 = scalar_select %p6539_p6, 1, 0 }
   0xd   : > { %p6544_p8 = pnand %p4881_p5, %p163_p7  ;;  %s175_s28 = sshll.u32 %s6463_s27, 4  ;;  %s6548_s28 = int_to_ptr.vmem [resolvable:$true] %s175_s28 }
   0xe   : > { %s6464_s30 = smov [#allocation9]   ;;  %s6305_s9 = scalar_lea.hbm %s8204_s1, 9216 }
   0xf   : > { %p6097_p9 = pneg %p6544_p8  ;;  %s188_s6 = sshll.u32 %s6464_s30, 4  ;;  %s6559_s6 = int_to_ptr.vmem [resolvable:$true] %s188_s6 }
  0x10   : > { %p6306_p12 = scmp.ne.s32.totalorder %s8204_s1, %s6305_s9  ;;  %p6312_p5 = scmp.lt.u32.totalorder %s6305_s9, %s8204_s1 }
  0x11   : > { %p6555_p11 = pnand %p6097_p9, %p8209_p1 }
  0x13   : > { %p6307_p13 = pneg %p6555_p11 }
  0x15   : > { %p6308_p0 = pnand %p6307_p13, %p6306_p12 }
  0x17   : > { %p6309_p3 = pneg %p6308_p0 }
  0x19   : > { %p6314_p7 = pnand %p6312_p5, %p6309_p3 }
  0x1b   : > { %6317 = shalt.err (!%p6314_p7)
}
  0x1c   : > { %s6318_s14 = scalar_lea.vmem %s6548_s28, 9216  ;;  %p6326_p2 = scmp.lt.s32.totalorder %s6548_s28, %s6548_s28 }
  0x1d   : > { %p6319_p9 = scmp.ne.s32.totalorder %s6548_s28, %s6318_s14  ;;  %p6327_p12 = scmp.lt.s32.totalorder %s6318_s14, %s6318_s14 }
  0x1f   : > { %p6321_p10 = pnand %p6319_p9, %p6307_p13  ;;  %p6328_p0 = por %p6327_p12, %p6326_p2 }
  0x21   : > { %p6322_p1 = pneg %p6321_p10 }
  0x23   : > { %p6329_p6 = pnand %p6328_p0, %p6322_p1 }
  0x25   : > { %6332 = shalt.err (!%p6329_p6)
}
  0x26   : > { %s6465_s15 = smov 64   ;;  %s6466_s16 = smov 4  }
  0x27   : > { %6100 = dma.hbm_to_vmem [thread:$0]  (!%p6555_p11), %s8204_s1, 9216, %s6548_s28, [#allocation8], %s6465_s15, %s6465_s15, %s6466_s16  }
  0x28   : > { %s6333_s7 = scalar_lea.hbm %s8205_s2, 9216 }
  0x29   : > { %p6334_p2 = scmp.ne.s32.totalorder %s8205_s2, %s6333_s7  ;;  %p6340_p10 = scmp.lt.u32.totalorder %s6333_s7, %s8205_s2 }
  0x2b   : > { %p6336_p1 = pnand %p6334_p2, %p6307_p13 }
  0x2d   : > { %p6337_p6 = pneg %p6336_p1 }
  0x2f   : > { %p6342_p3 = pnand %p6340_p10, %p6337_p6 }
  0x31   : > { %6345 = shalt.err (!%p6342_p3)
}
  0x32   : > { %s6346_s28 = scalar_lea.vmem %s6559_s6, 9216  ;;  %p6354_p12 = scmp.lt.s32.totalorder %s6559_s6, %s6559_s6 }
  0x33   : > { %p6347_p5 = scmp.ne.s32.totalorder %s6559_s6, %s6346_s28  ;;  %p6355_p0 = scmp.lt.s32.totalorder %s6346_s28, %s6346_s28 }
  0x35   : > { %p6349_p7 = pnand %p6347_p5, %p6307_p13  ;;  %p6356_p2 = por %p6355_p0, %p6354_p12 }
  0x37   : > { %p6350_p9 = pneg %p6349_p7 }
  0x39   : > { %p6357_p1 = pnand %p6356_p2, %p6350_p9 }
  0x3b   : > { %6360 = shalt.err (!%p6357_p1)
}
  0x3c   : > { %6103 = dma.hbm_to_vmem [thread:$0]  (!%p6555_p11), %s8205_s2, 9216, %s6559_s6, [#allocation8], %s6465_s15, %s6465_s15, %s6466_s16  }
  0x3d   : > { %s6614_s14 = sadd.s32 1, %s6461_s21   ;;  %s29_s29 = sadd.s32 1, %s6457_s20 }
  0x3e   : > { %s26_s17 = ssub.s32 %s6461_s21, %s6614_s14  ;;  %p36_p13 = scmp.ne.s32.totalorder %s6457_s20, %s6453_s19 }
  0x3f   : > { %p27_p6 = scmp.eq.s32.totalorder %s26_s17, 0  ;;  %p37_p10 = scmp.eq.s32.totalorder %s6461_s21, 0 }
  0x40   : > { %p8242_p3 = scmp.eq.s32.totalorder %s6525_s22, 1  ;;  %p6114_p7 = scmp.lt.s32.totalorder %s6461_s21, 2 }
  0x41   : > { %s6630_s27 = scalar_select %p27_p6, %s6457_s20, %s29_s29  }
  0x42   : > { %p6624_p5 = por %p8242_p3, %p36_p13  ;;  %p38_p9 = por %p37_p10, %p36_p13 }
  0x43   : > { %s208_s30 = sand.u32 1, %s6457_s20   ;;  %s6083_s6 = smul.u32 6912, %s6461_s21 }
  0x44   : > { %s8243_s23 = scalar_select %p6624_p5, 1, 0 }
  0x45   : > { %s6082_s7 = smul.u32 432, %s208_s30  ;;  %p6634_p11 = pnand %p6114_p7, %p38_p9 }
  0x46   : > { %s6641_s9 = scalar_lea.hbm %s8203_s0, %s6083_s6  ;;  %s6645_s28 = scalar_lea.sflag [#allocation5], %s208_s30 }
  0x47   : > { %s212_s10 = scalar_lea.vmem [#allocation4], %s6082_s7  ;;  %s6361_s12 = scalar_lea.hbm %s6641_s9, 6912 }
  0x48   : > { %s219_s11 = sshll.u32 %s212_s10, 4  ;;  %p6362_p12 = scmp.ne.s32.totalorder %s6641_s9, %s6361_s12  ;;  %s6643_s11 = int_to_ptr.vmem [resolvable:$true] %s219_s11 }
  0x49   : > { %p6363_p0 = pneg %p6634_p11  ;;  %s6366_s17 = scalar_lea.hbm %s8203_s0, 13824 }
  0x4a   : > { %p6367_p13 = scmp.lt.u32.totalorder %s6641_s9, %s8203_s0  ;;  %p6368_p6 = scmp.lt.u32.totalorder %s6366_s17, %s6361_s12 }
  0x4b   : > { %p6364_p2 = pnand %p6363_p0, %p6362_p12  ;;  %p6370_p3 = scmp.lt.u32.totalorder %s6361_s12, %s6641_s9 }
  0x4c   : > { %p6369_p10 = por %p6368_p6, %p6367_p13 }
  0x4d   : > { %p6365_p1 = pneg %p6364_p2 }
  0x4e   : > { %p6371_p7 = por %p6370_p3, %p6369_p10 }
  0x50   : > { %p6372_p9 = pnand %p6371_p7, %p6365_p1 }
  0x52   : > { %6375 = shalt.err (!%p6372_p9)
}
  0x53   : > { %s6376_s30 = scalar_lea.vmem %s6643_s11, 6912  ;;  %s6467_s7 = smov [#allocation4]  }
  0x54   : > { %p6377_p12 = scmp.ne.s32.totalorder %s6643_s11, %s6376_s30  ;;  %s6381_s8 = sshll.u32 %s6467_s7, 4  ;;  %s6382_s8 = int_to_ptr.vmem [resolvable:$false] %s6381_s8 }
  0x55   : > { %s6383_s10 = scalar_lea.vmem %s6382_s8, 13824  ;;  %p6384_p4 = scmp.lt.s32.totalorder %s6643_s11, %s6382_s8 }
  0x56   : > { %p6379_p2 = pnand %p6377_p12, %p6363_p0  ;;  %p6385_p13 = scmp.lt.s32.totalorder %s6383_s10, %s6376_s30 }
  0x58   : > { %p6380_p5 = pneg %p6379_p2  ;;  %p6386_p6 = por %p6385_p13, %p6384_p4 }
  0x5a   : > { %p6387_p10 = pnand %p6386_p6, %p6380_p5 }
  0x5c   : > { %6390 = shalt.err (!%p6387_p10)
}
  0x5d   : > { %s6468_s12 = smov 128   ;;  %s6469_s13 = smov 8  }
  0x5e   : > { %6107 = dma.hbm_to_vmem [thread:$0]  (!%p6634_p11), %s6641_s9, 6912, %s6643_s11, %s6645_s28, %s6468_s12, %s6468_s12, %s6469_s13  }
  0x5f   : > { %231 = sbr.rel (%p6544_p8) target bundleno = 1168 (0x490), region = 40 }
  0x66   : > { %s6676_s29 = sand.u32 1, %s6453_s19   ;;  %p8245_p4 = scmp.ne.s32.totalorder %s8238_s24, 0 }
  0x67   : > { %s6084_s17 = smul.u32 432, %s6676_s29  ;;  %s234_s6 = scalar_lea.sflag [#allocation5], %s6676_s29 }
  0x69   : > { %s6680_s16 = scalar_lea.vmem [#allocation4], %s6084_s17 }
  0x6a   : > { %6436 = dma.done.wait (%p8245_p4), %s234_s6, 6912  }
  0x6b   : > { %6438 = vsyncadd (%p8245_p4), %s234_s6, 4294960384  ;;  %p8246_p5 = scmp.eq.s32.totalorder %s6525_s22, 0 }
  0x6d   : > { %6440 = dma.done.wait (%p8246_p5), [#allocation8], 18432   ;;  %p8247_p8 = pmov %p8246_p5 }
  0x6e   : > { %v6159_v0 = vld [vmem:[#allocation7 + $0x40] sm:$0xff]   ;;  %v6163_v4 = vld [vmem:[#allocation7 + $0x48] sm:$0xff]   ;;  %v6167_v8 = vld [vmem:[#allocation7 + $0x50] sm:$0xff]   ;;  %vm407_vm0 = vcmask 1046528   ;;  %vm552_vm1 = vcmask 1045504   ;;  %s4889_s24 = sshll.u32 %s6676_s29, 8 }
  0x6f   : > { %6442 = vsyncadd (%p8247_p8), [#allocation8], 4294948864  ;;  %v6160_v1 = vld [vmem:[#allocation7] sm:$0xff]   ;;  %5042 = vmatprep.subr.bf16.mxu0 %v6159_v0  ;;  %v6164_v5 = vld [vmem:[#allocation7 + $0x8] sm:$0xff]   ;;  %s6737_s9 = scalar_lea.vmem [#allocation10], %s4889_s24  ;;  %s5041_s8 = sshll.u32 %s6525_s22, 12 }
  0x70   : > { %v6161_v2 = vld [vmem:[#allocation7 + $0xc0] sm:$0xff]   ;;  %5043 = vmatpush3.bf16.msra.mxu0 %v6160_v1  ;;  %v6165_v6 = vld [vmem:[#allocation7 + $0xc8] sm:$0xff]   ;;  %v6168_v9 = vld [vmem:[#allocation7 + $0x10] sm:$0xff]   ;;  %s4788_s10 = sshll.u32 %s6737_s9, 4  ;;  %s8154_s17 = scalar_lea.hbm %s8208_s5, %s5041_s8  ;;  %s8156_s10 = int_to_ptr.vmem [resolvable:$true] %s4788_s10 }
  0x71   : > { %v6162_v3 = vld [vmem:[#allocation7 + $0x80] sm:$0xff]   ;;  %5154 = vmatprep.subr.bf16.mxu1 %v6161_v2  ;;  %5044 = vmatprep.subr.bf16.mxu0 %v6163_v4  ;;  %v6166_v7 = vld [vmem:[#allocation7 + $0x88] sm:$0xff]   ;;  %v6169_v10 = vld [vmem:[#allocation7 + $0xd0] sm:$0xff]   ;;  %s4775_s22 = scalar_lea.sflag [#allocation6], %s6676_s29  ;;  %s6391_s6 = scalar_lea.vmem %s8156_s10, 4096 }
  0x72   : > { %5155 = vmatpush3.bf16.msra.mxu1 %v6162_v3  ;;  %v6170_v11 = vld [vmem:[#allocation7 + $0x90] sm:$0xff]   ;;  %v6171_v12 = vld [vmem:[#allocation7 + $0x58] sm:$0xff]   ;;  %v6175_v16 = vld [vmem:[#allocation7 + $0x60] sm:$0xff]   ;;  %p6392_p11 = scmp.ne.s32.totalorder %s8156_s10, %s6391_s6  ;;  %p8286_p0 = scmp.ne.s32.totalorder %s8243_s23, 0 }
  0x73   : > { %5156 = vmatprep.subr.bf16.mxu1 %v6165_v6  ;;  %v6172_v13 = vld [vmem:[#allocation7 + $0x18] sm:$0xff]   ;;  %v6176_v17 = vld [vmem:[#allocation7 + $0x20] sm:$0xff]   ;;  %v6179_v20 = vld [vmem:[#allocation7 + $0x68] sm:$0xff]  }
  0x74   : > { %5045 = vmatpush3.bf16.msra.mxu0 %v6164_v5  ;;  %v6173_v14 = vld [vmem:[#allocation7 + $0xd8] sm:$0xff]   ;;  %v6177_v18 = vld [vmem:[#allocation7 + $0xe0] sm:$0xff]   ;;  %v6180_v21 = vld [vmem:[#allocation7 + $0x28] sm:$0xff]   ;;  %p6393_p1 = pnand %p6392_p11, %p8286_p0 }
  0x75   : > { %5046 = vmatprep.subr.bf16.mxu0 %v6167_v8  ;;  %v6174_v15 = vld [vmem:[#allocation7 + $0x98] sm:$0xff]   ;;  %v6178_v19 = vld [vmem:[#allocation7 + $0xa0] sm:$0xff]   ;;  %v6181_v22 = vld [vmem:[#allocation7 + $0xe8] sm:$0xff]  }
  0x76   : > { %5157 = vmatpush3.bf16.msra.mxu1 %v6166_v7  ;;  %v6182_v23 = vld [vmem:[#allocation7 + $0xa8] sm:$0xff]   ;;  %v6183_v24 = vld [vmem:[#allocation7 + $0x70] sm:$0xff]   ;;  %v6187_v28 = vld [vmem:[#allocation7 + $0x78] sm:$0xff]   ;;  %p6394_p3 = pneg %p6393_p1 }
  0x77   : > { %5158 = vmatprep.subr.bf16.mxu1 %v6169_v10  ;;  %v6184_v25 = vld [vmem:[#allocation7 + $0x30] sm:$0xff]   ;;  %v6188_v29 = vld [vmem:[#allocation7 + $0x38] sm:$0xff]   ;;  %v6191_v43 = vld [vmem:[#allocation7 + $0x140] sm:$0xff]  }
  0x78   : > { %5047 = vmatpush3.bf16.msra.mxu0 %v6168_v9  ;;  %v6185_v26 = vld [vmem:[#allocation7 + $0xf0] sm:$0xff]   ;;  %v6189_v30 = vld [vmem:[#allocation7 + $0xf8] sm:$0xff]   ;;  %v6192_v50 = vld [vmem:[#allocation7 + $0x100] sm:$0xff]  }
  0x79   : > { %5048 = vmatprep.subr.bf16.mxu0 %v6171_v12  ;;  %v6186_v27 = vld [vmem:[#allocation7 + $0xb0] sm:$0xff]   ;;  %v274_v32 = vld [vmem:[%s6680_s16 + $0x8] sm:$0xff]  ;;  %v276_v44 = vld [vmem:[%s6680_s16 + $0x18] sm:$0xff] }
  0x7a   : > { %5159 = vmatpush3.bf16.msra.mxu1 %v6170_v11  ;;  %v273_v31 = vld [vmem:[%s6680_s16] sm:$0xff]  ;;  %v275_v33 = vld [vmem:[%s6680_s16 + $0x10] sm:$0xff]  ;;  %v409_v35 = vrot.slane %v274_v32, 1  ;;  %v6190_v38 = vld [vmem:[#allocation7 + $0xb8] sm:$0xff]   ;;  %v554_v45 = vrot.slane %v274_v32, 2  ;;  %v413_v48 = vrot.slane %v276_v44, 1 }
  0x7b   : > { %5160 = vmatprep.subr.bf16.mxu1 %v6173_v14  ;;  %v408_v34 = vrot.slane %v273_v31, 1  ;;  %v411_v36 = vrot.slane %v275_v33, 1  ;;  %v556_v37 = vrot.slane %v275_v33, 2  ;;  %v553_v39 = vrot.slane %v273_v31, 2  ;;  %v277_v47 = vld [vmem:[%s6680_s16 + $0x20] sm:$0xff]  ;;  %v278_v55 = vld [vmem:[%s6680_s16 + $0x28] sm:$0xff] }
  0x7c   : > { %5049 = vmatpush3.bf16.msra.mxu0 %v6172_v13  ;;  %v327_v42 = vpack.c.bf16 %v274_v32, %v273_v31  ;;  %v558_v49 = vrot.slane %v276_v44, 2  ;;  %v6698_v51 = vpack.c.bf16 %v277_v47, %v276_v44  ;;  %v414_v52 = vrot.slane %v277_v47, 1  ;;  %v6703_v56 = vld [vmem:[%s6680_s16 + $0x30] sm:$0xff]  ;;  %v6712_v60 = vld [vmem:[%s6680_s16 + $0x38] sm:$0xff]  ;;  %v6723_v2 = vld [vmem:[%s6680_s16 + $0x40] sm:$0xff] }
  0x7d   : > { %5050 = vmatprep.subr.bf16.mxu0 %v6175_v16  ;;  %v410_v40 = vsel %vm407_vm0, %v408_v34, %v409_v35  ;;  %v412_v41 = vsel %vm407_vm0, %v409_v35, %v411_v36  ;;  %v559_v53 = vrot.slane %v277_v47, 2  ;;  %v555_v54 = vsel %vm552_vm1, %v553_v39, %v554_v45  ;;  %v6709_v59 = vld [vmem:[%s8207_s4] ss:$0 sm:$0xff]  ;;  %v6193_v6 = vld [vmem:[#allocation7 + $0x148] sm:$0xff]  }
  0x7e   : > { %5161 = vmatpush3.bf16.msra.mxu1 %v6174_v15  ;;  %v520_v46 = vpack.c.bf16 %v412_v41, %v410_v40  ;;  %v557_v57 = vsel %vm552_vm1, %v554_v45, %v556_v37  ;;  %v416_v58 = vrot.slane %v278_v55, 1  ;;  %v418_v61 = vrot.slane %v6703_v56, 1  ;;  %1824 = vmatprep.mubr.bf16.mxu1 %v6698_v51  ;;  %v6729_v7 = vld [vmem:[%s6680_s16 + $0x48] sm:$0xff]  ;;  %v6744_v15 = vld [vmem:[%s6680_s16 + $0x50] sm:$0xff]  ;;  %v6789_v40 = vld [vmem:[%s6680_s16 + $0x78] sm:$0xff] }
  0x7f   : > { %5162 = vmatprep.subr.bf16.mxu1 %v6177_v18  ;;  %v665_v62 = vpack.c.bf16 %v557_v57, %v555_v54  ;;  %v415_v63 = vsel %vm407_vm0, %v413_v48, %v414_v52  ;;  %v6719_v0 = vpack.c.bf16 %v6712_v60, %v6703_v56  ;;  %v419_v1 = vrot.slane %v6712_v60, 1  ;;  %v6194_v12 = vld [vmem:[#allocation7 + $0x108] sm:$0xff]   ;;  %v6779_v35 = vld [vmem:[%s6680_s16 + $0x70] sm:$0xff]  ;;  %v6197_v41 = vld [vmem:[#allocation7 + $0x158] sm:$0xff]  }
  0x80   : > { %5051 = vmatpush3.bf16.msra.mxu0 %v6176_v17  ;;  %1663 = vmatprep.mubr.bf16.mxu0 %v520_v46  ;;  %v417_v3 = vsel %vm407_vm0, %v414_v52, %v416_v58  ;;  %v840_v4 = vadd.f32 %v6709_v59, %v415_v63  ;;  %v560_v5 = vsel %vm552_vm1, %v558_v49, %v559_v53  ;;  %v561_v10 = vrot.slane %v278_v55, 2  ;;  %v6748_v17 = vld [vmem:[%s6680_s16 + $0x58] sm:$0xff]  ;;  %v6775_v33 = vld [vmem:[%s6680_s16 + $0x68] sm:$0xff]  ;;  %v6196_v36 = vld [vmem:[#allocation7 + $0x110] sm:$0xff]  }
  0x81   : > { %5052 = vmatprep.subr.bf16.mxu0 %v6179_v20  ;;  %8248 = vst [vmem:[#allocation14_spill] sm:$0xff] %v6719_v0  ;;  %v6731_v8 = vpack.c.bf16 %v417_v3, %v415_v63  ;;  %v841_v9 = vadd.f32 %v6709_v59, %v417_v3  ;;  %v420_v11 = vsel %vm407_vm0, %v418_v61, %v419_v1  ;;  %v421_v13 = vrot.slane %v6723_v2, 1  ;;  %v6796_v45 = vld [vmem:[%s6680_s16 + $0x80] sm:$0xff]  ;;  %v6198_v46 = vld [vmem:[#allocation7 + $0x118] sm:$0xff]   ;;  %v6810_v54 = vld [vmem:[%s6680_s16 + $0x90] sm:$0xff] }
  0x82   : > { %5163 = vmatpush3.bf16.msra.mxu1 %v6178_v19  ;;  %872 = vst [vmem:[%s6737_s9] sm:$0xff] %v840_v4  ;;  %v842_v14 = vadd.f32 %v6709_v59, %v420_v11  ;;  %v423_v16 = vrot.slane %v6729_v7, 1  ;;  %v562_v18 = vsel %vm552_vm1, %v559_v53, %v561_v10  ;;  %v424_v19 = vrot.slane %v6744_v15, 1  ;;  %v6199_v58 = vld [vmem:[#allocation7 + $0x160] sm:$0xff]   ;;  %v6824_v63 = vld [vmem:[%s6680_s16 + $0x98] sm:$0xff]  ;;  %v6844_v10 = vld [vmem:[%s6680_s16 + $0xa8] sm:$0xff] }
  0x83   : > { %5164 = vmatprep.subr.bf16.mxu1 %v6181_v22  ;;  %873 = vst [vmem:[%s6737_s9 + $0x8] sm:$0xff] %v841_v9  ;;  %v563_v20 = vrot.slane %v6703_v56, 2  ;;  %v6756_v22 = vpack.c.bf16 %v562_v18, %v560_v5  ;;  %v566_v31 = vrot.slane %v6723_v2, 2  ;;  %v431_v44 = vrot.slane %v6779_v35, 1  ;;  %v6862_v18 = vld [vmem:[%s6680_s16 + $0xb8] sm:$0xff] }
  0x84   : > { %5053 = vmatpush3.bf16.msra.mxu0 %v6180_v21  ;;  %v564_v21 = vrot.slane %v6712_v60, 2  ;;  %874 = vst [vmem:[%s6737_s9 + $0x10] sm:$0xff] %v842_v14  ;;  %v433_v49 = vrot.slane %v6789_v40, 1  ;;  %v568_v52 = vrot.slane %v6729_v7, 2  ;;  %v569_v55 = vrot.slane %v6744_v15, 2 }
  0x85   : > { %5054 = vmatprep.subr.bf16.mxu0 %v6183_v24  ;;  %v6195_v24 = vld [vmem:[#allocation7 + $0x150] sm:$0xff]   ;;  %v571_v3 = vrot.slane %v6748_v17, 2  ;;  %v439_v5 = vrot.slane %v6824_v63, 1 }
  0x86   : > { %5165 = vmatpush3.bf16.msra.mxu1 %v6182_v23  ;;  %v422_v23 = vsel %vm407_vm0, %v419_v1, %v421_v13  ;;  %v567_v47 = vsel %vm552_vm1, %v564_v21, %v566_v31  ;;  %v438_v1 = vrot.slane %v6810_v54, 1  ;;  %v6201_v13 = vld [vmem:[#allocation7 + $0x168] sm:$0xff]  }
  0x87   : > { %5166 = vmatprep.subr.bf16.mxu1 %v6185_v26  ;;  %v843_v26 = vadd.f32 %v6709_v59, %v422_v23 }
  0x88   : > { %5055 = vmatpush3.bf16.msra.mxu0 %v6184_v25  ;;  %v6760_v25 = vpack.c.bf16 %v422_v23, %v420_v11  ;;  %v6202_v23 = vld [vmem:[#allocation7 + $0x128] sm:$0xff]  }
  0x89   : > { %5056 = vmatprep.subr.bf16.mxu0 %v6187_v28  ;;  %v426_v28 = vrot.slane %v6748_v17, 1  ;;  %875 = vst [vmem:[%s6737_s9 + $0x18] sm:$0xff] %v843_v26  ;;  %v443_v17 = vrot.slane %v6844_v10, 1  ;;  %v574_v26 = vrot.slane %v6775_v33, 2 }
  0x8a   : > { %5167 = vmatpush3.bf16.msra.mxu1 %v6186_v27  ;;  %v425_v27 = vsel %vm407_vm0, %v423_v16, %v424_v19  ;;  %v6858_v16 = vld [vmem:[%s6680_s16 + $0xb0] sm:$0xff] }
  0x8b   : > { %5168 = vmatprep.subr.bf16.mxu1 %v6189_v30  ;;  %v6770_v30 = vpack.c.bf16 %v6744_v15, %v6729_v7  ;;  %v844_v32 = vadd.f32 %v6709_v59, %v425_v27  ;;  %v427_v37 = vsel %vm407_vm0, %v424_v19, %v426_v28  ;;  %v6200_v7 = vld [vmem:[#allocation7 + $0x120] sm:$0xff]   ;;  %v570_v19 = vsel %vm552_vm1, %v568_v52, %v569_v55 }
  0x8c   : > { %5057 = vmatpush3.bf16.msra.mxu0 %v6188_v29  ;;  %v6766_v29 = vld [vmem:[%s6680_s16 + $0x60] sm:$0xff]  ;;  %v845_v39 = vadd.f32 %v6709_v59, %v427_v37  ;;  %v6813_v56 = vpack.c.bf16 %v427_v37, %v425_v27 }
  0x8d   : > { %5266 = vmatprep.subr.bf16.mxu0 %v6191_v43  ;;  %8249 = vst [vmem:[#allocation15_spill] sm:$0xff] %v6770_v30  ;;  %v428_v34 = vrot.slane %v6766_v29, 1  ;;  %876 = vst [vmem:[%s6737_s9 + $0x20] sm:$0xff] %v844_v32  ;;  %v6829_v2 = vpack.c.bf16 %v6775_v33, %v6766_v29 }
  0x8e   : > { %5169 = vmatpush3.bf16.msra.mxu1 %v6190_v38  ;;  %v429_v38 = vrot.slane %v6775_v33, 1  ;;  %877 = vst [vmem:[%s6737_s9 + $0x28] sm:$0xff] %v845_v39  ;;  %8250 = vst [vmem:[#allocation16_spill] sm:$0xff] %v6813_v56 }
  0x8f   : > { %1664 = vmatmul.mubr.bf16.vlgmr.msra.gmra.mrb[0].mxu0 %v327_v42  ;;  %v565_v42 = vsel %vm552_vm1, %v563_v20, %v564_v21  ;;  %8252 = vst [vmem:[#allocation18_spill] sm:$0xff] %v6829_v2  ;;  %v572_v20 = vsel %vm552_vm1, %v569_v55, %v571_v3  ;;  %v444_v21 = vrot.slane %v6858_v16, 1  ;;  %v6206_v55 = vld [vmem:[#allocation7 + $0x180] sm:$0xff]   ;;  %v6207_v3 = vld [vmem:[#allocation7 + $0x1c8] sm:$0xff]  }
  0x90   : > { %5267 = vmatpush3.bf16.msra.mxu0 %v6192_v50  ;;  %1671 = vmatprep.mubr.bf16.mxu0 %v6731_v8  ;;  %v430_v43 = vsel %vm407_vm0, %v428_v34, %v429_v38  ;;  %v434_v50 = vrot.slane %v6796_v45, 1  ;;  %v432_v53 = vsel %vm407_vm0, %v429_v38, %v431_v44  ;;  %v6817_v60 = vpack.c.bf16 %v567_v47, %v565_v42  ;;  %v6892_v38 = vld [vmem:[%s6680_s16 + $0xc8] sm:$0xff]  ;;  %v6203_v42 = vld [vmem:[#allocation7 + $0x170] sm:$0xff]  }
  0x91   : > { %1825 = vmatmul.mubr.bf16.vlgmr.msra.gmra.mrb[0].mxu1 %v665_v62  ;;  %5268 = vmatprep.subr.bf16.mxu0 %v6193_v6  ;;  %v846_v48 = vadd.f32 %v6709_v59, %v430_v43  ;;  %v847_v57 = vadd.f32 %v6709_v59, %v432_v53  ;;  %v6837_v6 = vld [vmem:[%s6680_s16 + $0xa0] sm:$0xff]  ;;  %v6875_v28 = vpack.c.bf16 %v432_v53, %v430_v43  ;;  %v446_v34 = vrot.slane %v6862_v18, 1 }
  0x92   : > { %1832 = vmatprep.mubr.bf16.mxu1 %v6719_v0  ;;  %8251 = vst [vmem:[#allocation17_spill] sm:$0xff] %v6817_v60  ;;  %v6820_v61 = vsel %vm407_vm0, %v433_v49, %v434_v50  ;;  %v441_v14 = vrot.slane %v6837_v6, 1  ;;  %v6880_v32 = vsel %vm407_vm0, %v443_v17, %v444_v21  ;;  %v6886_v33 = vpack.c.bf16 %v572_v20, %v570_v19  ;;  %v6911_v47 = vld [vmem:[%s6680_s16 + $0xe0] sm:$0xff] }
  0x93   : > { %878 = vst [vmem:[%s6737_s9 + $0x30] sm:$0xff] %v846_v48  ;;  %879 = vst [vmem:[%s6737_s9 + $0x38] sm:$0xff] %v847_v57  ;;  %v848_v4 = vadd.f32 %v6709_v59, %v6820_v61  ;;  %v852_v37 = vadd.f32 %v6709_v59, %v6880_v32  ;;  %v6900_v43 = vpack.c.bf16 %v6796_v45, %v6789_v40  ;;  %v6204_v49 = vld [vmem:[#allocation7 + $0x130] sm:$0xff]   ;;  %v6205_v53 = vld [vmem:[#allocation7 + $0x1c0] sm:$0xff]  }
  0x94   : > { %5269 = vmatpush3.bf16.msra.mxu0 %v6194_v12  ;;  %v6851_v12 = vsel %vm407_vm0, %v438_v1, %v439_v5  ;;  %v6872_v27 = vsel %vm407_vm0, %v439_v5, %v441_v14  ;;  %8253 = vst [vmem:[#allocation19_spill] sm:$0xff] %v6875_v28  ;;  %8254 = vst [vmem:[#allocation20_spill] sm:$0xff] %v6886_v33  ;;  %v6904_v44 = vsel %vm407_vm0, %v444_v21, %v446_v34  ;;  %v6929_v1 = vld [vmem:[%s6680_s16 + $0xe8] sm:$0xff]  ;;  %v6953_v21 = vld [vmem:[%s6680_s16 + $0xf8] sm:$0xff] }
  0x95   : > { %5270 = vmatprep.subr.bf16.mxu0 %v6195_v24  ;;  %880 = vst [vmem:[%s6737_s9 + $0x40] sm:$0xff] %v848_v4  ;;  %v850_v15 = vadd.f32 %v6709_v59, %v6851_v12  ;;  %v573_v24 = vrot.slane %v6766_v29, 2  ;;  %v851_v31 = vadd.f32 %v6709_v59, %v6872_v27  ;;  %v6884_v29 = vld [vmem:[%s6680_s16 + $0xc0] sm:$0xff]  ;;  %8255 = vst [vmem:[#allocation21_spill] sm:$0xff] %v6900_v43  ;;  %5378 = vmatprep.subr.bf16.mxu1 %v6205_v53 }
  0x96   : > { %v448_v39 = vrot.slane %v6884_v29, 1  ;;  %v853_v48 = vadd.f32 %v6709_v59, %v6904_v44  ;;  %884 = vst [vmem:[%s6737_s9 + $0x60] sm:$0xff] %v852_v37  ;;  %5379 = vmatpush3.bf16.msra.mxu1 %v6206_v55  ;;  %v456_v20 = vrot.slane %v6929_v1, 1  ;;  %v6209_v34 = vld [vmem:[#allocation7 + $0x1d0] sm:$0xff]  }
  0x97   : > { %1672 = vmatmul.mubr.bf16.gmra.mrb[4].mxu0 %v6698_v51  ;;  %v6805_v51 = vld [vmem:[%s6680_s16 + $0x88] sm:$0xff]  ;;  %882 = vst [vmem:[%s6737_s9 + $0x50] sm:$0xff] %v850_v15  ;;  %883 = vst [vmem:[%s6737_s9 + $0x58] sm:$0xff] %v851_v31  ;;  %v575_v4 = vsel %vm552_vm1, %v573_v24, %v574_v26  ;;  %5380 = vmatprep.subr.bf16.mxu1 %v6207_v3  ;;  %v579_v24 = vrot.slane %v6796_v45, 2  ;;  %v6978_v45 = vld [vmem:[%s6680_s16 + $0x110] sm:$0xff] }
  0x98   : > { %1679 = vmatprep.mubr.bf16.mxu0 %v6760_v25  ;;  %5271 = vmatpush3.bf16.msra.mxu0 %v6196_v36  ;;  %v436_v62 = vrot.slane %v6805_v51, 1  ;;  %v576_v36 = vrot.slane %v6779_v35, 2  ;;  %v449_v35 = vrot.slane %v6892_v38, 1  ;;  %885 = vst [vmem:[%s6737_s9 + $0x68] sm:$0xff] %v853_v48  ;;  %v6208_v15 = vld [vmem:[#allocation7 + $0x188] sm:$0xff]   ;;  %v581_v37 = vrot.slane %v6805_v51, 2 }
  0x99   : > { %1833 = vmatmul.mubr.bf16.gmra.mrb[4].mxu1 %v6756_v22  ;;  %5272 = vmatprep.subr.bf16.mxu0 %v6197_v41  ;;  %v6896_v41 = vld [vmem:[%s6680_s16 + $0xd0] sm:$0xff]  ;;  %v6967_v31 = vld [vmem:[%s6680_s16 + $0x108] sm:$0xff]  ;;  %v7001_v3 = vld [vmem:[%s6680_s16 + $0x120] sm:$0xff] }
  0x9a   : > { %1840 = vmatprep.mubr.bf16.mxu1 %v6770_v30  ;;  %v6841_v9 = vsel %vm407_vm0, %v434_v50, %v436_v62  ;;  %v6919_v50 = vsel %vm407_vm0, %v448_v39, %v449_v35  ;;  %v451_v52 = vrot.slane %v6896_v41, 1  ;;  %v454_v62 = vrot.slane %v6911_v47, 1  ;;  %5381 = vmatpush3.bf16.msra.mxu1 %v6208_v15  ;;  %v6211_v51 = vld [vmem:[#allocation7 + $0x1d8] sm:$0xff]  }
  0x9b   : > { %v849_v11 = vadd.f32 %v6709_v59, %v6841_v9  ;;  %v854_v57 = vadd.f32 %v6709_v59, %v6919_v50  ;;  %v577_v5 = vsel %vm552_vm1, %v574_v26, %v576_v36  ;;  %v6946_v17 = vpack.c.bf16 %v6841_v9, %v6820_v61  ;;  %5382 = vmatprep.subr.bf16.mxu1 %v6209_v34 }
  0x9c   : > { %5273 = vmatpush3.bf16.msra.mxu0 %v6198_v46  ;;  %v6908_v46 = vld [vmem:[%s6680_s16 + $0xd8] sm:$0xff]  ;;  %v6960_v26 = vpack.c.bf16 %v577_v5, %v575_v4  ;;  %v459_v9 = vrot.slane %v6953_v21, 1  ;;  %v6971_v36 = vpack.c.bf16 %v6824_v63, %v6810_v54  ;;  %v6975_v39 = vsel %vm407_vm0, %v454_v62, %v456_v20 }
  0x9d   : > { %5274 = vmatprep.subr.bf16.mxu0 %v6199_v58  ;;  %881 = vst [vmem:[%s6737_s9 + $0x48] sm:$0xff] %v849_v11  ;;  %v453_v58 = vrot.slane %v6908_v46, 1  ;;  %v6938_v11 = vld [vmem:[%s6680_s16 + $0xf0] sm:$0xff]  ;;  %886 = vst [vmem:[%s6737_s9 + $0x70] sm:$0xff] %v854_v57  ;;  %v857_v48 = vadd.f32 %v6709_v59, %v6975_v39  ;;  %v463_v55 = vrot.slane %v6967_v31, 1  ;;  %v583_v57 = vrot.slane %v6810_v54, 2 }
  0x9e   : > { %8256 = vst [vmem:[#allocation22_spill] sm:$0xff] %v6946_v17  ;;  %8257 = vst [vmem:[#allocation23_spill] sm:$0xff] %v6960_v26  ;;  %v582_v5 = vsel %vm552_vm1, %v579_v24, %v581_v37  ;;  %v7012_v54 = vld [vmem:[%s6680_s16 + $0x128] sm:$0xff]  ;;  %v468_v34 = vrot.slane %v7001_v3, 1 }
  0x9f   : > { %1680 = vmatmul.mubr.bf16.gmra.mrb[8].mxu0 %v6719_v0  ;;  %v6949_v19 = vsel %vm407_vm0, %v453_v58, %v454_v62  ;;  %8258 = vst [vmem:[#allocation24_spill] sm:$0xff] %v6971_v36  ;;  %v584_v58 = vrot.slane %v6824_v63, 2  ;;  %889 = vst [vmem:[%s6737_s9 + $0x88] sm:$0xff] %v857_v48  ;;  %v464_v62 = vrot.slane %v6978_v45, 1  ;;  %v7015_v63 = vld [vmem:[%s6680_s16 + $0x130] sm:$0xff]  ;;  %v6213_v20 = vld [vmem:[#allocation7 + $0x178] sm:$0xff]  }
  0xa0   : > { %1687 = vmatprep.mubr.bf16.mxu0 %v6813_v56  ;;  %5275 = vmatpush3.bf16.msra.mxu0 %v6200_v7  ;;  %v6935_v7 = vsel %vm407_vm0, %v449_v35, %v451_v52  ;;  %v856_v61 = vadd.f32 %v6709_v59, %v6949_v19  ;;  %v6210_v35 = vld [vmem:[#allocation7 + $0x190] sm:$0xff]   ;;  %v6214_v37 = vld [vmem:[#allocation7 + $0x138] sm:$0xff]  }
  0xa1   : > { %1841 = vmatmul.mubr.bf16.gmra.mrb[8].mxu1 %v6817_v60  ;;  %5276 = vmatprep.subr.bf16.mxu0 %v6201_v13  ;;  %v578_v13 = vrot.slane %v6789_v40, 2  ;;  %v855_v14 = vadd.f32 %v6709_v59, %v6935_v7  ;;  %v458_v40 = vrot.slane %v6938_v11, 1 }
  0xa2   : > { %1848 = vmatprep.mubr.bf16.mxu1 %v6829_v2  ;;  %888 = vst [vmem:[%s6737_s9 + $0x80] sm:$0xff] %v856_v61  ;;  %5383 = vmatpush3.bf16.msra.mxu1 %v6210_v35  ;;  %v7025_v61 = vpack.c.bf16 %v6872_v27, %v6851_v12  ;;  %v469_v12 = vrot.slane %v7012_v54, 1  ;;  %v7039_v27 = vld [vmem:[%s6680_s16 + $0x138] sm:$0xff] }
  0xa3   : > { %887 = vst [vmem:[%s6737_s9 + $0x78] sm:$0xff] %v855_v14  ;;  %v580_v4 = vsel %vm552_vm1, %v578_v13, %v579_v24  ;;  %v586_v14 = vrot.slane %v6837_v6, 2  ;;  %v7020_v13 = vsel %vm407_vm0, %v463_v55, %v464_v62  ;;  %v6212_v6 = vld [vmem:[#allocation7 + $0x198] sm:$0xff]   ;;  %5384 = vmatprep.subr.bf16.mxu1 %v6211_v51  ;;  %v7043_v55 = vpack.c.bf16 %v6858_v16, %v6844_v10 }
  0xa4   : > { %5277 = vmatpush3.bf16.msra.mxu0 %v6202_v23  ;;  %v6957_v23 = vld [vmem:[%s6680_s16 + $0x100] sm:$0xff]  ;;  %8259 = vst [vmem:[#allocation25_spill] sm:$0xff] %v7025_v61  ;;  %v7030_v48 = vpack.c.bf16 %v582_v5, %v580_v4  ;;  %v589_v51 = vrot.slane %v6858_v16, 2  ;;  %v585_v4 = vsel %vm552_vm1, %v583_v57, %v584_v58  ;;  %v471_v16 = vrot.slane %v7015_v63, 1 }
  0xa5   : > { %5278 = vmatprep.subr.bf16.mxu0 %v6203_v42  ;;  %v6981_v42 = vld [vmem:[%s6680_s16 + $0x118] sm:$0xff]  ;;  %v461_v52 = vrot.slane %v6957_v23, 1  ;;  %v6216_v57 = vld [vmem:[#allocation7 + $0x1a0] sm:$0xff]  }
  0xa6   : > { %v466_v24 = vrot.slane %v6981_v42, 1  ;;  %8260 = vst [vmem:[#allocation26_spill] sm:$0xff] %v7030_v48  ;;  %5385 = vmatpush3.bf16.msra.mxu1 %v6212_v6  ;;  %v6217_v6 = vld [vmem:[#allocation7 + $0x1e8] sm:$0xff]  }
  0xa7   : > { %1688 = vmatmul.mubr.bf16.gmra.mrb[12].mxu0 %v6770_v30  ;;  %v7008_v15 = vsel %vm407_vm0, %v459_v9, %v461_v52  ;;  %v588_v52 = vrot.slane %v6844_v10, 2  ;;  %v591_v10 = vrot.slane %v6862_v18, 2  ;;  %v7118_v30 = vpack.c.bf16 %v6892_v38, %v6884_v29 }
  0xa8   : > { %1695 = vmatprep.mubr.bf16.mxu0 %v6875_v28  ;;  %5279 = vmatpush3.bf16.msra.mxu0 %v6204_v49  ;;  %v6988_v49 = vsel %vm407_vm0, %v458_v40, %v459_v9  ;;  %v859_v40 = vadd.f32 %v6709_v59, %v7008_v15  ;;  %v860_v9 = vadd.f32 %v6709_v59, %v7020_v13  ;;  %v6220_v28 = vld [vmem:[#allocation7 + $0x1b0] sm:$0xff]  }
  0xa9   : > { %1849 = vmatmul.mubr.bf16.gmra.mrb[12].mxu1 %v6886_v33  ;;  %v858_v53 = vadd.f32 %v6709_v59, %v6988_v49  ;;  %5280 = vmatprep.subr.bf16.mxu0 %v6213_v20  ;;  %v7035_v35 = vsel %vm407_vm0, %v464_v62, %v466_v24  ;;  %v7051_v62 = vld [vmem:[%s6680_s16 + $0x140] sm:$0xff]  ;;  %v587_v24 = vsel %vm552_vm1, %v584_v58, %v586_v14  ;;  %v7068_v20 = vld [vmem:[%s6680_s16 + $0x148] sm:$0xff]  ;;  %v7076_v14 = vld [vmem:[%s6680_s16 + $0x150] sm:$0xff] }
  0xaa   : > { %1856 = vmatprep.mubr.bf16.mxu1 %v6900_v43  ;;  %891 = vst [vmem:[%s6737_s9 + $0x98] sm:$0xff] %v859_v40  ;;  %v861_v5 = vadd.f32 %v6709_v59, %v7035_v35  ;;  %892 = vst [vmem:[%s6737_s9 + $0xa0] sm:$0xff] %v860_v9  ;;  %v7057_v40 = vsel %vm407_vm0, %v468_v34, %v469_v12  ;;  %v474_v34 = vrot.slane %v7051_v62, 1 }
  0xab   : > { %890 = vst [vmem:[%s6737_s9 + $0x90] sm:$0xff] %v858_v53  ;;  %v6215_v53 = vld [vmem:[#allocation7 + $0x1e0] sm:$0xff]   ;;  %v862_v9 = vadd.f32 %v6709_v59, %v7057_v40  ;;  %v7073_v58 = vsel %vm407_vm0, %v469_v12, %v471_v16  ;;  %v476_v12 = vrot.slane %v7068_v20, 1  ;;  %v478_v16 = vrot.slane %v7076_v14, 1 }
  0xac   : > { %5281 = vmatpush3.bf16.msra.mxu0 %v6214_v37  ;;  %893 = vst [vmem:[%s6737_s9 + $0xa8] sm:$0xff] %v861_v5  ;;  %v473_v37 = vrot.slane %v7039_v27, 1  ;;  %5386 = vmatprep.subr.bf16.mxu1 %v6215_v53  ;;  %v7084_v53 = vld [vmem:[%s6680_s16 + $0x158] sm:$0xff] }
  0xad   : > { %894 = vst [vmem:[%s6737_s9 + $0xb0] sm:$0xff] %v862_v9  ;;  %5387 = vmatpush3.bf16.msra.mxu1 %v6216_v57  ;;  %v6218_v5 = vld [vmem:[#allocation7 + $0x1a8] sm:$0xff]   ;;  %v590_v9 = vsel %vm552_vm1, %v588_v52, %v589_v51  ;;  %v592_v57 = vsel %vm552_vm1, %v589_v51, %v591_v10 }
  0xae   : > { %v7089_v18 = vsel %vm407_vm0, %v473_v37, %v474_v34  ;;  %v7104_v37 = vld [vmem:[%s6680_s16 + $0x168] sm:$0xff]  ;;  %5388 = vmatprep.subr.bf16.mxu1 %v6217_v6  ;;  %v320_v52 = vld [vmem:[%s6680_s16 + $0x178] sm:$0xff]  ;;  %v7134_v6 = vpack.c.bf16 %v592_v57, %v590_v9 }
  0xaf   : > { %1696 = vmatmul.mubr.bf16.gmra.mrb[16].mxu0 %v6829_v2  ;;  %v6219_v2 = vld [vmem:[#allocation7 + $0x1f0] sm:$0xff]   ;;  %v483_v56 = vrot.slane %v7104_v37, 1  ;;  %v628_v0 = vrot.slane %v7104_v37, 2 }
  0xb0   : > { %1703 = vmatprep.mubr.bf16.mxu0 %v6946_v17  ;;  %v7096_v17 = vpack.c.bf16 %v6904_v44, %v6880_v32  ;;  %v623_v32 = vrot.slane %v7076_v14, 2  ;;  %v624_v44 = vrot.slane %v7084_v53, 2 }
  0xb1   : > { %1857 = vmatmul.mubr.bf16.gmra.mrb[16].mxu1 %v6960_v26  ;;  %v7108_v26 = vsel %vm407_vm0, %v474_v34, %v476_v12  ;;  %v7127_v34 = vld [vmem:[#allocation7 + $0x200] sm:$0xff]  }
  0xb2   : > { %1864 = vmatprep.mubr.bf16.mxu1 %v6971_v36  ;;  %8262 = vst [vmem:[#allocation28_spill] sm:$0xff] %v7096_v17  ;;  %v865_v51 = vadd.f32 %v6709_v59, %v7108_v26  ;;  %8263 = vst [vmem:[#allocation29_spill] sm:$0xff] %v7127_v34  ;;  %5389 = vmatpush3.bf16.msra.mxu1 %v6218_v5  ;;  %v625_v9 = vsel %vm552_vm1, %v623_v32, %v624_v44 }
  0xb3   : > { %5390 = vmatprep.subr.bf16.mxu1 %v6219_v2  ;;  %5986 = vmatprep.subr.bf16.mxu0 %v7127_v34 }
  0xb4   : > { %897 = vst [vmem:[%s6737_s9 + $0xc8] sm:$0xff] %v865_v51 }
  0xb6   : > { %5391 = vmatpush3.bf16.msra.mxu1 %v6220_v28 }
  0xb7   : > { %1704 = vmatmul.mubr.bf16.gmra.mrb[20].mxu0 %v6900_v43  ;;  %v7086_v43 = vpack.c.bf16 %v587_v24, %v585_v4  ;;  %v864_v4 = vadd.f32 %v6709_v59, %v7089_v18  ;;  %v479_v24 = vrot.slane %v7084_v53, 1 }
  0xb8   : > { %1711 = vmatprep.mubr.bf16.mxu0 %v7025_v61  ;;  %v863_v61 = vadd.f32 %v6709_v59, %v7073_v58 }
  0xb9   : > { %1865 = vmatmul.mubr.bf16.gmra.mrb[20].mxu1 %v7030_v48  ;;  %8261 = vst [vmem:[#allocation27_spill] sm:$0xff] %v7086_v43  ;;  %v317_v48 = vld [vmem:[%s6680_s16 + $0x160] sm:$0xff]  ;;  %896 = vst [vmem:[%s6737_s9 + $0xc0] sm:$0xff] %v864_v4  ;;  %v7125_v10 = vsel %vm407_vm0, %v478_v16, %v479_v24  ;;  %v596_v4 = vrot.slane %v6896_v41, 2  ;;  %v603_v41 = vrot.slane %v6938_v11, 2 }
  0xba   : > { %1872 = vmatprep.mubr.bf16.mxu1 %v7043_v55  ;;  %895 = vst [vmem:[%s6737_s9 + $0xb8] sm:$0xff] %v863_v61  ;;  %v7113_v61 = vld [vmem:[%s6680_s16 + $0x170] sm:$0xff]  ;;  %v481_v12 = vrot.slane %v317_v48, 1  ;;  %v866_v33 = vadd.f32 %v6709_v59, %v7125_v10  ;;  %v626_v57 = vrot.slane %v317_v48, 2  ;;  %v604_v48 = vrot.slane %v6953_v21, 2 }
  0xbb   : > { %v484_v16 = vrot.slane %v7113_v61, 1  ;;  %v629_v5 = vrot.slane %v7113_v61, 2 }
  0xbc   : > { %v7142_v60 = vsel %vm407_vm0, %v479_v24, %v481_v12  ;;  %898 = vst [vmem:[%s6737_s9 + $0xd0] sm:$0xff] %v866_v33  ;;  %v486_v24 = vrot.slane %v320_v52, 1  ;;  %v7157_v33 = vpack.c.bf16 %v6935_v7, %v6919_v50  ;;  %v627_v32 = vsel %vm552_vm1, %v624_v44, %v626_v57 }
  0xbd   : > { %v867_v2 = vadd.f32 %v6709_v59, %v7142_v60  ;;  %v7153_v51 = vsel %vm407_vm0, %v483_v56, %v484_v16  ;;  %v608_v56 = vrot.slane %v6967_v31, 2  ;;  %v7166_v34 = vpack.c.bf16 %v627_v32, %v625_v9 }
  0xbe   : > { %v868_v12 = vadd.f32 %v6709_v59, %v7153_v51  ;;  %v7169_v50 = vsel %vm407_vm0, %v484_v16, %v486_v24  ;;  %v609_v7 = vrot.slane %v6978_v45, 2  ;;  %v606_v44 = vrot.slane %v6957_v23, 2 }
  0xbf   : > { %1712 = vmatmul.mubr.bf16.gmra.mrb[24].mxu0 %v6971_v36  ;;  %v6221_v36 = vld [vmem:[#allocation7 + $0x1f8] sm:$0xff]   ;;  %899 = vst [vmem:[%s6737_s9 + $0xd8] sm:$0xff] %v867_v2  ;;  %v869_v28 = vadd.f32 %v6709_v59, %v7169_v50  ;;  %v630_v57 = vsel %vm552_vm1, %v628_v0, %v629_v5  ;;  %v613_v9 = vrot.slane %v7001_v3, 2  ;;  %v631_v2 = vrot.slane %v320_v52, 2 }
  0xc0   : > { %1719 = vmatprep.mubr.bf16.mxu0 %v7096_v17  ;;  %v6222_v17 = vld [vmem:[#allocation7 + $0x1b8] sm:$0xff]   ;;  %5392 = vmatprep.subr.bf16.mxu1 %v6221_v36  ;;  %900 = vst [vmem:[%s6737_s9 + $0xe0] sm:$0xff] %v868_v12  ;;  %v8264_v0 = vrot.slane %v6892_v38, 2  ;;  %v8265_v36 = vrot.slane %v6884_v29, 2  ;;  %v7200_v24 = vpack.c.bf16 %v6975_v39, %v6949_v19  ;;  %v7206_v32 = vpack.c.bf16 %v6953_v21, %v6938_v11 }
  0xc1   : > { %1873 = vmatmul.mubr.bf16.gmra.mrb[24].mxu1 %v7086_v43  ;;  %v601_v43 = vrot.slane %v6929_v1, 2  ;;  %v7179_v1 = vpack.c.bf16 %v6911_v47, %v6908_v46  ;;  %901 = vst [vmem:[%s6737_s9 + $0xe8] sm:$0xff] %v869_v28  ;;  %v632_v23 = vsel %vm552_vm1, %v629_v5, %v631_v2  ;;  %v614_v29 = vrot.slane %v7012_v54, 2 }
  0xc2   : > { %1880 = vmatprep.mubr.bf16.mxu1 %v7118_v30  ;;  %5393 = vmatpush3.bf16.msra.mxu1 %v6222_v17  ;;  %v7187_v59 = vpack.c.bf16 %v632_v23, %v630_v57  ;;  %v595_v52 = vsel %vm552_vm1, %v8265_v36, %v8264_v0  ;;  %v8266_v16 = vmov %v8264_v0  ;;  %v611_v12 = vrot.slane %v6981_v42, 2 }
  0xc3   : > { %v597_v17 = vsel %vm552_vm1, %v8266_v16, %v596_v4  ;;  %v8267_v38 = vrot.slane %v6911_v47, 2  ;;  %v8268_v19 = vrot.slane %v6908_v46, 2  ;;  %v7224_v4 = vpack.c.bf16 %v7008_v15, %v6988_v49 }
  0xc4   : > { %v7202_v5 = vpack.c.bf16 %v597_v17, %v595_v52  ;;  %v7230_v28 = vpack.c.bf16 %v6978_v45, %v6967_v31  ;;  %v607_v46 = vsel %vm552_vm1, %v604_v48, %v606_v44  ;;  %v7240_v47 = vpack.c.bf16 %v7035_v35, %v7020_v13 }
  0xc5   : > { %v600_v39 = vsel %vm552_vm1, %v8268_v19, %v8267_v38  ;;  %v8269_v11 = vmov %v8267_v38  ;;  %v7246_v31 = vpack.c.bf16 %v7012_v54, %v7001_v3  ;;  %v618_v45 = vrot.slane %v7039_v27, 2  ;;  %v6224_v19 = vld [vmem:[#allocation7 + $0x208] sm:$0xff]  }
  0xc6   : > { %v602_v21 = vsel %vm552_vm1, %v8269_v11, %v601_v43  ;;  %v605_v43 = vsel %vm552_vm1, %v603_v41, %v604_v48  ;;  %v619_v15 = vrot.slane %v7051_v62, 2  ;;  %v610_v13 = vsel %vm552_vm1, %v608_v56, %v609_v7  ;;  %v8271_v11 = vld [vmem:[#allocation17_spill] sm:$0xff] }
  0xc7   : > { %1720 = vmatmul.mubr.bf16.gmra.mrb[28].mxu0 %v7043_v55  ;;  %v7226_v42 = vpack.c.bf16 %v602_v21, %v600_v39  ;;  %v7242_v49 = vpack.c.bf16 %v607_v46, %v605_v43  ;;  %v612_v35 = vsel %vm552_vm1, %v609_v7, %v611_v12  ;;  %v616_v41 = vrot.slane %v7015_v63, 2  ;;  %v322_v7 = vld [vmem:[%s6680_s16 + $0x188] sm:$0xff]  ;;  %v8272_v21 = vld [vmem:[#allocation14_spill] sm:$0xff]  ;;  %v6225_v43 = vld [vmem:[#allocation7 + $0x210] sm:$0xff]  }
  0xc8   : > { %1727 = vmatprep.mubr.bf16.mxu0 %v7157_v33  ;;  %v621_v3 = vrot.slane %v7068_v20, 2  ;;  %v7260_v54 = vpack.c.bf16 %v7073_v58, %v7057_v40  ;;  %v7262_v48 = vpack.c.bf16 %v612_v35, %v610_v13  ;;  %v7266_v44 = vpack.c.bf16 %v7051_v62, %v7039_v27  ;;  %v8270_v39 = vld [vmem:[#allocation29_spill] sm:$0xff]  ;;  %v8273_v46 = vld [vmem:[#allocation16_spill] sm:$0xff]  ;;  %v8276_v13 = vld [vmem:[#allocation19_spill] sm:$0xff] }
  0xc9   : > { %1881 = vmatmul.mubr.bf16.gmra.mrb[28].mxu1 %v7134_v6  ;;  %v615_v63 = vsel %vm552_vm1, %v613_v9, %v614_v29  ;;  %v617_v20 = vsel %vm552_vm1, %v614_v29, %v616_v41  ;;  %v7276_v40 = vpack.c.bf16 %v7108_v26, %v7089_v18  ;;  %v7282_v62 = vpack.c.bf16 %v7084_v53, %v7076_v14  ;;  %v321_v53 = vld [vmem:[%s6680_s16 + $0x180] sm:$0xff]  ;;  %v6228_v35 = vld [vmem:[#allocation7 + $0x228] sm:$0xff]  }
  0xca   : > { %1888 = vmatprep.mubr.bf16.mxu1 %v7179_v1  ;;  %v7278_v27 = vpack.c.bf16 %v617_v20, %v615_v63  ;;  %v620_v58 = vsel %vm552_vm1, %v618_v45, %v619_v15  ;;  %v622_v26 = vsel %vm552_vm1, %v619_v15, %v621_v3  ;;  %v7292_v18 = vpack.c.bf16 %v7142_v60, %v7125_v10  ;;  %v323_v60 = vld [vmem:[%s6680_s16 + $0x190] sm:$0xff]  ;;  %v8275_v15 = vld [vmem:[#allocation15_spill] sm:$0xff]  ;;  %v6230_v20 = vld [vmem:[#allocation7 + $0x238] sm:$0xff]  }
  0xcb   : > { %v7294_v56 = vpack.c.bf16 %v622_v26, %v620_v58  ;;  %v7298_v14 = vpack.c.bf16 %v7113_v61, %v7104_v37  ;;  %v717_v57 = vrot.slane %v321_v53, 1  ;;  %v718_v9 = vrot.slane %v322_v7, 1  ;;  %v8274_v45 = vld [vmem:[#allocation20_spill] sm:$0xff]  ;;  %v8277_v41 = vld [vmem:[#allocation23_spill] sm:$0xff]  ;;  %v8278_v3 = vld [vmem:[#allocation18_spill] sm:$0xff] }
  0xcc   : > { %v720_v10 = vrot.slane %v323_v60, 1  ;;  %v7309_v2 = vpack.c.bf16 %v7169_v50, %v7153_v51  ;;  %v7313_v23 = vpack.c.bf16 %v322_v7, %v321_v53  ;;  %v741_v36 = vrot.slane %v321_v53, 2  ;;  %v6303_v51 = vld [vmem:[%s8207_s4] ss:$0 sm:$0xff]  ;;  %v8279_v63 = vld [vmem:[#allocation22_spill] sm:$0xff]  ;;  %v8281_v26 = vld [vmem:[#allocation21_spill] sm:$0xff] }
  0xcd   : > { %v719_v37 = vsel %vm407_vm0, %v717_v57, %v718_v9  ;;  %v742_v52 = vrot.slane %v322_v7, 2  ;;  %v744_v17 = vrot.slane %v323_v60, 2  ;;  %v8280_v58 = vld [vmem:[#allocation26_spill] sm:$0xff]  ;;  %v8282_v53 = vld [vmem:[#allocation25_spill] sm:$0xff]  ;;  %v8283_v7 = vld [vmem:[#allocation27_spill] sm:$0xff] }
  0xce   : > { %v721_v61 = vsel %vm407_vm0, %v718_v9, %v720_v10  ;;  %v870_v50 = vadd.f32 %v6303_v51, %v719_v37  ;;  %v8284_v57 = vld [vmem:[#allocation24_spill] sm:$0xff]  ;;  %v7363_v60 = vld [vmem:[%s6680_s16 + $0x198] sm:$0xff] }
  0xcf   : > { %1728 = vmatmul.mubr.bf16.gmra.mrb[32].mxu0 %v7118_v30  ;;  %v7315_v0 = vpack.c.bf16 %v721_v61, %v719_v37  ;;  %v871_v16 = vadd.f32 %v6303_v51, %v721_v61  ;;  %v743_v29 = vsel %vm552_vm1, %v741_v36, %v742_v52  ;;  %v745_v12 = vsel %vm552_vm1, %v742_v52, %v744_v17  ;;  %v8285_v9 = vld [vmem:[#allocation28_spill] sm:$0xff]  ;;  %v7369_v37 = vld [vmem:[%s6680_s16 + $0x1a8] sm:$0xff] }
  0xd0   : > { %1735 = vmatprep.mubr.bf16.mxu0 %v7200_v24  ;;  %902 = vst [vmem:[%s6737_s9 + $0xf0] sm:$0xff] %v870_v50  ;;  %v7328_v38 = vpack.c.bf16 %v745_v12, %v743_v29  ;;  %v7366_v10 = vld [vmem:[%s6680_s16 + $0x1a0] sm:$0xff]  ;;  %v809_v61 = vrot.slane %v7363_v60, 2  ;;  %v812_v36 = vrot.slane %v7369_v37, 2  ;;  %s6471_s16 = smov [#allocation10]  }
  0xd1   : > { %1889 = vmatmul.mubr.bf16.gmra.mrb[32].mxu1 %v7202_v5  ;;  %903 = vst [vmem:[%s6737_s9 + $0xf8] sm:$0xff] %v871_v16  ;;  %s6395_s24 = sshll.u32 %s6471_s16, 4  ;;  %s6396_s24 = int_to_ptr.vmem [resolvable:$false] %s6395_s24 }
  0xd2   : > { %1896 = vmatprep.mubr.bf16.mxu1 %v7206_v32  ;;  %s6397_s26 = scalar_lea.vmem %s6396_s24, 8192  ;;  %p6398_p7 = scmp.lt.s32.totalorder %s8156_s10, %s6396_s24 }
  0xd3   : > { %p6399_p9 = scmp.lt.s32.totalorder %s6397_s26, %s6391_s6 }
  0xd5   : > { %p6400_p12 = por %p6399_p9, %p6398_p7 }
  0xd7   : > { %1736 = vmatmul.mubr.bf16.gmra.mrb[36].mxu0 %v7179_v1  ;;  %p6401_p2 = pnand %p6400_p12, %p6394_p3 }
  0xd8   : > { %1743 = vmatprep.mubr.bf16.mxu0 %v7224_v4 }
  0xd9   : > { %1897 = vmatmul.mubr.bf16.gmra.mrb[36].mxu1 %v7226_v42 }
  0xda   : > { %1904 = vmatprep.mubr.bf16.mxu1 %v7230_v28 }
  0xdf   : > { %1744 = vmatmul.mubr.bf16.gmra.mrb[40].mxu0 %v7206_v32 }
  0xe0   : > { %1751 = vmatprep.mubr.bf16.mxu0 %v7240_v47 }
  0xe1   : > { %1905 = vmatmul.mubr.bf16.gmra.mrb[40].mxu1 %v7242_v49 }
  0xe2   : > { %1912 = vmatprep.mubr.bf16.mxu1 %v7246_v31 }
  0xe7   : > { %1752 = vmatmul.mubr.bf16.gmra.mrb[44].mxu0 %v7230_v28 }
  0xe8   : > { %1759 = vmatprep.mubr.bf16.mxu0 %v7260_v54 }
  0xe9   : > { %1913 = vmatmul.mubr.bf16.gmra.mrb[44].mxu1 %v7262_v48 }
  0xea   : > { %1920 = vmatprep.mubr.bf16.mxu1 %v7266_v44 }
  0xef   : > { %1760 = vmatmul.mubr.bf16.gmra.mrb[48].mxu0 %v7246_v31 }
  0xf0   : > { %1767 = vmatprep.mubr.bf16.mxu0 %v7276_v40 }
  0xf1   : > { %1921 = vmatmul.mubr.bf16.gmra.mrb[48].mxu1 %v7278_v27 }
  0xf2   : > { %1928 = vmatprep.mubr.bf16.mxu1 %v7282_v62 }
  0xf7   : > { %1768 = vmatmul.mubr.bf16.gmra.mrb[52].mxu0 %v7266_v44 }
  0xf8   : > { %1775 = vmatprep.mubr.bf16.mxu0 %v7292_v18 }
  0xf9   : > { %1929 = vmatmul.mubr.bf16.gmra.mrb[52].mxu1 %v7294_v56 }
  0xfa   : > { %1936 = vmatprep.mubr.bf16.mxu1 %v7298_v14 }
  0xff   : > { %1776 = vmatmul.mubr.bf16.gmra.mrb[56].mxu0 %v7282_v62 }
 0x100   : > { %1783 = vmatprep.mubr.bf16.mxu0 %v7309_v2 }
 0x101   : > { %1937 = vmatmul.mubr.bf16.gmra.mrb[56].mxu1 %v7166_v34 }
 0x102   : > { %1944 = vmatprep.mubr.bf16.mxu1 %v7313_v23 }
 0x107   : > { %1784 = vmatmul.mubr.bf16.gmra.mrb[60].mxu0 %v7298_v14 }
 0x108   : > { %1985 = vmatprep.mubr.bf16.mxu0 %v6756_v22  ;;  %v6226_v22 = vld [vmem:[#allocation7 + $0x218] sm:$0xff]  }
 0x109   : > { %1945 = vmatmul.mubr.bf16.gmra.mrb[60].mxu1 %v7187_v59 }
 0x10a   : > { %2146 = vmatprep.mubr.bf16.mxu1 %v6760_v25 }
 0x10f   : > { %1986 = vmatmul.mubr.bf16.vlgmr.msra.gmra.mrb[64].mxu0 %v6731_v8  ;;  %v6227_v8 = vld [vmem:[#allocation7 + $0x220] sm:$0xff]  }
 0x110   : > { %5987 = vmatpush3.bf16.msra.mxu0 %v8270_v39  ;;  %1993 = vmatprep.mubr.bf16.mxu0 %v8271_v11 }
 0x111   : > { %2147 = vmatmul.mubr.bf16.vlgmr.msra.gmra.mrb[64].mxu1 %v8272_v21  ;;  %5988 = vmatprep.subr.bf16.mxu0 %v6224_v19 }
 0x112   : > { %2154 = vmatprep.mubr.bf16.mxu1 %v8273_v46 }
 0x114   : > { %5989 = vmatpush3.bf16.msra.mxu0 %v6224_v19 }
 0x115   : > { %5990 = vmatprep.subr.bf16.mxu0 %v6225_v43 }
 0x117   : > { %1994 = vmatmul.mubr.bf16.gmra.mrb[68].mxu0 %v6760_v25  ;;  %v6229_v25 = vld [vmem:[#allocation7 + $0x230] sm:$0xff]  }
 0x118   : > { %2001 = vmatprep.mubr.bf16.mxu0 %v8274_v45  ;;  %5991 = vmatpush3.bf16.msra.mxu0 %v6225_v43 }
 0x119   : > { %2155 = vmatmul.mubr.bf16.gmra.mrb[68].mxu1 %v8275_v15  ;;  %5992 = vmatprep.subr.bf16.mxu0 %v6226_v22 }
 0x11a   : > { %2162 = vmatprep.mubr.bf16.mxu1 %v8276_v13 }
 0x11c   : > { %5993 = vmatpush3.bf16.msra.mxu0 %v6226_v22 }
 0x11d   : > { %5994 = vmatprep.subr.bf16.mxu0 %v6227_v8 }
 0x11f   : > { %2002 = vmatmul.mubr.bf16.gmra.mrb[72].mxu0 %v8273_v46 }
 0x120   : > { %2009 = vmatprep.mubr.bf16.mxu0 %v8277_v41  ;;  %5995 = vmatpush3.bf16.msra.mxu0 %v6227_v8 }
 0x121   : > { %2163 = vmatmul.mubr.bf16.gmra.mrb[72].mxu1 %v8278_v3  ;;  %5996 = vmatprep.subr.bf16.mxu0 %v6228_v35 }
 0x122   : > { %2170 = vmatprep.mubr.bf16.mxu1 %v8279_v63 }
 0x124   : > { %5997 = vmatpush3.bf16.msra.mxu0 %v6228_v35 }
 0x125   : > { %5998 = vmatprep.subr.bf16.mxu0 %v6229_v25 }
 0x127   : > { %2010 = vmatmul.mubr.bf16.gmra.mrb[76].mxu0 %v8276_v13 }
 0x128   : > { %2017 = vmatprep.mubr.bf16.mxu0 %v8280_v58  ;;  %5999 = vmatpush3.bf16.msra.mxu0 %v6229_v25 }
 0x129   : > { %2171 = vmatmul.mubr.bf16.gmra.mrb[76].mxu1 %v8281_v26  ;;  %6000 = vmatprep.subr.bf16.mxu0 %v6230_v20 }
 0x12a   : > { %2178 = vmatprep.mubr.bf16.mxu1 %v8282_v53 }
 0x12c   : > { %6001 = vmatpush3.bf16.msra.mxu0 %v6230_v20 }
 0x12f   : > { %2018 = vmatmul.mubr.bf16.gmra.mrb[80].mxu0 %v8279_v63 }
 0x130   : > { %2025 = vmatprep.mubr.bf16.mxu0 %v8283_v7 }
 0x131   : > { %2179 = vmatmul.mubr.bf16.gmra.mrb[80].mxu1 %v8284_v57 }
 0x132   : > { %2186 = vmatprep.mubr.bf16.mxu1 %v8285_v9 }
 0x137   : > { %2026 = vmatmul.mubr.bf16.gmra.mrb[84].mxu0 %v8282_v53 }
 0x138   : > { %2033 = vmatprep.mubr.bf16.mxu0 %v7134_v6 }
 0x139   : > { %2187 = vmatmul.mubr.bf16.gmra.mrb[84].mxu1 %v7043_v55  ;;  %v810_v55 = vrot.slane %v7366_v10, 2 }
 0x13a   : > { %2194 = vmatprep.mubr.bf16.mxu1 %v7157_v33 }
 0x13b   : > { %v7376_v52 = vsel %vm552_vm1, %v809_v61, %v810_v55  ;;  %v7379_v51 = vsel %vm552_vm1, %v810_v55, %v812_v36  ;;  %v6232_v61 = vld [vmem:[#allocation9] sm:$0xff]  }
 0x13f   : > { %2034 = vmatmul.mubr.bf16.gmra.mrb[88].mxu0 %v8285_v9  ;;  %v6231_v9 = vld [vmem:[#allocation9 + $0x40] sm:$0xff]  }
 0x140   : > { %2041 = vmatprep.mubr.bf16.mxu0 %v7202_v5  ;;  %5514 = vmatprep.subr.bf16.mxu1 %v6231_v9 }
 0x141   : > { %2195 = vmatmul.mubr.bf16.gmra.mrb[88].mxu1 %v7118_v30  ;;  %v816_v30 = vpack.c.bf16 %v7379_v51, %v7376_v52 }
 0x142   : > { %2202 = vmatprep.mubr.bf16.mxu1 %v7200_v24  ;;  %5515 = vmatpush3.bf16.msra.mxu1 %v6232_v61 }
 0x147   : > { %2042 = vmatmul.mubr.bf16.gmra.mrb[92].mxu0 %v7157_v33 }
 0x148   : > { %2049 = vmatprep.mubr.bf16.mxu0 %v7226_v42 }
 0x149   : > { %2203 = vmatmul.mubr.bf16.gmra.mrb[92].mxu1 %v7179_v1  ;;  %v7402_v1 = vld [vmem:[%s8206_s3] ss:$0 sm:$0xff] }
 0x14a   : > { %2210 = vmatprep.mubr.bf16.mxu1 %v7224_v4 }
 0x14f   : > { %2050 = vmatmul.mubr.bf16.gmra.mrb[96].mxu0 %v7200_v24 }
 0x150   : > { %2057 = vmatprep.mubr.bf16.mxu0 %v7242_v49 }
 0x151   : > { %2211 = vmatmul.mubr.bf16.gmra.mrb[96].mxu1 %v7206_v32 }
 0x152   : > { %2218 = vmatprep.mubr.bf16.mxu1 %v7240_v47 }
 0x157   : > { %2058 = vmatmul.mubr.bf16.gmra.mrb[100].mxu0 %v7224_v4 }
 0x158   : > { %2065 = vmatprep.mubr.bf16.mxu0 %v7262_v48 }
 0x159   : > { %2219 = vmatmul.mubr.bf16.gmra.mrb[100].mxu1 %v7230_v28 }
 0x15a   : > { %2226 = vmatprep.mubr.bf16.mxu1 %v7260_v54 }
 0x15f   : > { %2066 = vmatmul.mubr.bf16.gmra.mrb[104].mxu0 %v7240_v47 }
 0x160   : > { %2073 = vmatprep.mubr.bf16.mxu0 %v7278_v27 }
 0x161   : > { %2227 = vmatmul.mubr.bf16.gmra.mrb[104].mxu1 %v7246_v31 }
 0x162   : > { %v5058_v33 = vpop.f32.mrb[0].mxu0  ;;  %2234 = vmatprep.mubr.bf16.mxu1 %v7276_v40 }
 0x163   : > { %v5059_v24 = vpop.f32.mrb[1].mxu0 }
 0x164   : > { %v5060_v32 = vadd.f32 %v5059_v24, %v5058_v33  ;;  %v5061_v4 = vpop.f32.mrb[2].mxu0  ;;  %v5170_v28 = vpop.f32.mrb[0].mxu1 }
 0x165   : > { %v5062_v50 = vpop.f32.mrb[3].mxu0  ;;  %v5171_v16 = vpop.f32.mrb[1].mxu1 }
 0x166   : > { %v1666_v47 = vadd.f32 %v5060_v32, %v7402_v1  ;;  %v5063_v17 = vadd.f32 %v5062_v50, %v5061_v4  ;;  %v5172_v29 = vadd.f32 %v5171_v16, %v5170_v28  ;;  %v5173_v12 = vpop.f32.mrb[2].mxu1 }
 0x167   : > { %v5174_v31 = vpop.f32.mrb[3].mxu1  ;;  %2074 = vmatmul.mubr.bf16.gmra.mrb[108].mxu0 %v7260_v54 }
 0x168   : > { %v1669_v19 = vadd.f32 %v5063_v17, %v7402_v1  ;;  %v5175_v39 = vadd.f32 %v5174_v31, %v5173_v12  ;;  %2081 = vmatprep.mubr.bf16.mxu0 %v7294_v56  ;;  %v7408_v21 = vadd.f32 %v5172_v29, %v1666_v47  ;;  %v786_v12 = vrot.slane %v7366_v10, 1 }
 0x169   : > { %2235 = vmatmul.mubr.bf16.gmra.mrb[108].mxu1 %v7266_v44  ;;  %v788_v31 = vrot.slane %v7369_v37, 1 }
 0x16a   : > { %v5064_v43 = vpop.f32.mrb[4].mxu0  ;;  %2242 = vmatprep.mubr.bf16.mxu1 %v7292_v18  ;;  %v7412_v46 = vadd.f32 %v5175_v39, %v1669_v19 }
 0x16b   : > { %v5065_v22 = vpop.f32.mrb[5].mxu0 }
 0x16c   : > { %v5066_v15 = vadd.f32 %v5065_v22, %v5064_v43  ;;  %v5067_v8 = vpop.f32.mrb[6].mxu0  ;;  %v5176_v13 = vpop.f32.mrb[4].mxu1 }
 0x16d   : > { %v5068_v35 = vpop.f32.mrb[7].mxu0  ;;  %v5177_v54 = vpop.f32.mrb[5].mxu1 }
 0x16e   : > { %v1674_v3 = vadd.f32 %v5066_v15, %v7402_v1  ;;  %v5069_v25 = vadd.f32 %v5068_v35, %v5067_v8  ;;  %v5178_v63 = vadd.f32 %v5177_v54, %v5176_v13  ;;  %v5179_v20 = vpop.f32.mrb[6].mxu1  ;;  %v789_v13 = vsel %vm407_vm0, %v786_v12, %v788_v31 }
 0x16f   : > { %v5180_v26 = vpop.f32.mrb[7].mxu1  ;;  %2082 = vmatmul.mubr.bf16.gmra.mrb[112].mxu0 %v7276_v40 }
 0x170   : > { %v1677_v44 = vadd.f32 %v5069_v25, %v7402_v1  ;;  %v5181_v53 = vadd.f32 %v5180_v26, %v5179_v20  ;;  %2089 = vmatprep.mubr.bf16.mxu0 %v7166_v34  ;;  %v7418_v57 = vadd.f32 %v5178_v63, %v1674_v3 }
 0x171   : > { %2243 = vmatmul.mubr.bf16.gmra.mrb[112].mxu1 %v7282_v62  ;;  %v785_v62 = vrot.slane %v7363_v60, 1 }
 0x172   : > { %v5070_v55 = vpop.f32.mrb[8].mxu0  ;;  %2250 = vmatprep.mubr.bf16.mxu1 %v7309_v2  ;;  %v7422_v36 = vadd.f32 %v5181_v53, %v1677_v44 }
 0x173   : > { %v5071_v33 = vpop.f32.mrb[9].mxu0  ;;  %v787_v8 = vsel %vm407_vm0, %v785_v62, %v786_v12 }
 0x174   : > { %v5072_v40 = vadd.f32 %v5071_v33, %v5070_v55  ;;  %v5073_v24 = vpop.f32.mrb[10].mxu0  ;;  %v5182_v32 = vpop.f32.mrb[8].mxu1  ;;  %v792_v44 = vpack.c.bf16 %v789_v13, %v787_v8  ;;  %v6233_v33 = vld [vmem:[#allocation9 + $0x48] sm:$0xff]  }
 0x175   : > { %v5074_v4 = vpop.f32.mrb[11].mxu0  ;;  %v5183_v28 = vpop.f32.mrb[9].mxu1  ;;  %5516 = vmatprep.subr.bf16.mxu1 %v6233_v33 }
 0x176   : > { %v1682_v50 = vadd.f32 %v5072_v40, %v7402_v1  ;;  %v5075_v16 = vadd.f32 %v5074_v4, %v5073_v24  ;;  %v5184_v47 = vadd.f32 %v5183_v28, %v5182_v32  ;;  %v5185_v17 = vpop.f32.mrb[10].mxu1  ;;  %v6234_v40 = vld [vmem:[#allocation9 + $0x8] sm:$0xff]  }
 0x177   : > { %v5186_v29 = vpop.f32.mrb[11].mxu1  ;;  %2090 = vmatmul.mubr.bf16.gmra.mrb[116].mxu0 %v7292_v18  ;;  %5517 = vmatpush3.bf16.msra.mxu1 %v6234_v40 }
 0x178   : > { %v1685_v19 = vadd.f32 %v5075_v16, %v7402_v1  ;;  %v5187_v39 = vadd.f32 %v5186_v29, %v5185_v17  ;;  %2097 = vmatprep.mubr.bf16.mxu0 %v7187_v59  ;;  %v7431_v43 = vadd.f32 %v5184_v47, %v1682_v50  ;;  %v765_v17 = vpack.c.bf16 %v7366_v10, %v7363_v60 }
 0x179   : > { %2251 = vmatmul.mubr.bf16.gmra.mrb[116].mxu1 %v7298_v14 }
 0x17a   : > { %v5076_v22 = vpop.f32.mrb[12].mxu0  ;;  %2258 = vmatprep.mubr.bf16.mxu1 %v7315_v0  ;;  %v7435_v15 = vadd.f32 %v5187_v39, %v1685_v19 }
 0x17b   : > { %v5077_v18 = vpop.f32.mrb[13].mxu0 }
 0x17c   : > { %v5078_v37 = vadd.f32 %v5077_v18, %v5076_v22  ;;  %v5079_v35 = vpop.f32.mrb[14].mxu0  ;;  %v5188_v54 = vpop.f32.mrb[12].mxu1 }
 0x17d   : > { %v5080_v3 = vpop.f32.mrb[15].mxu0  ;;  %v5189_v25 = vpop.f32.mrb[13].mxu1 }
 0x17e   : > { %v1690_v63 = vadd.f32 %v5078_v37, %v7402_v1  ;;  %v5081_v20 = vadd.f32 %v5080_v3, %v5079_v35  ;;  %v5190_v26 = vadd.f32 %v5189_v25, %v5188_v54  ;;  %v5191_v14 = vpop.f32.mrb[14].mxu1 }
 0x17f   : > { %v5192_v53 = vpop.f32.mrb[15].mxu1  ;;  %2098 = vmatmul.mubr.bf16.gmra.mrb[120].mxu0 %v7309_v2 }
 0x180   : > { %v1693_v9 = vadd.f32 %v5081_v20, %v7402_v1  ;;  %v5193_v61 = vadd.f32 %v5192_v53, %v5191_v14  ;;  %2105 = vmatprep.mubr.bf16.mxu0 %v7328_v38  ;;  %v7443_v55 = vadd.f32 %v5190_v26, %v1690_v63  ;;  %v6236_v53 = vld [vmem:[#allocation9 + $0x10] sm:$0xff]  }
 0x181   : > { %2259 = vmatmul.mubr.bf16.gmra.mrb[120].mxu1 %v7313_v23 }
 0x182   : > { %v5082_v24 = vpop.f32.mrb[16].mxu0  ;;  %2266 = vmatprep.mubr.bf16.mxu1 %v792_v44  ;;  %v7446_v32 = vadd.f32 %v5193_v61, %v1693_v9  ;;  %v6235_v44 = vld [vmem:[#allocation9 + $0x50] sm:$0xff]  }
 0x183   : > { %v5083_v4 = vpop.f32.mrb[17].mxu0  ;;  %5518 = vmatprep.subr.bf16.mxu1 %v6235_v44 }
 0x184   : > { %v5084_v28 = vadd.f32 %v5083_v4, %v5082_v24  ;;  %v5085_v2 = vpop.f32.mrb[18].mxu0  ;;  %v5194_v50 = vpop.f32.mrb[16].mxu1  ;;  %5519 = vmatpush3.bf16.msra.mxu1 %v6236_v53 }
 0x185   : > { %v5086_v16 = vpop.f32.mrb[19].mxu0  ;;  %v5195_v47 = vpop.f32.mrb[17].mxu1 }
 0x186   : > { %v1698_v29 = vadd.f32 %v5084_v28, %v7402_v1  ;;  %v5087_v62 = vadd.f32 %v5086_v16, %v5085_v2  ;;  %v5196_v12 = vadd.f32 %v5195_v47, %v5194_v50  ;;  %v5197_v23 = vpop.f32.mrb[18].mxu1 }
 0x187   : > { %v5198_v31 = vpop.f32.mrb[19].mxu1  ;;  %2106 = vmatmul.mubr.bf16.gmra.mrb[124].mxu0 %v7315_v0 }
 0x188   : > { %v1701_v19 = vadd.f32 %v5087_v62, %v7402_v1  ;;  %v5199_v39 = vadd.f32 %v5198_v31, %v5197_v23  ;;  %6002 = vmatprep.mubr.bf16.mxu0 %v8271_v11  ;;  %v7454_v22 = vadd.f32 %v5196_v12, %v1698_v29 }
 0x189   : > { %2267 = vmatmul.mubr.bf16.gmra.mrb[124].mxu1 %v765_v17 }
 0x18a   : > { %v5088_v18 = vpop.f32.mrb[20].mxu0  ;;  %v7456_v8 = vadd.f32 %v5199_v39, %v1701_v19 }
 0x18b   : > { %v5089_v60 = vpop.f32.mrb[21].mxu0 }
 0x18c   : > { %v5090_v10 = vadd.f32 %v5089_v60, %v5088_v18  ;;  %v5091_v13 = vpop.f32.mrb[22].mxu0  ;;  %v5200_v37 = vpop.f32.mrb[20].mxu1 }
 0x18d   : > { %v5092_v35 = vpop.f32.mrb[23].mxu0  ;;  %v5201_v54 = vpop.f32.mrb[21].mxu1 }
 0x18e   : > { %v1706_v3 = vadd.f32 %v5090_v10, %v7402_v1  ;;  %v5093_v0 = vadd.f32 %v5092_v35, %v5091_v13  ;;  %v5202_v25 = vadd.f32 %v5201_v54, %v5200_v37  ;;  %v5203_v63 = vpop.f32.mrb[22].mxu1 }
 0x18f   : > { %v5204_v20 = vpop.f32.mrb[23].mxu1  ;;  %6003 = vmatmul.mubr.bf16.vlgmr.msra.gmra.mrb[128].mxu0 %v8274_v45 }
 0x190   : > { %v1709_v11 = vadd.f32 %v5093_v0, %v7402_v1  ;;  %v5205_v26 = vadd.f32 %v5204_v20, %v5203_v63  ;;  %6006 = vmatprep.mubr.bf16.mxu0 %v8277_v41  ;;  %v7462_v14 = vadd.f32 %v5202_v25, %v1706_v3  ;;  %v6237_v25 = vld [vmem:[#allocation9 + $0x58] sm:$0xff]  }
 0x191   : > { %v6238_v63 = vld [vmem:[#allocation9 + $0x18] sm:$0xff]   ;;  %5520 = vmatprep.subr.bf16.mxu1 %v6237_v25 }
 0x192   : > { %v5094_v9 = vpop.f32.mrb[24].mxu0  ;;  %v7464_v61 = vadd.f32 %v5205_v26, %v1709_v11  ;;  %5521 = vmatpush3.bf16.msra.mxu1 %v6238_v63 }
 0x193   : > { %v5095_v33 = vpop.f32.mrb[25].mxu0 }
 0x194   : > { %v5096_v40 = vadd.f32 %v5095_v33, %v5094_v9  ;;  %v5097_v24 = vpop.f32.mrb[26].mxu0  ;;  %v5206_v4 = vpop.f32.mrb[24].mxu1 }
 0x195   : > { %v5098_v28 = vpop.f32.mrb[27].mxu0  ;;  %v5207_v45 = vpop.f32.mrb[25].mxu1 }
 0x196   : > { %v1714_v2 = vadd.f32 %v5096_v40, %v7402_v1  ;;  %v5099_v50 = vadd.f32 %v5098_v28, %v5097_v24  ;;  %v5208_v16 = vadd.f32 %v5207_v45, %v5206_v4  ;;  %v5209_v41 = vpop.f32.mrb[26].mxu1 }
 0x197   : > { %v5210_v47 = vpop.f32.mrb[27].mxu1  ;;  %6007 = vmatmul.mubr.bf16.gmra.mrb[132].mxu0 %v8280_v58 }
 0x198   : > { %v1717_v17 = vadd.f32 %v5099_v50, %v7402_v1  ;;  %v5211_v29 = vadd.f32 %v5210_v47, %v5209_v41  ;;  %6010 = vmatprep.mubr.bf16.mxu0 %v8283_v7  ;;  %v7470_v62 = vadd.f32 %v5208_v16, %v1714_v2 }
 0x19a   : > { %v5100_v12 = vpop.f32.mrb[28].mxu0  ;;  %v7472_v23 = vadd.f32 %v5211_v29, %v1717_v17 }
 0x19b   : > { %v5101_v31 = vpop.f32.mrb[29].mxu0 }
 0x19c   : > { %v5102_v19 = vadd.f32 %v5101_v31, %v5100_v12  ;;  %v5103_v39 = vpop.f32.mrb[30].mxu0  ;;  %v5212_v18 = vpop.f32.mrb[28].mxu1 }
 0x19d   : > { %v5104_v60 = vpop.f32.mrb[31].mxu0  ;;  %v5213_v10 = vpop.f32.mrb[29].mxu1 }
 0x19e   : > { %v1722_v13 = vadd.f32 %v5102_v19, %v7402_v1  ;;  %v5105_v37 = vadd.f32 %v5104_v60, %v5103_v39  ;;  %v5214_v58 = vadd.f32 %v5213_v10, %v5212_v18  ;;  %v5215_v35 = vpop.f32.mrb[30].mxu1 }
 0x19f   : > { %v5216_v54 = vpop.f32.mrb[31].mxu1  ;;  %6011 = vmatmul.mubr.bf16.gmra.mrb[136].mxu0 %v7134_v6 }
 0x1a0   : > { %v1725_v7 = vadd.f32 %v5105_v37, %v7402_v1  ;;  %v5217_v3 = vadd.f32 %v5216_v54, %v5215_v35  ;;  %6014 = vmatprep.mubr.bf16.mxu0 %v7202_v5  ;;  %v7478_v0 = vadd.f32 %v5214_v58, %v1722_v13  ;;  %v6239_v58 = vld [vmem:[#allocation9 + $0x60] sm:$0xff]  }
 0x1a1   : > { %v6240_v35 = vld [vmem:[#allocation9 + $0x20] sm:$0xff]   ;;  %5522 = vmatprep.subr.bf16.mxu1 %v6239_v58 }
 0x1a2   : > { %v5106_v20 = vpop.f32.mrb[32].mxu0  ;;  %v7480_v11 = vadd.f32 %v5217_v3, %v1725_v7  ;;  %5523 = vmatpush3.bf16.msra.mxu1 %v6240_v35 }
 0x1a3   : > { %v5107_v26 = vpop.f32.mrb[33].mxu0 }
 0x1a4   : > { %v5108_v44 = vadd.f32 %v5107_v26, %v5106_v20  ;;  %v5109_v53 = vpop.f32.mrb[34].mxu0  ;;  %v5218_v9 = vpop.f32.mrb[32].mxu1 }
 0x1a5   : > { %v5110_v33 = vpop.f32.mrb[35].mxu0  ;;  %v5219_v6 = vpop.f32.mrb[33].mxu1 }
 0x1a6   : > { %v1730_v40 = vadd.f32 %v5108_v44, %v7402_v1  ;;  %v5111_v24 = vadd.f32 %v5110_v33, %v5109_v53  ;;  %v5220_v4 = vadd.f32 %v5219_v6, %v5218_v9  ;;  %v5221_v5 = vpop.f32.mrb[34].mxu1 }
 0x1a7   : > { %v5222_v28 = vpop.f32.mrb[35].mxu1  ;;  %6015 = vmatmul.mubr.bf16.gmra.mrb[140].mxu0 %v7226_v42 }
 0x1a8   : > { %v1733_v45 = vadd.f32 %v5111_v24, %v7402_v1  ;;  %v7485_v2 = vadd.f32 %v5220_v4, %v1730_v40  ;;  %v5223_v50 = vadd.f32 %v5222_v28, %v5221_v5  ;;  %6018 = vmatprep.mubr.bf16.mxu0 %v7242_v49 }
 0x1aa   : > { %v7488_v16 = vadd.f32 %v5223_v50, %v1733_v45  ;;  %v5112_v41 = vpop.f32.mrb[36].mxu0 }
 0x1ab   : > { %v5113_v47 = vpop.f32.mrb[37].mxu0 }
 0x1ac   : > { %v5114_v17 = vadd.f32 %v5113_v47, %v5112_v41  ;;  %v5115_v29 = vpop.f32.mrb[38].mxu0  ;;  %v5224_v12 = vpop.f32.mrb[36].mxu1 }
 0x1ad   : > { %v5116_v31 = vpop.f32.mrb[39].mxu0  ;;  %v5225_v19 = vpop.f32.mrb[37].mxu1 }
 0x1ae   : > { %v1738_v39 = vadd.f32 %v5114_v17, %v7402_v1  ;;  %v5117_v18 = vadd.f32 %v5116_v31, %v5115_v29  ;;  %v5226_v42 = vadd.f32 %v5225_v19, %v5224_v12  ;;  %v5227_v60 = vpop.f32.mrb[38].mxu1 }
 0x1af   : > { %v5228_v10 = vpop.f32.mrb[39].mxu1  ;;  %6019 = vmatmul.mubr.bf16.gmra.mrb[144].mxu0 %v7262_v48 }
 0x1b0   : > { %v1741_v13 = vadd.f32 %v5117_v18, %v7402_v1  ;;  %v7493_v49 = vadd.f32 %v5226_v42, %v1738_v39  ;;  %v5229_v37 = vadd.f32 %v5228_v10, %v5227_v60  ;;  %6022 = vmatprep.mubr.bf16.mxu0 %v7278_v27  ;;  %v6241_v42 = vld [vmem:[#allocation9 + $0x68] sm:$0xff]  }
 0x1b1   : > { %v6242_v60 = vld [vmem:[#allocation9 + $0x28] sm:$0xff]   ;;  %5524 = vmatprep.subr.bf16.mxu1 %v6241_v42 }
 0x1b2   : > { %v7496_v54 = vadd.f32 %v5229_v37, %v1741_v13  ;;  %v5118_v7 = vpop.f32.mrb[40].mxu0  ;;  %5525 = vmatpush3.bf16.msra.mxu1 %v6242_v60 }
 0x1b3   : > { %v5119_v3 = vpop.f32.mrb[41].mxu0 }
 0x1b4   : > { %v5120_v25 = vadd.f32 %v5119_v3, %v5118_v7  ;;  %v5121_v63 = vpop.f32.mrb[42].mxu0  ;;  %v5230_v20 = vpop.f32.mrb[40].mxu1 }
 0x1b5   : > { %v5122_v26 = vpop.f32.mrb[43].mxu0  ;;  %v5231_v48 = vpop.f32.mrb[41].mxu1 }
 0x1b6   : > { %v1746_v44 = vadd.f32 %v5120_v25, %v7402_v1  ;;  %v5123_v53 = vadd.f32 %v5122_v26, %v5121_v63  ;;  %v5232_v9 = vadd.f32 %v5231_v48, %v5230_v20  ;;  %v5233_v33 = vpop.f32.mrb[42].mxu1 }
 0x1b7   : > { %v5234_v6 = vpop.f32.mrb[43].mxu1  ;;  %6023 = vmatmul.mubr.bf16.gmra.mrb[148].mxu0 %v7294_v56 }
 0x1b8   : > { %v1749_v27 = vadd.f32 %v5123_v53, %v7402_v1  ;;  %v7501_v40 = vadd.f32 %v5232_v9, %v1746_v44  ;;  %v5235_v24 = vadd.f32 %v5234_v6, %v5233_v33  ;;  %6026 = vmatprep.mubr.bf16.mxu0 %v7166_v34 }
 0x1ba   : > { %v7504_v4 = vadd.f32 %v5235_v24, %v1749_v27  ;;  %v5124_v5 = vpop.f32.mrb[44].mxu0 }
 0x1bb   : > { %v5125_v28 = vpop.f32.mrb[45].mxu0 }
 0x1bc   : > { %v5126_v45 = vadd.f32 %v5125_v28, %v5124_v5  ;;  %v5127_v50 = vpop.f32.mrb[46].mxu0  ;;  %v5236_v41 = vpop.f32.mrb[44].mxu1 }
 0x1bd   : > { %v5128_v47 = vpop.f32.mrb[47].mxu0  ;;  %v5237_v17 = vpop.f32.mrb[45].mxu1 }
 0x1be   : > { %v1754_v29 = vadd.f32 %v5126_v45, %v7402_v1  ;;  %v5129_v12 = vadd.f32 %v5128_v47, %v5127_v50  ;;  %v5238_v56 = vadd.f32 %v5237_v17, %v5236_v41  ;;  %v5239_v31 = vpop.f32.mrb[46].mxu1 }
 0x1bf   : > { %v5240_v19 = vpop.f32.mrb[47].mxu1  ;;  %6027 = vmatmul.mubr.bf16.gmra.mrb[152].mxu0 %v7187_v59 }
 0x1c0   : > { %v1757_v39 = vadd.f32 %v5129_v12, %v7402_v1  ;;  %v7509_v34 = vadd.f32 %v5238_v56, %v1754_v29  ;;  %v5241_v18 = vadd.f32 %v5240_v19, %v5239_v31  ;;  %6030 = vmatprep.mubr.bf16.mxu0 %v7328_v38  ;;  %v6243_v12 = vld [vmem:[#allocation9 + $0x70] sm:$0xff]  }
 0x1c1   : > { %v6244_v56 = vld [vmem:[#allocation9 + $0x30] sm:$0xff]   ;;  %5526 = vmatprep.subr.bf16.mxu1 %v6243_v12  ;;  %v6470_v12 = vmov 0.0  }
 0x1c2   : > { %v7512_v10 = vadd.f32 %v5241_v18, %v1757_v39  ;;  %v5130_v13 = vpop.f32.mrb[48].mxu0  ;;  %5527 = vmatpush3.bf16.msra.mxu1 %v6244_v56  ;;  %v6245_v18 = vld [vmem:[#allocation9 + $0xc0] sm:$0xff]   ;;  %2468 = vst [vmem:[#allocation2] sm:$0xff] %v6470_v12  ;;  %2469 = vst [vmem:[#allocation2 + $0x8] sm:$0xff] %v6470_v12 }
 0x1c3   : > { %v5131_v37 = vpop.f32.mrb[49].mxu0  ;;  %5626 = vmatprep.subr.bf16.mxu0 %v6245_v18  ;;  %2470 = vst [vmem:[#allocation2 + $0x10] sm:$0xff] %v6470_v12  ;;  %2472 = vst [vmem:[#allocation2 + $0x198] sm:$0xff] %v6470_v12 }
 0x1c4   : > { %v5132_v58 = vadd.f32 %v5131_v37, %v5130_v13  ;;  %v5133_v35 = vpop.f32.mrb[50].mxu0  ;;  %v5242_v7 = vpop.f32.mrb[48].mxu1  ;;  %v6246_v37 = vld [vmem:[#allocation9 + $0x80] sm:$0xff]   ;;  %2473 = vst [vmem:[#allocation2 + $0x1a0] sm:$0xff] %v6470_v12  ;;  %2474 = vst [vmem:[#allocation2 + $0x1a8] sm:$0xff] %v6470_v12 }
 0x1c5   : > { %v5134_v3 = vpop.f32.mrb[51].mxu0  ;;  %v5243_v59 = vpop.f32.mrb[49].mxu1  ;;  %5627 = vmatpush3.bf16.msra.mxu0 %v6246_v37  ;;  %2476 = vst [vmem:[#allocation2 + $0x18] sm:$0x1] %v6470_v12  ;;  %2477 = vst [vmem:[#allocation2 + $0x30] sm:$0x1] %v6470_v12 }
 0x1c6   : > { %v1762_v25 = vadd.f32 %v5132_v58, %v7402_v1  ;;  %v5135_v63 = vadd.f32 %v5134_v3, %v5133_v35  ;;  %v5244_v20 = vadd.f32 %v5243_v59, %v5242_v7  ;;  %v5245_v26 = vpop.f32.mrb[50].mxu1  ;;  %2478 = vst [vmem:[#allocation2 + $0x48] sm:$0x1] %v6470_v12  ;;  %2479 = vst [vmem:[#allocation2 + $0x60] sm:$0x1] %v6470_v12  ;;  %v6254_v37 = vld [vmem:[#allocation9 + $0x98] sm:$0xff]  }
 0x1c7   : > { %v5246_v48 = vpop.f32.mrb[51].mxu1  ;;  %6031 = vmatmul.mubr.bf16.gmra.mrb[156].mxu0 %v816_v30  ;;  %2480 = vst [vmem:[#allocation2 + $0x78] sm:$0x1] %v6470_v12  ;;  %2481 = vst [vmem:[#allocation2 + $0x90] sm:$0x1] %v6470_v12 }
 0x1c8   : > { %v1765_v38 = vadd.f32 %v5135_v63, %v7402_v1  ;;  %v7519_v44 = vadd.f32 %v5244_v20, %v1762_v25  ;;  %v5247_v53 = vadd.f32 %v5246_v48, %v5245_v26  ;;  %v6247_v20 = vld [vmem:[#allocation9 + $0xc8] sm:$0xff]   ;;  %2482 = vst [vmem:[#allocation2 + $0xa8] sm:$0x1] %v6470_v12  ;;  %2483 = vst [vmem:[#allocation2 + $0xc0] sm:$0x1] %v6470_v12 }
 0x1c9   : > { %5628 = vmatprep.subr.bf16.mxu0 %v6247_v20  ;;  %2484 = vst [vmem:[#allocation2 + $0xd8] sm:$0x1] %v6470_v12  ;;  %2485 = vst [vmem:[#allocation2 + $0xf0] sm:$0x1] %v6470_v12  ;;  %v6256_v20 = vld [vmem:[#allocation9 + $0xa0] sm:$0xff]  }
 0x1ca   : > { %v7521_v9 = vadd.f32 %v5247_v53, %v1765_v38  ;;  %v5136_v33 = vpop.f32.mrb[52].mxu0  ;;  %v6248_v53 = vld [vmem:[#allocation9 + $0x88] sm:$0xff]   ;;  %2486 = vst [vmem:[#allocation2 + $0x108] sm:$0x1] %v6470_v12  ;;  %2487 = vst [vmem:[#allocation2 + $0x120] sm:$0x1] %v6470_v12 }
 0x1cb   : > { %v5137_v6 = vpop.f32.mrb[53].mxu0  ;;  %5629 = vmatpush3.bf16.msra.mxu0 %v6248_v53  ;;  %2488 = vst [vmem:[#allocation2 + $0x138] sm:$0x1] %v6470_v12  ;;  %2489 = vst [vmem:[#allocation2 + $0x150] sm:$0x1] %v6470_v12  ;;  %v2609_v53 = vld [vmem:[#allocation2 + $0x9] sm:$0xff] }
 0x1cc   : > { %v5138_v27 = vadd.f32 %v5137_v6, %v5136_v33  ;;  %v5139_v24 = vpop.f32.mrb[54].mxu0  ;;  %v5248_v5 = vpop.f32.mrb[52].mxu1  ;;  %2490 = vst [vmem:[#allocation2 + $0x168] sm:$0x1] %v6470_v12  ;;  %2491 = vst [vmem:[#allocation2 + $0x180] sm:$0x1] %v6470_v12 }
 0x1cd   : > { %v5140_v28 = vpop.f32.mrb[55].mxu0  ;;  %v5249_v45 = vpop.f32.mrb[53].mxu1  ;;  %2494 = vst [vmem:[#allocation2 + $0x29] sm:$0x1] %v6470_v12  ;;  %2495 = vst [vmem:[#allocation2 + $0x41] sm:$0x1] %v6470_v12 }
 0x1ce   : > { %v1770_v50 = vadd.f32 %v5138_v27, %v7402_v1  ;;  %v5141_v41 = vadd.f32 %v5140_v28, %v5139_v24  ;;  %v5250_v47 = vadd.f32 %v5249_v45, %v5248_v5  ;;  %v5251_v52 = vpop.f32.mrb[54].mxu1  ;;  %v6250_v24 = vld [vmem:[#allocation9 + $0xd0] sm:$0xff]   ;;  %2496 = vst [vmem:[#allocation2 + $0x59] sm:$0x1] %v6470_v12  ;;  %2497 = vst [vmem:[#allocation2 + $0x71] sm:$0x1] %v6470_v12 }
 0x1cf   : > { %v5252_v51 = vpop.f32.mrb[55].mxu1  ;;  %5630 = vmatprep.subr.bf16.mxu0 %v6250_v24  ;;  %2498 = vst [vmem:[#allocation2 + $0x89] sm:$0x1] %v6470_v12  ;;  %2499 = vst [vmem:[#allocation2 + $0xa1] sm:$0x1] %v6470_v12 }
 0x1d0   : > { %v1773_v30 = vadd.f32 %v5141_v41, %v7402_v1  ;;  %v7525_v17 = vadd.f32 %v5250_v47, %v1770_v50  ;;  %v5253_v29 = vadd.f32 %v5252_v51, %v5251_v52  ;;  %v6252_v50 = vld [vmem:[#allocation9 + $0x90] sm:$0xff]   ;;  %2500 = vst [vmem:[#allocation2 + $0xb9] sm:$0x1] %v6470_v12  ;;  %2501 = vst [vmem:[#allocation2 + $0xd1] sm:$0x1] %v6470_v12 }
 0x1d1   : > { %5631 = vmatpush3.bf16.msra.mxu0 %v6252_v50  ;;  %2502 = vst [vmem:[#allocation2 + $0xe9] sm:$0x1] %v6470_v12  ;;  %2503 = vst [vmem:[#allocation2 + $0x101] sm:$0x1] %v6470_v12 }
 0x1d2   : > { %v7527_v31 = vadd.f32 %v5253_v29, %v1773_v30  ;;  %v5142_v19 = vpop.f32.mrb[56].mxu0  ;;  %2504 = vst [vmem:[#allocation2 + $0x119] sm:$0x1] %v6470_v12  ;;  %2505 = vst [vmem:[#allocation2 + $0x131] sm:$0x1] %v6470_v12 }
 0x1d3   : > { %v5143_v39 = vpop.f32.mrb[57].mxu0  ;;  %2506 = vst [vmem:[#allocation2 + $0x149] sm:$0x1] %v6470_v12  ;;  %2507 = vst [vmem:[#allocation2 + $0x161] sm:$0x1] %v6470_v12 }
 0x1d4   : > { %v5144_v42 = vadd.f32 %v5143_v39, %v5142_v19  ;;  %v5145_v60 = vpop.f32.mrb[58].mxu0  ;;  %v5254_v13 = vpop.f32.mrb[56].mxu1  ;;  %2508 = vst [vmem:[#allocation2 + $0x179] sm:$0x1] %v6470_v12  ;;  %2509 = vst [vmem:[#allocation2 + $0x191] sm:$0x1] %v6470_v12 }
 0x1d5   : > { %v5146_v58 = vpop.f32.mrb[59].mxu0  ;;  %v5255_v35 = vpop.f32.mrb[57].mxu1  ;;  %v6253_v19 = vld [vmem:[#allocation9 + $0xd8] sm:$0xff]   ;;  %2475 = vst [vmem:[#allocation2] sm:$0x1] %v6470_v12 }
 0x1d6   : > { %v1778_v7 = vadd.f32 %v5144_v42, %v7402_v1  ;;  %v5147_v3 = vadd.f32 %v5146_v58, %v5145_v60  ;;  %v5256_v59 = vadd.f32 %v5255_v35, %v5254_v13  ;;  %v5257_v25 = vpop.f32.mrb[58].mxu1  ;;  %2493 = vst [vmem:[#allocation2 + $0x11] sm:$0x1] %v6470_v12  ;;  %2492 = vst [vmem:[#allocation2 + $0x198] sm:$0x1] %v6470_v12  ;;  %v6249_v60 = vld [vmem:[#allocation9 + $0x78] sm:$0xff]   ;;  %5632 = vmatprep.subr.bf16.mxu0 %v6253_v19 }
 0x1d7   : > { %v5258_v63 = vpop.f32.mrb[59].mxu1  ;;  %2510 = vst [vmem:[#allocation2 + $0x1a9] sm:$0x1] %v6470_v12  ;;  %v6251_v13 = vld [vmem:[#allocation9 + $0x38] sm:$0xff]   ;;  %5528 = vmatprep.subr.bf16.mxu1 %v6249_v60  ;;  %5633 = vmatpush3.bf16.msra.mxu0 %v6254_v37  ;;  %v6261_v37 = vld [vmem:[#allocation9 + $0xb0] sm:$0xff]  }
 0x1d8   : > { %v1781_v26 = vadd.f32 %v5147_v3, %v7402_v1  ;;  %v7531_v48 = vadd.f32 %v5256_v59, %v1778_v7  ;;  %v5259_v38 = vadd.f32 %v5258_v63, %v5257_v25  ;;  %5529 = vmatpush3.bf16.msra.mxu1 %v6251_v13  ;;  %v6255_v3 = vld [vmem:[#allocation9 + $0xe0] sm:$0xff]  }
 0x1d9   : > { %5634 = vmatprep.subr.bf16.mxu0 %v6255_v3 }
 0x1da   : > { %v7533_v33 = vadd.f32 %v5259_v38, %v1781_v26  ;;  %v5148_v6 = vpop.f32.mrb[60].mxu0  ;;  %v2608_v38 = vld [vmem:[#allocation2 + $0x1] sm:$0xff] }
 0x1db   : > { %v5149_v27 = vpop.f32.mrb[61].mxu0  ;;  %5635 = vmatpush3.bf16.msra.mxu0 %v6256_v20 }
 0x1dc   : > { %v5150_v5 = vadd.f32 %v5149_v27, %v5148_v6  ;;  %v5151_v28 = vpop.f32.mrb[62].mxu0  ;;  %v5260_v45 = vpop.f32.mrb[60].mxu1 }
 0x1dd   : > { %v5152_v41 = vpop.f32.mrb[63].mxu0  ;;  %v5261_v47 = vpop.f32.mrb[61].mxu1 }
 0x1de   : > { %v1786_v52 = vadd.f32 %v5150_v5, %v7402_v1  ;;  %v5153_v51 = vadd.f32 %v5152_v41, %v5151_v28  ;;  %v5262_v30 = vadd.f32 %v5261_v47, %v5260_v45  ;;  %v5263_v29 = vpop.f32.mrb[62].mxu1  ;;  %v2640_v28 = vpack.c.bf16 %v2609_v53, %v2608_v38  ;;  %v2544_v45 = vld [vmem:[#allocation2] sm:$0xff]  ;;  %v6257_v41 = vld [vmem:[#allocation9 + $0xe8] sm:$0xff]   ;;  %v6264_v38 = vld [vmem:[#allocation9 + $0xb8] sm:$0xff]  }
 0x1df   : > { %v5264_v56 = vpop.f32.mrb[63].mxu1  ;;  %v2576_v47 = vpack.c.bf16 %v6470_v12, %v2544_v45  ;;  %5636 = vmatprep.subr.bf16.mxu0 %v6257_v41 }
 0x1e0   : > { %v1789_v39 = vadd.f32 %v5153_v51, %v7402_v1  ;;  %v7579_v18 = vadd.f32 %v5262_v30, %v1786_v52  ;;  %v5265_v42 = vadd.f32 %v5264_v56, %v5263_v29  ;;  %3873 = vmatprep.mubr.bf16.mxu1 %v2640_v28  ;;  %v6258_v29 = vld [vmem:[#allocation9 + $0xa8] sm:$0xff]  }
 0x1e1   : > { %3874 = vmatmul.mubr.bf16.vlgmr.msra.gmra.mrb[128].mxu1 %v2576_v47  ;;  %5637 = vmatpush3.bf16.msra.mxu0 %v6258_v29 }
 0x1e2   : > { %v7581_v58 = vadd.f32 %v5265_v42, %v1789_v39  ;;  %v5282_v35 = vpop.f32.mrb[64].mxu0  ;;  %v6259_v39 = vld [vmem:[#allocation9 + $0xf0] sm:$0xff]  }
 0x1e3   : > { %v5283_v7 = vpop.f32.mrb[65].mxu0  ;;  %5638 = vmatprep.subr.bf16.mxu0 %v6259_v39 }
 0x1e4   : > { %v5284_v59 = vadd.f32 %v5283_v7, %v5282_v35  ;;  %v5285_v25 = vpop.f32.mrb[66].mxu0  ;;  %v5394_v63 = vpop.f32.mrb[64].mxu1 }
 0x1e5   : > { %v5286_v1 = vpop.f32.mrb[67].mxu0  ;;  %v5395_v26 = vpop.f32.mrb[65].mxu1  ;;  %5639 = vmatpush3.bf16.msra.mxu0 %v6261_v37 }
 0x1e6   : > { %v1988_v6 = vadd.f32 %v5284_v59, %v7408_v21  ;;  %v5287_v27 = vadd.f32 %v5286_v1, %v5285_v25  ;;  %v5396_v24 = vadd.f32 %v5395_v26, %v5394_v63  ;;  %v5397_v5 = vpop.f32.mrb[66].mxu1  ;;  %v6263_v63 = vld [vmem:[#allocation9 + $0xf8] sm:$0xff]  }
 0x1e7   : > { %v5398_v50 = vpop.f32.mrb[67].mxu1  ;;  %5640 = vmatprep.subr.bf16.mxu0 %v6263_v63 }
 0x1e8   : > { %v1991_v52 = vadd.f32 %v5287_v27, %v7412_v46  ;;  %v5399_v51 = vadd.f32 %v5398_v50, %v5397_v5  ;;  %v7586_v30 = vadd.f32 %v5396_v24, %v1988_v6 }
 0x1e9   : > { %5641 = vmatpush3.bf16.msra.mxu0 %v6264_v38 }
 0x1ea   : > { %v5288_v21 = vpop.f32.mrb[68].mxu0  ;;  %v7588_v56 = vadd.f32 %v5399_v51, %v1991_v52 }
 0x1eb   : > { %v5289_v19 = vpop.f32.mrb[69].mxu0 }
 0x1ec   : > { %v5290_v42 = vadd.f32 %v5289_v19, %v5288_v21  ;;  %v5291_v60 = vpop.f32.mrb[70].mxu0  ;;  %v5400_v13 = vpop.f32.mrb[68].mxu1 }
 0x1ed   : > { %v5292_v12 = vpop.f32.mrb[71].mxu0  ;;  %v5401_v35 = vpop.f32.mrb[69].mxu1 }
 0x1ee   : > { %v1996_v46 = vadd.f32 %v5290_v42, %v7418_v57  ;;  %v5293_v7 = vadd.f32 %v5292_v12, %v5291_v60  ;;  %v5402_v3 = vadd.f32 %v5401_v35, %v5400_v13  ;;  %v5403_v59 = vpop.f32.mrb[70].mxu1  ;;  %v6260_v42 = vld [vmem:[#allocation9 + $0x140] sm:$0xff]  }
 0x1ef   : > { %v5404_v25 = vpop.f32.mrb[71].mxu1  ;;  %v6262_v60 = vld [vmem:[#allocation9 + $0x100] sm:$0xff]   ;;  %5738 = vmatprep.subr.bf16.mxu1 %v6260_v42 }
 0x1f0   : > { %v1999_v20 = vadd.f32 %v5293_v7, %v7422_v36  ;;  %v5405_v1 = vadd.f32 %v5404_v25, %v5403_v59  ;;  %v7592_v26 = vadd.f32 %v5402_v3, %v1996_v46  ;;  %5739 = vmatpush3.bf16.msra.mxu1 %v6262_v60 }
 0x1f2   : > { %v5294_v53 = vpop.f32.mrb[72].mxu0  ;;  %v7594_v6 = vadd.f32 %v5405_v1, %v1999_v20 }
 0x1f3   : > { %v5295_v27 = vpop.f32.mrb[73].mxu0 }
 0x1f4   : > { %v5296_v24 = vadd.f32 %v5295_v27, %v5294_v53  ;;  %v5297_v57 = vpop.f32.mrb[74].mxu0  ;;  %v5406_v5 = vpop.f32.mrb[72].mxu1  ;;  %v6265_v27 = vld [vmem:[#allocation9 + $0x148] sm:$0xff]  }
 0x1f5   : > { %v5298_v28 = vpop.f32.mrb[75].mxu0  ;;  %v5407_v45 = vpop.f32.mrb[73].mxu1  ;;  %5740 = vmatprep.subr.bf16.mxu1 %v6265_v27  ;;  %v6267_v27 = vld [vmem:[#allocation9 + $0x150] sm:$0xff]  }
 0x1f6   : > { %v2004_v50 = vadd.f32 %v5296_v24, %v7431_v43  ;;  %v5299_v41 = vadd.f32 %v5298_v28, %v5297_v57  ;;  %v5408_v47 = vadd.f32 %v5407_v45, %v5406_v5  ;;  %v5409_v36 = vpop.f32.mrb[74].mxu1  ;;  %v6266_v24 = vld [vmem:[#allocation9 + $0x108] sm:$0xff]  }
 0x1f7   : > { %v5410_v52 = vpop.f32.mrb[75].mxu1  ;;  %5741 = vmatpush3.bf16.msra.mxu1 %v6266_v24  ;;  %v6268_v24 = vld [vmem:[#allocation9 + $0x110] sm:$0xff]  }
 0x1f8   : > { %v2007_v51 = vadd.f32 %v5299_v41, %v7435_v15  ;;  %v5411_v29 = vadd.f32 %v5410_v52, %v5409_v36  ;;  %v7598_v21 = vadd.f32 %v5408_v47, %v2004_v50  ;;  %5742 = vmatprep.subr.bf16.mxu1 %v6267_v27  ;;  %v6269_v27 = vld [vmem:[#allocation9 + $0x158] sm:$0xff]  }
 0x1fa   : > { %v5300_v19 = vpop.f32.mrb[76].mxu0  ;;  %v7600_v39 = vadd.f32 %v5411_v29, %v2007_v51 }
 0x1fb   : > { %v5301_v13 = vpop.f32.mrb[77].mxu0  ;;  %5743 = vmatpush3.bf16.msra.mxu1 %v6268_v24  ;;  %v6270_v24 = vld [vmem:[#allocation9 + $0x118] sm:$0xff]  }
 0x1fc   : > { %v5302_v37 = vadd.f32 %v5301_v13, %v5300_v19  ;;  %v5303_v12 = vpop.f32.mrb[78].mxu0  ;;  %v5412_v35 = vpop.f32.mrb[76].mxu1  ;;  %5744 = vmatprep.subr.bf16.mxu1 %v6269_v27 }
 0x1fd   : > { %v5304_v43 = vpop.f32.mrb[79].mxu0  ;;  %v5413_v46 = vpop.f32.mrb[77].mxu1 }
 0x1fe   : > { %v2012_v7 = vadd.f32 %v5302_v37, %v7443_v55  ;;  %v5305_v3 = vadd.f32 %v5304_v43, %v5303_v12  ;;  %v5414_v15 = vadd.f32 %v5413_v46, %v5412_v35  ;;  %v5415_v59 = vpop.f32.mrb[78].mxu1 }
 0x1ff   : > { %v5416_v25 = vpop.f32.mrb[79].mxu1  ;;  %5745 = vmatpush3.bf16.msra.mxu1 %v6270_v24 }
 0x200   : > { %v2015_v63 = vadd.f32 %v5305_v3, %v7446_v32  ;;  %v5417_v20 = vadd.f32 %v5416_v25, %v5415_v59  ;;  %v7604_v1 = vadd.f32 %v5414_v15, %v2012_v7 }
 0x202   : > { %v5306_v38 = vpop.f32.mrb[80].mxu0  ;;  %v7606_v53 = vadd.f32 %v5417_v20, %v2015_v63 }
 0x203   : > { %v5307_v57 = vpop.f32.mrb[81].mxu0 }
 0x204   : > { %v5308_v5 = vadd.f32 %v5307_v57, %v5306_v38  ;;  %v5309_v28 = vpop.f32.mrb[82].mxu0  ;;  %v5418_v45 = vpop.f32.mrb[80].mxu1 }
 0x205   : > { %v5310_v55 = vpop.f32.mrb[83].mxu0  ;;  %v5419_v50 = vpop.f32.mrb[81].mxu1 }
 0x206   : > { %v2020_v41 = vadd.f32 %v5308_v5, %v7454_v22  ;;  %v5311_v47 = vadd.f32 %v5310_v55, %v5309_v28  ;;  %v5420_v32 = vadd.f32 %v5419_v50, %v5418_v45  ;;  %v5421_v36 = vpop.f32.mrb[82].mxu1 }
 0x207   : > { %v5422_v52 = vpop.f32.mrb[83].mxu1 }
 0x208   : > { %v2023_v51 = vadd.f32 %v5311_v47, %v7456_v8  ;;  %v5423_v29 = vadd.f32 %v5422_v52, %v5421_v36  ;;  %v7610_v19 = vadd.f32 %v5420_v32, %v2020_v41 }
 0x20a   : > { %v5312_v42 = vpop.f32.mrb[84].mxu0  ;;  %v7612_v60 = vadd.f32 %v5423_v29, %v2023_v51 }
 0x20b   : > { %v5313_v13 = vpop.f32.mrb[85].mxu0 }
 0x20c   : > { %v5314_v37 = vadd.f32 %v5313_v13, %v5312_v42  ;;  %v5315_v12 = vpop.f32.mrb[86].mxu0  ;;  %v5424_v35 = vpop.f32.mrb[84].mxu1 }
 0x20d   : > { %v5316_v43 = vpop.f32.mrb[87].mxu0  ;;  %v5425_v46 = vpop.f32.mrb[85].mxu1 }
 0x20e   : > { %v2028_v22 = vadd.f32 %v5314_v37, %v7462_v14  ;;  %v5317_v7 = vadd.f32 %v5316_v43, %v5315_v12  ;;  %v5426_v3 = vadd.f32 %v5425_v46, %v5424_v35  ;;  %v5427_v15 = vpop.f32.mrb[86].mxu1 }
 0x20f   : > { %v5428_v59 = vpop.f32.mrb[87].mxu1 }
 0x210   : > { %v2031_v8 = vadd.f32 %v5317_v7, %v7464_v61  ;;  %v5429_v25 = vadd.f32 %v5428_v59, %v5427_v15  ;;  %v7616_v63 = vadd.f32 %v5426_v3, %v2028_v22 }
 0x212   : > { %v5318_v20 = vpop.f32.mrb[88].mxu0  ;;  %v7618_v38 = vadd.f32 %v5429_v25, %v2031_v8 }
 0x213   : > { %v5319_v57 = vpop.f32.mrb[89].mxu0 }
 0x214   : > { %v5320_v5 = vadd.f32 %v5319_v57, %v5318_v20  ;;  %v5321_v28 = vpop.f32.mrb[90].mxu0  ;;  %v5430_v45 = vpop.f32.mrb[88].mxu1 }
 0x215   : > { %v5322_v14 = vpop.f32.mrb[91].mxu0  ;;  %v5431_v55 = vpop.f32.mrb[89].mxu1 }
 0x216   : > { %v2036_v50 = vadd.f32 %v5320_v5, %v7470_v62  ;;  %v5323_v41 = vadd.f32 %v5322_v14, %v5321_v28  ;;  %v5432_v61 = vadd.f32 %v5431_v55, %v5430_v45  ;;  %v5433_v47 = vpop.f32.mrb[90].mxu1 }
 0x217   : > { %v5434_v32 = vpop.f32.mrb[91].mxu1 }
 0x218   : > { %v2039_v36 = vadd.f32 %v5323_v41, %v7472_v23  ;;  %v5435_v52 = vadd.f32 %v5434_v32, %v5433_v47  ;;  %v7622_v51 = vadd.f32 %v5432_v61, %v2036_v50  ;;  %v6271_v61 = vld [vmem:[#allocation9 + $0x1c0] sm:$0xff]  }
 0x219   : > { %5850 = vmatprep.subr.bf16.mxu0 %v6271_v61 }
 0x21a   : > { %v5324_v29 = vpop.f32.mrb[92].mxu0  ;;  %v7624_v42 = vadd.f32 %v5435_v52, %v2039_v36 }
 0x21b   : > { %v5325_v13 = vpop.f32.mrb[93].mxu0 }
 0x21c   : > { %v5326_v37 = vadd.f32 %v5325_v13, %v5324_v29  ;;  %v5327_v12 = vpop.f32.mrb[94].mxu0  ;;  %v5436_v35 = vpop.f32.mrb[92].mxu1 }
 0x21d   : > { %v5328_v43 = vpop.f32.mrb[95].mxu0  ;;  %v5437_v46 = vpop.f32.mrb[93].mxu1 }
 0x21e   : > { %v2044_v62 = vadd.f32 %v5326_v37, %v7478_v0  ;;  %v5329_v22 = vadd.f32 %v5328_v43, %v5327_v12  ;;  %v5438_v7 = vadd.f32 %v5437_v46, %v5436_v35  ;;  %v5439_v3 = vpop.f32.mrb[94].mxu1 }
 0x21f   : > { %v5440_v15 = vpop.f32.mrb[95].mxu1 }
 0x220   : > { %v2047_v23 = vadd.f32 %v5329_v22, %v7480_v11  ;;  %v5441_v59 = vadd.f32 %v5440_v15, %v5439_v3  ;;  %v7628_v8 = vadd.f32 %v5438_v7, %v2044_v62  ;;  %v6273_v62 = vld [vmem:[#allocation9 + $0x160] sm:$0xff]  }
 0x221   : > { %5746 = vmatprep.subr.bf16.mxu1 %v6273_v62  ;;  %v6277_v62 = vld [vmem:[#allocation9 + $0x168] sm:$0xff]  }
 0x222   : > { %v5330_v25 = vpop.f32.mrb[96].mxu0  ;;  %v7630_v20 = vadd.f32 %v5441_v59, %v2047_v23 }
 0x223   : > { %v5331_v57 = vpop.f32.mrb[97].mxu0 }
 0x224   : > { %v5332_v5 = vadd.f32 %v5331_v57, %v5330_v25  ;;  %v5333_v28 = vpop.f32.mrb[98].mxu0  ;;  %v5442_v45 = vpop.f32.mrb[96].mxu1 }
 0x225   : > { %v5334_v0 = vpop.f32.mrb[99].mxu0  ;;  %v5443_v14 = vpop.f32.mrb[97].mxu1 }
 0x226   : > { %v2052_v55 = vadd.f32 %v5332_v5, %v7485_v2  ;;  %v5335_v50 = vadd.f32 %v5334_v0, %v5333_v28  ;;  %v5444_v11 = vadd.f32 %v5443_v14, %v5442_v45  ;;  %v5445_v41 = vpop.f32.mrb[98].mxu1 }
 0x227   : > { %v5446_v47 = vpop.f32.mrb[99].mxu1 }
 0x228   : > { %v2055_v32 = vadd.f32 %v5335_v50, %v7488_v16  ;;  %v5447_v36 = vadd.f32 %v5446_v47, %v5445_v41  ;;  %v7634_v52 = vadd.f32 %v5444_v11, %v2052_v55  ;;  %v6274_v16 = vld [vmem:[#allocation9 + $0x120] sm:$0xff]  }
 0x229   : > { %5747 = vmatpush3.bf16.msra.mxu1 %v6274_v16 }
 0x22a   : > { %v5336_v29 = vpop.f32.mrb[100].mxu0  ;;  %v7636_v13 = vadd.f32 %v5447_v36, %v2055_v32  ;;  %5748 = vmatprep.subr.bf16.mxu1 %v6277_v62  ;;  %v6281_v62 = vld [vmem:[#allocation9 + $0x170] sm:$0xff]  }
 0x22b   : > { %v5337_v37 = vpop.f32.mrb[101].mxu0 }
 0x22c   : > { %v5338_v12 = vadd.f32 %v5337_v37, %v5336_v29  ;;  %v5339_v35 = vpop.f32.mrb[102].mxu0  ;;  %v5448_v43 = vpop.f32.mrb[100].mxu1 }
 0x22d   : > { %v5340_v46 = vpop.f32.mrb[103].mxu0  ;;  %v5449_v2 = vpop.f32.mrb[101].mxu1 }
 0x22e   : > { %v2060_v22 = vadd.f32 %v5338_v12, %v7493_v49  ;;  %v5341_v7 = vadd.f32 %v5340_v46, %v5339_v35  ;;  %v5450_v3 = vadd.f32 %v5449_v2, %v5448_v43  ;;  %v5451_v15 = vpop.f32.mrb[102].mxu1 }
 0x22f   : > { %v5452_v23 = vpop.f32.mrb[103].mxu1 }
 0x230   : > { %v2063_v59 = vadd.f32 %v5341_v7, %v7496_v54  ;;  %v5453_v25 = vadd.f32 %v5452_v23, %v5451_v15  ;;  %v7640_v27 = vadd.f32 %v5450_v3, %v2060_v22  ;;  %v6278_v15 = vld [vmem:[#allocation9 + $0x128] sm:$0xff]  }
 0x231   : > { %5749 = vmatpush3.bf16.msra.mxu1 %v6278_v15 }
 0x232   : > { %v5342_v24 = vpop.f32.mrb[104].mxu0  ;;  %v7642_v57 = vadd.f32 %v5453_v25, %v2063_v59  ;;  %5750 = vmatprep.subr.bf16.mxu1 %v6281_v62  ;;  %v6285_v62 = vld [vmem:[#allocation9 + $0x178] sm:$0xff]  }
 0x233   : > { %v5343_v5 = vpop.f32.mrb[105].mxu0 }
 0x234   : > { %v5344_v28 = vadd.f32 %v5343_v5, %v5342_v24  ;;  %v5345_v45 = vpop.f32.mrb[106].mxu0  ;;  %v5454_v0 = vpop.f32.mrb[104].mxu1 }
 0x235   : > { %v5346_v49 = vpop.f32.mrb[107].mxu0  ;;  %v5455_v14 = vpop.f32.mrb[105].mxu1 }
 0x236   : > { %v2068_v55 = vadd.f32 %v5344_v28, %v7501_v40  ;;  %v5347_v50 = vadd.f32 %v5346_v49, %v5345_v45  ;;  %v5456_v11 = vadd.f32 %v5455_v14, %v5454_v0  ;;  %v5457_v41 = vpop.f32.mrb[106].mxu1 }
 0x237   : > { %v5458_v61 = vpop.f32.mrb[107].mxu1 }
 0x238   : > { %v2071_v54 = vadd.f32 %v5347_v50, %v7504_v4  ;;  %v5459_v47 = vadd.f32 %v5458_v61, %v5457_v41  ;;  %v7646_v32 = vadd.f32 %v5456_v11, %v2068_v55 }
 0x23a   : > { %v5348_v36 = vpop.f32.mrb[108].mxu0  ;;  %v7648_v29 = vadd.f32 %v5459_v47, %v2071_v54 }
 0x23b   : > { %v5349_v37 = vpop.f32.mrb[109].mxu0 }
 0x23c   : > { %v5350_v12 = vadd.f32 %v5349_v37, %v5348_v36  ;;  %v5351_v35 = vpop.f32.mrb[110].mxu0  ;;  %v5460_v43 = vpop.f32.mrb[108].mxu1 }
 0x23d   : > { %v5352_v46 = vpop.f32.mrb[111].mxu0  ;;  %v5461_v2 = vpop.f32.mrb[109].mxu1 }
 0x23e   : > { %v2076_v40 = vadd.f32 %v5350_v12, %v7509_v34  ;;  %v5353_v22 = vadd.f32 %v5352_v46, %v5351_v35  ;;  %v5462_v7 = vadd.f32 %v5461_v2, %v5460_v43  ;;  %v5463_v3 = vpop.f32.mrb[110].mxu1 }
 0x23f   : > { %v5464_v4 = vpop.f32.mrb[111].mxu1 }
 0x240   : > { %v2079_v16 = vadd.f32 %v5353_v22, %v7512_v10  ;;  %v5465_v23 = vadd.f32 %v5464_v4, %v5463_v3  ;;  %v7652_v59 = vadd.f32 %v5462_v7, %v2076_v40  ;;  %v6282_v3 = vld [vmem:[#allocation9 + $0x130] sm:$0xff]  }
 0x241   : > { %5751 = vmatpush3.bf16.msra.mxu1 %v6282_v3 }
 0x242   : > { %v5354_v25 = vpop.f32.mrb[112].mxu0  ;;  %v7654_v24 = vadd.f32 %v5465_v23, %v2079_v16  ;;  %5752 = vmatprep.subr.bf16.mxu1 %v6285_v62 }
 0x243   : > { %v5355_v5 = vpop.f32.mrb[113].mxu0 }
 0x244   : > { %v5356_v28 = vadd.f32 %v5355_v5, %v5354_v25  ;;  %v5357_v45 = vpop.f32.mrb[114].mxu0  ;;  %v5466_v0 = vpop.f32.mrb[112].mxu1 }
 0x245   : > { %v5358_v34 = vpop.f32.mrb[115].mxu0  ;;  %v5467_v49 = vpop.f32.mrb[113].mxu1 }
 0x246   : > { %v2084_v14 = vadd.f32 %v5356_v28, %v7519_v44  ;;  %v5359_v55 = vadd.f32 %v5358_v34, %v5357_v45  ;;  %v5468_v50 = vadd.f32 %v5467_v49, %v5466_v0  ;;  %v5469_v11 = vpop.f32.mrb[114].mxu1 }
 0x247   : > { %v5470_v41 = vpop.f32.mrb[115].mxu1 }
 0x248   : > { %v2087_v10 = vadd.f32 %v5359_v55, %v7521_v9  ;;  %v5471_v61 = vadd.f32 %v5470_v41, %v5469_v11  ;;  %v7658_v54 = vadd.f32 %v5468_v50, %v2084_v14 }
 0x24a   : > { %v5360_v47 = vpop.f32.mrb[116].mxu0  ;;  %v7660_v36 = vadd.f32 %v5471_v61, %v2087_v10 }
 0x24b   : > { %v5361_v37 = vpop.f32.mrb[117].mxu0 }
 0x24c   : > { %v5362_v12 = vadd.f32 %v5361_v37, %v5360_v47  ;;  %v5363_v35 = vpop.f32.mrb[118].mxu0  ;;  %v5472_v43 = vpop.f32.mrb[116].mxu1 }
 0x24d   : > { %v5364_v46 = vpop.f32.mrb[119].mxu0  ;;  %v5473_v2 = vpop.f32.mrb[117].mxu1 }
 0x24e   : > { %v2092_v44 = vadd.f32 %v5362_v12, %v7525_v17  ;;  %v5365_v40 = vadd.f32 %v5364_v46, %v5363_v35  ;;  %v5474_v22 = vadd.f32 %v5473_v2, %v5472_v43  ;;  %v5475_v7 = vpop.f32.mrb[118].mxu1 }
 0x24f   : > { %v5476_v9 = vpop.f32.mrb[119].mxu1 }
 0x250   : > { %v2095_v15 = vadd.f32 %v5365_v40, %v7527_v31  ;;  %v5477_v4 = vadd.f32 %v5476_v9, %v5475_v7  ;;  %v7664_v16 = vadd.f32 %v5474_v22, %v2092_v44  ;;  %v6286_v7 = vld [vmem:[#allocation9 + $0x138] sm:$0xff]  }
 0x251   : > { %5753 = vmatpush3.bf16.msra.mxu1 %v6286_v7 }
 0x252   : > { %v5366_v23 = vpop.f32.mrb[120].mxu0  ;;  %v7666_v25 = vadd.f32 %v5477_v4, %v2095_v15 }
 0x253   : > { %v5367_v5 = vpop.f32.mrb[121].mxu0 }
 0x254   : > { %v5368_v28 = vadd.f32 %v5367_v5, %v5366_v23  ;;  %v5369_v45 = vpop.f32.mrb[122].mxu0  ;;  %v5478_v0 = vpop.f32.mrb[120].mxu1 }
 0x255   : > { %v5370_v17 = vpop.f32.mrb[123].mxu0  ;;  %v5479_v34 = vpop.f32.mrb[121].mxu1 }
 0x256   : > { %v2100_v49 = vadd.f32 %v5368_v28, %v7531_v48  ;;  %v5371_v14 = vadd.f32 %v5370_v17, %v5369_v45  ;;  %v5480_v55 = vadd.f32 %v5479_v34, %v5478_v0  ;;  %v5481_v50 = vpop.f32.mrb[122].mxu1 }
 0x257   : > { %v5482_v11 = vpop.f32.mrb[123].mxu1 }
 0x258   : > { %v2103_v31 = vadd.f32 %v5371_v14, %v7533_v33  ;;  %v5483_v41 = vadd.f32 %v5482_v11, %v5481_v50  ;;  %v7670_v10 = vadd.f32 %v5480_v55, %v2100_v49 }
 0x25a   : > { %v5372_v61 = vpop.f32.mrb[124].mxu0  ;;  %v7672_v47 = vadd.f32 %v5483_v41, %v2103_v31 }
 0x25b   : > { %v5373_v37 = vpop.f32.mrb[125].mxu0 }
 0x25c   : > { %v5374_v12 = vadd.f32 %v5373_v37, %v5372_v61  ;;  %v5375_v35 = vpop.f32.mrb[126].mxu0  ;;  %v5484_v43 = vpop.f32.mrb[124].mxu1 }
 0x25d   : > { %v5376_v46 = vpop.f32.mrb[127].mxu0  ;;  %v5485_v2 = vpop.f32.mrb[125].mxu1 }
 0x25e   : > { %v2108_v48 = vadd.f32 %v5374_v12, %v7579_v18  ;;  %v5377_v44 = vadd.f32 %v5376_v46, %v5375_v35  ;;  %v5486_v40 = vadd.f32 %v5485_v2, %v5484_v43  ;;  %v5487_v22 = vpop.f32.mrb[126].mxu1  ;;  %v7687_v12 = vld [vmem:[#allocation9 + $0x200] sm:$0xff]   ;;  %v2672_v46 = vld [vmem:[#allocation2 + $0x2] sm:$0xff] }
 0x25f   : > { %v5488_v33 = vpop.f32.mrb[127].mxu1  ;;  %v2673_v2 = vld [vmem:[#allocation2 + $0xa] sm:$0xff]  ;;  %6034 = vmatprep.subr.bf16.mxu1 %v7687_v12 }
 0x260   : > { %v2111_v3 = vadd.f32 %v5377_v44, %v7581_v58  ;;  %v5489_v9 = vadd.f32 %v5488_v33, %v5487_v22  ;;  %v7676_v15 = vadd.f32 %v5486_v40, %v2108_v48  ;;  %v2704_v44 = vpack.c.bf16 %v2673_v2, %v2672_v46 }
 0x262   : > { %v6004_v4 = vpop.f32.mrb[128].mxu0  ;;  %v7678_v23 = vadd.f32 %v5489_v9, %v2111_v3 }
 0x263   : > { %v2318_v5 = vadd.f32 %v6004_v4, %v7592_v26  ;;  %v2309_v28 = vpop.f32.mrb[129].mxu0 }
 0x264   : > { %v2310_v18 = vadd.f32 %v2309_v28, %v7586_v30  ;;  %v6005_v45 = vpop.f32.mrb[130].mxu0 }
 0x265   : > { %v2438_v0 = vmax.f32 %v2318_v5, 0.0  ;;  %v2321_v17 = vadd.f32 %v6005_v45, %v7594_v6  ;;  %v2312_v34 = vpop.f32.mrb[131].mxu0  ;;  %v6275_v5 = vld [vmem:[#allocation9 + $0x1c8] sm:$0xff]  }
 0x266   : > { %v2436_v49 = vmax.f32 %v2310_v18, 0.0  ;;  %v2313_v58 = vadd.f32 %v2312_v34, %v7588_v56 }
 0x267   : > { %2514 = vst [vmem:[#allocation2 + $0x31] sm:$0xff] %v2438_v0  ;;  %v2439_v14 = vmax.f32 %v2321_v17, 0.0 }
 0x268   : > { %2512 = vst [vmem:[#allocation2 + $0x19] sm:$0xff] %v2436_v49  ;;  %v2437_v55 = vmax.f32 %v2313_v58, 0.0 }
 0x269   : > { %2515 = vst [vmem:[#allocation2 + $0x39] sm:$0xff] %v2439_v14  ;;  %v2642_v50 = vpack.c.bf16 %v2439_v14, %v2438_v0  ;;  %v6279_v14 = vld [vmem:[#allocation9 + $0x1d0] sm:$0xff]  }
 0x26a   : > { %2513 = vst [vmem:[#allocation2 + $0x21] sm:$0xff] %v2437_v55  ;;  %v6008_v11 = vpop.f32.mrb[132].mxu0  ;;  %v2641_v26 = vpack.c.bf16 %v2437_v55, %v2436_v49 }
 0x26b   : > { %v2334_v31 = vadd.f32 %v6008_v11, %v7604_v1  ;;  %v2325_v30 = vpop.f32.mrb[133].mxu0 }
 0x26c   : > { %v2326_v41 = vadd.f32 %v2325_v30, %v7598_v21  ;;  %v6009_v61 = vpop.f32.mrb[134].mxu0  ;;  %3881 = vmatprep.mubr.bf16.mxu1 %v2641_v26 }
 0x26d   : > { %v2442_v6 = vmax.f32 %v2334_v31, 0.0  ;;  %v2337_v37 = vadd.f32 %v6009_v61, %v7606_v53  ;;  %v2328_v56 = vpop.f32.mrb[135].mxu0 }
 0x26e   : > { %v2440_v35 = vmax.f32 %v2326_v41, 0.0  ;;  %v2329_v43 = vadd.f32 %v2328_v56, %v7600_v39  ;;  %v6272_v39 = vld [vmem:[#allocation9 + $0x180] sm:$0xff]   ;;  %v6283_v56 = vld [vmem:[#allocation9 + $0x1d8] sm:$0xff]  }
 0x26f   : > { %2518 = vst [vmem:[#allocation2 + $0x61] sm:$0xff] %v2442_v6  ;;  %v2443_v62 = vmax.f32 %v2337_v37, 0.0  ;;  %v2736_v21 = vld [vmem:[#allocation2 + $0x18] sm:$0xff]  ;;  %v2738_v4 = vld [vmem:[#allocation2 + $0x30] sm:$0xff] }
 0x270   : > { %2516 = vst [vmem:[#allocation2 + $0x49] sm:$0xff] %v2440_v35  ;;  %v2441_v1 = vmax.f32 %v2329_v43, 0.0  ;;  %v2739_v40 = vld [vmem:[#allocation2 + $0x38] sm:$0xff] }
 0x271   : > { %2519 = vst [vmem:[#allocation2 + $0x69] sm:$0xff] %v2443_v62  ;;  %v2737_v48 = vld [vmem:[#allocation2 + $0x20] sm:$0xff]  ;;  %v7691_v53 = vpack.c.bf16 %v2443_v62, %v2442_v6  ;;  %v7695_v45 = vpack.c.bf16 %v2739_v40, %v2738_v4 }
 0x272   : > { %2517 = vst [vmem:[#allocation2 + $0x51] sm:$0xff] %v2441_v1  ;;  %v6012_v22 = vpop.f32.mrb[136].mxu0  ;;  %v2768_v7 = vpack.c.bf16 %v2737_v48, %v2736_v21  ;;  %v2643_v33 = vpack.c.bf16 %v2441_v1, %v2440_v35  ;;  %v2674_v11 = vld [vmem:[#allocation2 + $0x1a] sm:$0xff]  ;;  %v2675_v26 = vld [vmem:[#allocation2 + $0x22] sm:$0xff] }
 0x273   : > { %v2350_v3 = vadd.f32 %v6012_v22, %v7616_v63  ;;  %v2341_v9 = vpop.f32.mrb[137].mxu0  ;;  %v6276_v63 = vld [vmem:[#allocation9 + $0x188] sm:$0xff]   ;;  %v7705_v6 = vpack.c.bf16 %v2675_v26, %v2674_v11  ;;  %v6284_v48 = vld [vmem:[#allocation9 + $0x198] sm:$0xff]  }
 0x274   : > { %v2342_v28 = vadd.f32 %v2341_v9, %v7610_v19  ;;  %v6013_v18 = vpop.f32.mrb[138].mxu0  ;;  %4034 = vmatprep.mubr.bf16.mxu0 %v2768_v7  ;;  %3882 = vmatmul.mubr.bf16.gmra.mrb[132].mxu1 %v2768_v7  ;;  %v2676_v22 = vld [vmem:[#allocation2 + $0x32] sm:$0xff]  ;;  %v2677_v7 = vld [vmem:[#allocation2 + $0x3a] sm:$0xff] }
 0x275   : > { %v2446_v0 = vmax.f32 %v2350_v3, 0.0  ;;  %v2353_v17 = vadd.f32 %v6013_v18, %v7618_v38  ;;  %v2344_v34 = vpop.f32.mrb[139].mxu0  ;;  %4035 = vmatmul.mubr.bf16.vlgmr.msra.gmra.mrb[160].mxu0 %v2704_v44  ;;  %3889 = vmatprep.mubr.bf16.mxu1 %v2642_v50  ;;  %v6287_v44 = vld [vmem:[#allocation9 + $0x1e0] sm:$0xff]   ;;  %v6289_v18 = vld [vmem:[#allocation9 + $0x1e8] sm:$0xff]  }
 0x276   : > { %v2444_v49 = vmax.f32 %v2342_v28, 0.0  ;;  %v2345_v58 = vadd.f32 %v2344_v34, %v7612_v60  ;;  %4042 = vmatprep.mubr.bf16.mxu0 %v7695_v45  ;;  %5851 = vmatpush3.bf16.msra.mxu0 %v6272_v39  ;;  %v6280_v60 = vld [vmem:[#allocation9 + $0x190] sm:$0xff]  }
 0x277   : > { %2522 = vst [vmem:[#allocation2 + $0x91] sm:$0xff] %v2446_v0  ;;  %v2447_v19 = vmax.f32 %v2353_v17, 0.0  ;;  %5852 = vmatprep.subr.bf16.mxu0 %v6275_v5  ;;  %v2740_v37 = vld [vmem:[#allocation2 + $0x48] sm:$0xff]  ;;  %v7720_v5 = vpack.c.bf16 %v2677_v7, %v2676_v22  ;;  %v2742_v28 = vld [vmem:[#allocation2 + $0x60] sm:$0xff] }
 0x278   : > { %2520 = vst [vmem:[#allocation2 + $0x79] sm:$0xff] %v2444_v49  ;;  %v2445_v55 = vmax.f32 %v2345_v58, 0.0  ;;  %v2681_v22 = vld [vmem:[#allocation2 + $0x6a] sm:$0xff] }
 0x279   : > { %2523 = vst [vmem:[#allocation2 + $0x99] sm:$0xff] %v2447_v19  ;;  %v2741_v38 = vld [vmem:[#allocation2 + $0x50] sm:$0xff]  ;;  %v7700_v31 = vpack.c.bf16 %v2447_v19, %v2446_v0 }
 0x27a   : > { %2521 = vst [vmem:[#allocation2 + $0x81] sm:$0xff] %v2445_v55  ;;  %v6016_v50 = vpop.f32.mrb[140].mxu0  ;;  %v7702_v30 = vpack.c.bf16 %v2445_v55, %v2444_v49  ;;  %5853 = vmatpush3.bf16.msra.mxu0 %v6276_v63  ;;  %v7709_v46 = vpack.c.bf16 %v2741_v38, %v2740_v37  ;;  %v6291_v55 = vld [vmem:[#allocation9 + $0x1f0] sm:$0xff]   ;;  %v3059_v11 = vld [vmem:[#allocation2 + $0x4a] sm:$0xff]  ;;  %v3060_v26 = vld [vmem:[#allocation2 + $0x52] sm:$0xff] }
 0x27b   : > { %v2366_v41 = vadd.f32 %v6016_v50, %v7628_v8  ;;  %v2357_v61 = vpop.f32.mrb[141].mxu0  ;;  %5854 = vmatprep.subr.bf16.mxu0 %v6279_v14 }
 0x27c   : > { %v2358_v35 = vadd.f32 %v2357_v61, %v7622_v51  ;;  %v6017_v43 = vpop.f32.mrb[142].mxu0  ;;  %3890 = vmatmul.mubr.bf16.gmra.mrb[136].mxu1 %v7695_v45 }
 0x27d   : > { %v2450_v2 = vmax.f32 %v2366_v41, 0.0  ;;  %v2369_v62 = vadd.f32 %v6017_v43, %v7630_v20  ;;  %v2360_v1 = vpop.f32.mrb[143].mxu0  ;;  %4043 = vmatmul.mubr.bf16.gmra.mrb[164].mxu0 %v7705_v6  ;;  %3897 = vmatprep.mubr.bf16.mxu1 %v2643_v33  ;;  %v2743_v20 = vld [vmem:[#allocation2 + $0x68] sm:$0xff]  ;;  %v7735_v41 = vpack.c.bf16 %v3060_v26, %v3059_v11 }
 0x27e   : > { %v2448_v8 = vmax.f32 %v2358_v35, 0.0  ;;  %v2361_v21 = vadd.f32 %v2360_v1, %v7624_v42  ;;  %4050 = vmatprep.mubr.bf16.mxu0 %v7709_v46  ;;  %5855 = vmatpush3.bf16.msra.mxu0 %v6280_v60  ;;  %v6288_v42 = vld [vmem:[#allocation9 + $0x1a0] sm:$0xff]   ;;  %v7724_v34 = vpack.c.bf16 %v2743_v20, %v2742_v28  ;;  %v6294_v35 = vld [vmem:[#allocation9 + $0x1f8] sm:$0xff]  }
 0x27f   : > { %2526 = vst [vmem:[#allocation2 + $0xc1] sm:$0xff] %v2450_v2  ;;  %v2451_v51 = vmax.f32 %v2369_v62, 0.0  ;;  %5856 = vmatprep.subr.bf16.mxu0 %v6283_v56  ;;  %v2744_v56 = vld [vmem:[#allocation2 + $0x78] sm:$0xff] }
 0x280   : > { %2524 = vst [vmem:[#allocation2 + $0xa9] sm:$0xff] %v2448_v8  ;;  %v2449_v40 = vmax.f32 %v2361_v21, 0.0 }
 0x281   : > { %2527 = vst [vmem:[#allocation2 + $0xc9] sm:$0xff] %v2451_v51  ;;  %v7715_v39 = vpack.c.bf16 %v2451_v51, %v2450_v2  ;;  %v2745_v38 = vld [vmem:[#allocation2 + $0x80] sm:$0xff] }
 0x282   : > { %2525 = vst [vmem:[#allocation2 + $0xb1] sm:$0xff] %v2449_v40  ;;  %v6020_v33 = vpop.f32.mrb[144].mxu0  ;;  %v7717_v3 = vpack.c.bf16 %v2449_v40, %v2448_v8  ;;  %5857 = vmatpush3.bf16.msra.mxu0 %v6284_v48  ;;  %v7740_v62 = vpack.c.bf16 %v2745_v38, %v2744_v56  ;;  %v2680_v40 = vld [vmem:[#allocation2 + $0x62] sm:$0xff] }
 0x283   : > { %v2382_v9 = vadd.f32 %v6020_v33, %v7640_v27  ;;  %v2373_v4 = vpop.f32.mrb[145].mxu0  ;;  %5858 = vmatprep.subr.bf16.mxu0 %v6287_v44 }
 0x284   : > { %v2374_v0 = vadd.f32 %v2373_v4, %v7634_v52  ;;  %v6021_v17 = vpop.f32.mrb[146].mxu0  ;;  %3898 = vmatmul.mubr.bf16.gmra.mrb[140].mxu1 %v7709_v46  ;;  %v6290_v52 = vld [vmem:[#allocation9 + $0x1a8] sm:$0xff]  }
 0x285   : > { %v2454_v49 = vmax.f32 %v2382_v9, 0.0  ;;  %v2385_v58 = vadd.f32 %v6021_v17, %v7642_v57  ;;  %v2376_v63 = vpop.f32.mrb[147].mxu0  ;;  %4051 = vmatmul.mubr.bf16.gmra.mrb[168].mxu0 %v7720_v5  ;;  %3905 = vmatprep.mubr.bf16.mxu1 %v7691_v53  ;;  %v2746_v9 = vld [vmem:[#allocation2 + $0x90] sm:$0xff] }
 0x286   : > { %v2452_v27 = vmax.f32 %v2374_v0, 0.0  ;;  %v2377_v19 = vadd.f32 %v2376_v63, %v7636_v13  ;;  %4058 = vmatprep.mubr.bf16.mxu0 %v7724_v34  ;;  %5859 = vmatpush3.bf16.msra.mxu0 %v6288_v42  ;;  %v6293_v13 = vld [vmem:[#allocation9 + $0x1b0] sm:$0xff]   ;;  %v7752_v42 = vpack.c.bf16 %v2681_v22, %v2680_v40 }
 0x287   : > { %2530 = vst [vmem:[#allocation2 + $0xf1] sm:$0xff] %v2454_v49  ;;  %v2455_v14 = vmax.f32 %v2385_v58, 0.0  ;;  %5860 = vmatprep.subr.bf16.mxu0 %v6289_v18  ;;  %v2748_v26 = vld [vmem:[#allocation2 + $0xa8] sm:$0xff] }
 0x288   : > { %2528 = vst [vmem:[#allocation2 + $0xd9] sm:$0xff] %v2452_v27  ;;  %v2453_v57 = vmax.f32 %v2377_v19, 0.0  ;;  %v2683_v19 = vld [vmem:[#allocation2 + $0x82] sm:$0xff] }
 0x289   : > { %2531 = vst [vmem:[#allocation2 + $0xf9] sm:$0xff] %v2455_v14  ;;  %v7731_v50 = vpack.c.bf16 %v2455_v14, %v2454_v49  ;;  %v2688_v40 = vld [vmem:[#allocation2 + $0xc2] sm:$0xff] }
 0x28a   : > { %2529 = vst [vmem:[#allocation2 + $0xe1] sm:$0xff] %v2453_v57  ;;  %v6024_v53 = vpop.f32.mrb[148].mxu0  ;;  %v7733_v60 = vpack.c.bf16 %v2453_v57, %v2452_v27  ;;  %5861 = vmatpush3.bf16.msra.mxu0 %v6290_v52  ;;  %v2682_v27 = vld [vmem:[#allocation2 + $0x7a] sm:$0xff]  ;;  %v2749_v52 = vld [vmem:[#allocation2 + $0xb0] sm:$0xff] }
 0x28b   : > { %v2398_v61 = vadd.f32 %v6024_v53, %v7652_v59  ;;  %v2389_v37 = vpop.f32.mrb[149].mxu0  ;;  %5862 = vmatprep.subr.bf16.mxu0 %v6291_v55  ;;  %v7772_v53 = vpack.c.bf16 %v2749_v52, %v2748_v26 }
 0x28c   : > { %v2390_v43 = vadd.f32 %v2389_v37, %v7646_v32  ;;  %v6025_v2 = vpop.f32.mrb[150].mxu0  ;;  %3906 = vmatmul.mubr.bf16.gmra.mrb[144].mxu1 %v7724_v34  ;;  %v6295_v32 = vld [vmem:[#allocation9 + $0x1b8] sm:$0xff]  }
 0x28d   : > { %v2458_v1 = vmax.f32 %v2398_v61, 0.0  ;;  %v2401_v8 = vadd.f32 %v6025_v2, %v7654_v24  ;;  %v2392_v21 = vpop.f32.mrb[151].mxu0  ;;  %4059 = vmatmul.mubr.bf16.gmra.mrb[172].mxu0 %v7735_v41  ;;  %3913 = vmatprep.mubr.bf16.mxu1 %v7702_v30  ;;  %v2747_v24 = vld [vmem:[#allocation2 + $0x98] sm:$0xff] }
 0x28e   : > { %v2456_v59 = vmax.f32 %v2390_v43, 0.0  ;;  %v2393_v48 = vadd.f32 %v2392_v21, %v7648_v29  ;;  %4066 = vmatprep.mubr.bf16.mxu0 %v7740_v62  ;;  %5863 = vmatpush3.bf16.msra.mxu0 %v6293_v13  ;;  %v7756_v18 = vpack.c.bf16 %v2747_v24, %v2746_v9  ;;  %v2684_v43 = vld [vmem:[#allocation2 + $0x92] sm:$0xff]  ;;  %v2685_v2 = vld [vmem:[#allocation2 + $0x9a] sm:$0xff] }
 0x28f   : > { %2534 = vst [vmem:[#allocation2 + $0x121] sm:$0xff] %v2458_v1  ;;  %v2459_v51 = vmax.f32 %v2401_v8, 0.0  ;;  %5864 = vmatprep.subr.bf16.mxu0 %v6294_v35  ;;  %v7781_v8 = vpack.c.bf16 %v2685_v2, %v2684_v43  ;;  %v2750_v21 = vld [vmem:[#allocation2 + $0xc0] sm:$0xff] }
 0x290   : > { %2532 = vst [vmem:[#allocation2 + $0x109] sm:$0xff] %v2456_v59  ;;  %v2457_v44 = vmax.f32 %v2393_v48, 0.0  ;;  %v2755_v22 = vld [vmem:[#allocation2 + $0xf8] sm:$0xff] }
 0x291   : > { %2535 = vst [vmem:[#allocation2 + $0x129] sm:$0xff] %v2459_v51  ;;  %v7747_v7 = vpack.c.bf16 %v2459_v51, %v2458_v1  ;;  %v2751_v1 = vld [vmem:[#allocation2 + $0xc8] sm:$0xff]  ;;  %v2753_v48 = vld [vmem:[#allocation2 + $0xe0] sm:$0xff]  ;;  %v2752_v51 = vld [vmem:[#allocation2 + $0xd8] sm:$0xff] }
 0x292   : > { %2533 = vst [vmem:[#allocation2 + $0x111] sm:$0xff] %v2457_v44  ;;  %v6028_v30 = vpop.f32.mrb[152].mxu0  ;;  %v7749_v20 = vpack.c.bf16 %v2457_v44, %v2456_v59  ;;  %5865 = vmatpush3.bf16.msra.mxu0 %v6295_v32  ;;  %v2687_v59 = vld [vmem:[#allocation2 + $0xb2] sm:$0xff]  ;;  %v7792_v44 = vpack.c.bf16 %v2753_v48, %v2752_v51 }
 0x293   : > { %v2414_v29 = vadd.f32 %v6028_v30, %v7664_v16  ;;  %v2405_v33 = vpop.f32.mrb[153].mxu0  ;;  %v2754_v30 = vld [vmem:[#allocation2 + $0xf0] sm:$0xff] }
 0x294   : > { %v2406_v4 = vadd.f32 %v2405_v33, %v7658_v54  ;;  %v6029_v28 = vpop.f32.mrb[154].mxu0  ;;  %3914 = vmatmul.mubr.bf16.gmra.mrb[148].mxu1 %v7740_v62  ;;  %v2690_v33 = vld [vmem:[#allocation2 + $0xda] sm:$0xff] }
 0x295   : > { %v2462_v0 = vmax.f32 %v2414_v29, 0.0  ;;  %v2417_v17 = vadd.f32 %v6029_v28, %v7666_v25  ;;  %v2408_v49 = vpop.f32.mrb[155].mxu0  ;;  %4067 = vmatmul.mubr.bf16.gmra.mrb[176].mxu0 %v7752_v42  ;;  %3921 = vmatprep.mubr.bf16.mxu1 %v7700_v31  ;;  %v7800_v29 = vpack.c.bf16 %v2755_v22, %v2754_v30  ;;  %v2800_v30 = vld [vmem:[#allocation2 + $0x19] sm:$0xff] }
 0x296   : > { %v2460_v16 = vmax.f32 %v2406_v4, 0.0  ;;  %v2409_v58 = vadd.f32 %v2408_v49, %v7660_v36  ;;  %4074 = vmatprep.mubr.bf16.mxu0 %v7756_v18  ;;  %v7768_v36 = vpack.c.bf16 %v2683_v19, %v2682_v27 }
 0x297   : > { %2538 = vst [vmem:[#allocation2 + $0x151] sm:$0xff] %v2462_v0  ;;  %v2463_v54 = vmax.f32 %v2417_v17, 0.0  ;;  %v2756_v28 = vld [vmem:[#allocation2 + $0x108] sm:$0xff] }
 0x298   : > { %2536 = vst [vmem:[#allocation2 + $0x139] sm:$0xff] %v2460_v16  ;;  %v2461_v63 = vmax.f32 %v2409_v58, 0.0  ;;  %v2692_v58 = vld [vmem:[#allocation2 + $0xf2] sm:$0xff]  ;;  %v2759_v27 = vld [vmem:[#allocation2 + $0x128] sm:$0xff] }
 0x299   : > { %2539 = vst [vmem:[#allocation2 + $0x159] sm:$0xff] %v2463_v54  ;;  %v7763_v14 = vpack.c.bf16 %v2463_v54, %v2462_v0  ;;  %v2757_v9 = vld [vmem:[#allocation2 + $0x110] sm:$0xff]  ;;  %v2693_v54 = vld [vmem:[#allocation2 + $0xfa] sm:$0xff] }
 0x29a   : > { %2537 = vst [vmem:[#allocation2 + $0x141] sm:$0xff] %v2461_v63  ;;  %v6032_v25 = vpop.f32.mrb[156].mxu0  ;;  %v7765_v55 = vpack.c.bf16 %v2461_v63, %v2460_v16  ;;  %v7808_v0 = vpack.c.bf16 %v2757_v9, %v2756_v28  ;;  %v7817_v52 = vpack.c.bf16 %v2693_v54, %v2692_v58  ;;  %v2993_v28 = vld [vmem:[#allocation2 + $0x31] sm:$0xff] }
 0x29b   : > { %v2430_v31 = vadd.f32 %v6032_v25, %v7676_v15  ;;  %v2421_v11 = vpop.f32.mrb[157].mxu0  ;;  %v2758_v25 = vld [vmem:[#allocation2 + $0x120] sm:$0xff]  ;;  %v2869_v58 = vld [vmem:[#allocation2 + $0x52] sm:$0xff] }
 0x29c   : > { %v2422_v57 = vadd.f32 %v2421_v11, %v7670_v10  ;;  %v6033_v38 = vpop.f32.mrb[158].mxu0  ;;  %3922 = vmatmul.mubr.bf16.gmra.mrb[152].mxu1 %v7756_v18  ;;  %v2695_v11 = vld [vmem:[#allocation2 + $0x112] sm:$0xff] }
 0x29d   : > { %v2466_v13 = vmax.f32 %v2430_v31, 0.0  ;;  %v2433_v61 = vadd.f32 %v6033_v38, %v7678_v23  ;;  %v2424_v37 = vpop.f32.mrb[159].mxu0  ;;  %4075 = vmatmul.mubr.bf16.gmra.mrb[180].mxu0 %v7768_v36  ;;  %3929 = vmatprep.mubr.bf16.mxu1 %v7717_v3  ;;  %v7784_v3 = vpack.c.bf16 %v2751_v1, %v2750_v21  ;;  %v7820_v31 = vpack.c.bf16 %v2759_v27, %v2758_v25  ;;  %v2996_v54 = vld [vmem:[#allocation2 + $0x51] sm:$0xff]  ;;  %v2995_v27 = vld [vmem:[#allocation2 + $0x49] sm:$0xff] }
 0x29e   : > { %v2464_v15 = vmax.f32 %v2422_v57, 0.0  ;;  %v2425_v56 = vadd.f32 %v2424_v37, %v7672_v47  ;;  %4082 = vmatprep.mubr.bf16.mxu0 %v7772_v53  ;;  %v2686_v47 = vld [vmem:[#allocation2 + $0xaa] sm:$0xff] }
 0x29f   : > { %2542 = vst [vmem:[#allocation2 + $0x181] sm:$0xff] %v2466_v13  ;;  %v2467_v10 = vmax.f32 %v2433_v61, 0.0  ;;  %v7789_v32 = vpack.c.bf16 %v2687_v59, %v2686_v47  ;;  %v2760_v38 = vld [vmem:[#allocation2 + $0x138] sm:$0xff]  ;;  %v2696_v61 = vld [vmem:[#allocation2 + $0x122] sm:$0xff] }
 0x2a0   : > { %2540 = vst [vmem:[#allocation2 + $0x169] sm:$0xff] %v2464_v15  ;;  %v2465_v35 = vmax.f32 %v2425_v56, 0.0  ;;  %v2763_v37 = vld [vmem:[#allocation2 + $0x158] sm:$0xff]  ;;  %v2762_v56 = vld [vmem:[#allocation2 + $0x150] sm:$0xff]  ;;  %v6298_v25 = vld [vmem:[#allocation9 + $0x218] sm:$0xff]  }
 0x2a1   : > { %2543 = vst [vmem:[#allocation2 + $0x189] sm:$0xff] %v2467_v10  ;;  %v2761_v26 = vld [vmem:[#allocation2 + $0x140] sm:$0xff]  ;;  %v7836_v10 = vpack.c.bf16 %v2763_v37, %v2762_v56  ;;  %v2700_v47 = vld [vmem:[#allocation2 + $0x152] sm:$0xff]  ;;  %v6302_v37 = vld [vmem:[#allocation9 + $0x238] sm:$0xff]  }
 0x2a2   : > { %2541 = vst [vmem:[#allocation2 + $0x171] sm:$0xff] %v2465_v35  ;;  %v7779_v23 = vpack.c.bf16 %v2465_v35, %v2464_v15  ;;  %v7828_v13 = vpack.c.bf16 %v2761_v26, %v2760_v38  ;;  %v2698_v35 = vld [vmem:[#allocation2 + $0x13a] sm:$0xff] }
 0x2a3   : > { %v6300_v26 = vld [vmem:[#allocation9 + $0x228] sm:$0xff]  }
 0x2a4   : > { %3930 = vmatmul.mubr.bf16.gmra.mrb[156].mxu1 %v7772_v53 }
 0x2a5   : > { %4083 = vmatmul.mubr.bf16.gmra.mrb[184].mxu0 %v7781_v8  ;;  %3937 = vmatprep.mubr.bf16.mxu1 %v7715_v39  ;;  %v2689_v39 = vld [vmem:[#allocation2 + $0xca] sm:$0xff] }
 0x2a6   : > { %4090 = vmatprep.mubr.bf16.mxu0 %v7784_v3  ;;  %v7797_v24 = vpack.c.bf16 %v2689_v39, %v2688_v40  ;;  %v2766_v51 = vld [vmem:[#allocation2 + $0x180] sm:$0xff] }
 0x2a7   : > { %v2764_v1 = vld [vmem:[#allocation2 + $0x168] sm:$0xff] }
 0x2a8   : > { %v2767_v59 = vld [vmem:[#allocation2 + $0x188] sm:$0xff] }
 0x2a9   : > { %v2765_v43 = vld [vmem:[#allocation2 + $0x170] sm:$0xff]  ;;  %v7852_v40 = vpack.c.bf16 %v2767_v59, %v2766_v51  ;;  %v2801_v39 = vld [vmem:[#allocation2 + $0x21] sm:$0xff] }
 0x2aa   : > { %v7844_v21 = vpack.c.bf16 %v2765_v43, %v2764_v1  ;;  %v2703_v22 = vld [vmem:[#allocation2 + $0x172] sm:$0xff]  ;;  %v3003_v43 = vld [vmem:[#allocation2 + $0xa9] sm:$0xff] }
 0x2ac   : > { %3938 = vmatmul.mubr.bf16.gmra.mrb[160].mxu1 %v7784_v3 }
 0x2ad   : > { %4091 = vmatmul.mubr.bf16.gmra.mrb[188].mxu0 %v7789_v32  ;;  %3945 = vmatprep.mubr.bf16.mxu1 %v7733_v60  ;;  %v2691_v60 = vld [vmem:[#allocation2 + $0xe2] sm:$0xff] }
 0x2ae   : > { %4098 = vmatprep.mubr.bf16.mxu0 %v7792_v44  ;;  %v7805_v4 = vpack.c.bf16 %v2691_v60, %v2690_v33  ;;  %v2994_v33 = vld [vmem:[#allocation2 + $0x39] sm:$0xff]  ;;  %v2832_v60 = vpack.c.bf16 %v2801_v39, %v2800_v30 }
 0x2b4   : > { %3946 = vmatmul.mubr.bf16.gmra.mrb[164].mxu1 %v7792_v44  ;;  %v5530_v17 = vpop.f32.mrb[128].mxu1 }
 0x2b5   : > { %4099 = vmatmul.mubr.bf16.gmra.mrb[192].mxu0 %v7797_v24  ;;  %3953 = vmatprep.mubr.bf16.mxu1 %v7731_v50  ;;  %v5531_v50 = vpop.f32.mrb[129].mxu1 }
 0x2b6   : > { %4106 = vmatprep.mubr.bf16.mxu0 %v7800_v29  ;;  %v7813_v49 = vadd.f32 %v5531_v50, %v5530_v17  ;;  %v5533_v16 = vpop.f32.mrb[130].mxu1  ;;  %v6296_v17 = vld [vmem:[#allocation9 + $0x208] sm:$0xff]   ;;  %v3025_v50 = vpack.c.bf16 %v2994_v33, %v2993_v28 }
 0x2b7   : > { %v5534_v63 = vpop.f32.mrb[131].mxu1  ;;  %v3018_v28 = vld [vmem:[#allocation2 + $0x159] sm:$0xff] }
 0x2b8   : > { %v7815_v19 = vadd.f32 %v5534_v63, %v5533_v16  ;;  %v2868_v16 = vld [vmem:[#allocation2 + $0x4a] sm:$0xff] }
 0x2b9   : > { %v2898_v63 = vpack.c.bf16 %v2869_v58, %v2868_v16  ;;  %v3017_v16 = vld [vmem:[#allocation2 + $0x151] sm:$0xff] }
 0x2bc   : > { %3954 = vmatmul.mubr.bf16.gmra.mrb[168].mxu1 %v7800_v29 }
 0x2bd   : > { %4107 = vmatmul.mubr.bf16.gmra.mrb[196].mxu0 %v7805_v4  ;;  %3961 = vmatprep.mubr.bf16.mxu1 %v7749_v20  ;;  %v2694_v20 = vld [vmem:[#allocation2 + $0x10a] sm:$0xff] }
 0x2be   : > { %4114 = vmatprep.mubr.bf16.mxu0 %v7808_v0  ;;  %v7825_v57 = vpack.c.bf16 %v2695_v11, %v2694_v20  ;;  %v3026_v20 = vpack.c.bf16 %v2996_v54, %v2995_v27  ;;  %v2997_v11 = vld [vmem:[#allocation2 + $0x61] sm:$0xff] }
 0x2c4   : > { %3962 = vmatmul.mubr.bf16.gmra.mrb[172].mxu1 %v7808_v0 }
 0x2c5   : > { %4115 = vmatmul.mubr.bf16.gmra.mrb[200].mxu0 %v7817_v52  ;;  %3969 = vmatprep.mubr.bf16.mxu1 %v7747_v7  ;;  %v2697_v7 = vld [vmem:[#allocation2 + $0x12a] sm:$0xff] }
 0x2c6   : > { %4122 = vmatprep.mubr.bf16.mxu0 %v7820_v31  ;;  %v7833_v15 = vpack.c.bf16 %v2697_v7, %v2696_v61  ;;  %v3000_v61 = vld [vmem:[#allocation2 + $0x81] sm:$0xff]  ;;  %v2999_v7 = vld [vmem:[#allocation2 + $0x79] sm:$0xff] }
 0x2c7   : > { %v3028_v56 = vpack.c.bf16 %v3000_v61, %v2999_v7  ;;  %v3019_v7 = vld [vmem:[#allocation2 + $0x169] sm:$0xff] }
 0x2cc   : > { %3970 = vmatmul.mubr.bf16.gmra.mrb[176].mxu1 %v7820_v31 }
 0x2cd   : > { %4123 = vmatmul.mubr.bf16.gmra.mrb[204].mxu0 %v7825_v57  ;;  %3977 = vmatprep.mubr.bf16.mxu1 %v7765_v55  ;;  %v2699_v55 = vld [vmem:[#allocation2 + $0x142] sm:$0xff] }
 0x2ce   : > { %4130 = vmatprep.mubr.bf16.mxu0 %v7828_v13  ;;  %v7841_v2 = vpack.c.bf16 %v2699_v55, %v2698_v35  ;;  %v3004_v55 = vld [vmem:[#allocation2 + $0xb1] sm:$0xff] }
 0x2cf   : > { %v3030_v1 = vpack.c.bf16 %v3004_v55, %v3003_v43  ;;  %v2895_v55 = vld [vmem:[#allocation2 + $0x18a] sm:$0xff] }
 0x2d4   : > { %3978 = vmatmul.mubr.bf16.gmra.mrb[180].mxu1 %v7828_v13 }
 0x2d5   : > { %4131 = vmatmul.mubr.bf16.gmra.mrb[208].mxu0 %v7833_v15  ;;  %3985 = vmatprep.mubr.bf16.mxu1 %v7763_v14  ;;  %v2701_v14 = vld [vmem:[#allocation2 + $0x15a] sm:$0xff] }
 0x2d6   : > { %4138 = vmatprep.mubr.bf16.mxu0 %v7836_v10  ;;  %v7849_v48 = vpack.c.bf16 %v2701_v14, %v2700_v47 }
 0x2dc   : > { %3986 = vmatmul.mubr.bf16.gmra.mrb[184].mxu1 %v7836_v10 }
 0x2dd   : > { %4139 = vmatmul.mubr.bf16.gmra.mrb[212].mxu0 %v7841_v2  ;;  %3993 = vmatprep.mubr.bf16.mxu1 %v7779_v23  ;;  %v2702_v23 = vld [vmem:[#allocation2 + $0x16a] sm:$0xff] }
 0x2de   : > { %4146 = vmatprep.mubr.bf16.mxu0 %v7844_v21  ;;  %v7857_v9 = vpack.c.bf16 %v2703_v22, %v2702_v23 }
 0x2e4   : > { %3994 = vmatmul.mubr.bf16.gmra.mrb[188].mxu1 %v7844_v21 }
 0x2e5   : > { %4147 = vmatmul.mubr.bf16.gmra.mrb[216].mxu0 %v7849_v48  ;;  %4195 = vmatprep.mubr.bf16.mxu1 %v7705_v6  ;;  %v6297_v6 = vld [vmem:[#allocation9 + $0x210] sm:$0xff]  }
 0x2e6   : > { %4154 = vmatprep.mubr.bf16.mxu0 %v7852_v40 }
 0x2ec   : > { %4196 = vmatmul.mubr.bf16.vlgmr.msra.gmra.mrb[192].mxu1 %v2832_v60 }
 0x2ed   : > { %4155 = vmatmul.mubr.bf16.gmra.mrb[220].mxu0 %v7857_v9  ;;  %4203 = vmatprep.mubr.bf16.mxu1 %v7720_v5  ;;  %v6299_v5 = vld [vmem:[#allocation9 + $0x220] sm:$0xff]  }
 0x2ee   : > { %4356 = vmatprep.mubr.bf16.mxu0 %v3025_v50  ;;  %6035 = vmatpush3.bf16.msra.mxu1 %v7687_v12  ;;  %v2998_v12 = vld [vmem:[#allocation2 + $0x69] sm:$0xff] }
 0x2ef   : > { %6036 = vmatprep.subr.bf16.mxu1 %v6296_v17  ;;  %v3027_v38 = vpack.c.bf16 %v2998_v12, %v2997_v11  ;;  %v3020_v11 = vld [vmem:[#allocation2 + $0x171] sm:$0xff] }
 0x2f2   : > { %6037 = vmatpush3.bf16.msra.mxu1 %v6296_v17 }
 0x2f3   : > { %6038 = vmatprep.subr.bf16.mxu1 %v6297_v6 }
 0x2f4   : > { %4204 = vmatmul.mubr.bf16.gmra.mrb[196].mxu1 %v3025_v50 }
 0x2f5   : > { %4357 = vmatmul.mubr.bf16.vlgmr.msra.gmra.mrb[224].mxu0 %v7695_v45  ;;  %4211 = vmatprep.mubr.bf16.mxu1 %v2898_v63  ;;  %v6301_v45 = vld [vmem:[#allocation9 + $0x230] sm:$0xff]  }
 0x2f6   : > { %4364 = vmatprep.mubr.bf16.mxu0 %v3026_v20  ;;  %6039 = vmatpush3.bf16.msra.mxu1 %v6297_v6 }
 0x2f7   : > { %6040 = vmatprep.subr.bf16.mxu1 %v6298_v25 }
 0x2fa   : > { %6041 = vmatpush3.bf16.msra.mxu1 %v6298_v25 }
 0x2fb   : > { %6042 = vmatprep.subr.bf16.mxu1 %v6299_v5 }
 0x2fc   : > { %4212 = vmatmul.mubr.bf16.gmra.mrb[200].mxu1 %v3026_v20 }
 0x2fd   : > { %4365 = vmatmul.mubr.bf16.gmra.mrb[228].mxu0 %v7709_v46  ;;  %4219 = vmatprep.mubr.bf16.mxu1 %v7752_v42  ;;  %v3002_v46 = vld [vmem:[#allocation2 + $0x99] sm:$0xff]  ;;  %v3001_v42 = vld [vmem:[#allocation2 + $0x91] sm:$0xff] }
 0x2fe   : > { %4372 = vmatprep.mubr.bf16.mxu0 %v3027_v38  ;;  %6043 = vmatpush3.bf16.msra.mxu1 %v6299_v5  ;;  %v3029_v35 = vpack.c.bf16 %v3002_v46, %v3001_v42 }
 0x2ff   : > { %6044 = vmatprep.subr.bf16.mxu1 %v6300_v26 }
 0x302   : > { %6045 = vmatpush3.bf16.msra.mxu1 %v6300_v26 }
 0x303   : > { %6046 = vmatprep.subr.bf16.mxu1 %v6301_v45 }
 0x304   : > { %4220 = vmatmul.mubr.bf16.gmra.mrb[204].mxu1 %v3027_v38 }
 0x305   : > { %4373 = vmatmul.mubr.bf16.gmra.mrb[232].mxu0 %v7724_v34  ;;  %4227 = vmatprep.mubr.bf16.mxu1 %v7768_v36  ;;  %v3006_v34 = vld [vmem:[#allocation2 + $0xc9] sm:$0xff]  ;;  %v3005_v36 = vld [vmem:[#allocation2 + $0xc1] sm:$0xff] }
 0x306   : > { %4380 = vmatprep.mubr.bf16.mxu0 %v3028_v56  ;;  %6047 = vmatpush3.bf16.msra.mxu1 %v6301_v45  ;;  %v3031_v47 = vpack.c.bf16 %v3006_v34, %v3005_v36  ;;  %v3022_v36 = vld [vmem:[#allocation2 + $0x189] sm:$0xff] }
 0x307   : > { %6048 = vmatprep.subr.bf16.mxu1 %v6302_v37 }
 0x30a   : > { %6049 = vmatpush3.bf16.msra.mxu1 %v6302_v37 }
 0x30c   : > { %4228 = vmatmul.mubr.bf16.gmra.mrb[208].mxu1 %v3028_v56 }
 0x30d   : > { %4381 = vmatmul.mubr.bf16.gmra.mrb[236].mxu0 %v7740_v62  ;;  %4235 = vmatprep.mubr.bf16.mxu1 %v7781_v8  ;;  %v3008_v62 = vld [vmem:[#allocation2 + $0xe1] sm:$0xff]  ;;  %v3007_v8 = vld [vmem:[#allocation2 + $0xd9] sm:$0xff] }
 0x30e   : > { %4388 = vmatprep.mubr.bf16.mxu0 %v3029_v35  ;;  %v3032_v14 = vpack.c.bf16 %v3008_v62, %v3007_v8 }
 0x314   : > { %4236 = vmatmul.mubr.bf16.gmra.mrb[212].mxu1 %v3029_v35  ;;  %v2894_v35 = vld [vmem:[#allocation2 + $0x182] sm:$0xff] }
 0x315   : > { %4389 = vmatmul.mubr.bf16.gmra.mrb[240].mxu0 %v7756_v18  ;;  %4243 = vmatprep.mubr.bf16.mxu1 %v7789_v32  ;;  %v3010_v18 = vld [vmem:[#allocation2 + $0xf9] sm:$0xff]  ;;  %v3009_v32 = vld [vmem:[#allocation2 + $0xf1] sm:$0xff] }
 0x316   : > { %4396 = vmatprep.mubr.bf16.mxu0 %v3030_v1  ;;  %v3033_v59 = vpack.c.bf16 %v3010_v18, %v3009_v32 }
 0x31c   : > { %4244 = vmatmul.mubr.bf16.gmra.mrb[216].mxu1 %v3030_v1 }
 0x31d   : > { %4397 = vmatmul.mubr.bf16.gmra.mrb[244].mxu0 %v7772_v53  ;;  %4251 = vmatprep.mubr.bf16.mxu1 %v7797_v24  ;;  %v3012_v53 = vld [vmem:[#allocation2 + $0x111] sm:$0xff]  ;;  %v3011_v24 = vld [vmem:[#allocation2 + $0x109] sm:$0xff] }
 0x31e   : > { %4404 = vmatprep.mubr.bf16.mxu0 %v3031_v47  ;;  %v3034_v51 = vpack.c.bf16 %v3012_v53, %v3011_v24 }
 0x324   : > { %4252 = vmatmul.mubr.bf16.gmra.mrb[220].mxu1 %v3031_v47 }
 0x325   : > { %4405 = vmatmul.mubr.bf16.gmra.mrb[248].mxu0 %v7784_v3  ;;  %4259 = vmatprep.mubr.bf16.mxu1 %v7805_v4  ;;  %v3014_v3 = vld [vmem:[#allocation2 + $0x129] sm:$0xff]  ;;  %v3013_v4 = vld [vmem:[#allocation2 + $0x121] sm:$0xff] }
 0x326   : > { %4412 = vmatprep.mubr.bf16.mxu0 %v3032_v14  ;;  %v3035_v39 = vpack.c.bf16 %v3014_v3, %v3013_v4  ;;  %v3023_v3 = vld [vmem:[#allocation2 + $0x199] sm:$0xff]  ;;  %v3024_v4 = vld [vmem:[#allocation2 + $0x1a1] sm:$0xff] }
 0x32c   : > { %4260 = vmatmul.mubr.bf16.gmra.mrb[224].mxu1 %v3032_v14 }
 0x32d   : > { %4413 = vmatmul.mubr.bf16.gmra.mrb[252].mxu0 %v7792_v44  ;;  %4267 = vmatprep.mubr.bf16.mxu1 %v7817_v52  ;;  %v3016_v44 = vld [vmem:[#allocation2 + $0x141] sm:$0xff]  ;;  %v3015_v52 = vld [vmem:[#allocation2 + $0x139] sm:$0xff] }
 0x32e   : > { %4420 = vmatprep.mubr.bf16.mxu0 %v3033_v59  ;;  %v3036_v23 = vpack.c.bf16 %v3016_v44, %v3015_v52  ;;  %v3057_v52 = vld [vmem:[#allocation2 + $0x32] sm:$0xff] }
 0x334   : > { %4268 = vmatmul.mubr.bf16.gmra.mrb[228].mxu1 %v3033_v59 }
 0x335   : > { %4421 = vmatmul.mubr.bf16.gmra.mrb[0].mxu0 %v7800_v29  ;;  %4275 = vmatprep.mubr.bf16.mxu1 %v7825_v57 }
 0x336   : > { %4428 = vmatprep.mubr.bf16.mxu0 %v3034_v51 }
 0x33c   : > { %4276 = vmatmul.mubr.bf16.gmra.mrb[232].mxu1 %v3034_v51 }
 0x33d   : > { %4429 = vmatmul.mubr.bf16.gmra.mrb[4].mxu0 %v7808_v0  ;;  %4283 = vmatprep.mubr.bf16.mxu1 %v7833_v15 }
 0x33e   : > { %4436 = vmatprep.mubr.bf16.mxu0 %v3035_v39 }
 0x344   : > { %4284 = vmatmul.mubr.bf16.gmra.mrb[236].mxu1 %v3035_v39 }
 0x345   : > { %4437 = vmatmul.mubr.bf16.gmra.mrb[8].mxu0 %v7820_v31  ;;  %4291 = vmatprep.mubr.bf16.mxu1 %v7841_v2  ;;  %v3037_v2 = vpack.c.bf16 %v3018_v28, %v3017_v16  ;;  %v3040_v28 = vpack.c.bf16 %v3024_v4, %v3023_v3  ;;  %v2959_v16 = vld [vmem:[#allocation2 + $0x198] sm:$0xff] }
 0x346   : > { %4444 = vmatprep.mubr.bf16.mxu0 %v3036_v23 }
 0x347   : > { %v5536_v29 = vpop.f32.mrb[132].mxu1 }
 0x348   : > { %v5642_v57 = vpop.f32.mrb[160].mxu0  ;;  %v5537_v22 = vpop.f32.mrb[133].mxu1 }
 0x349   : > { %v5538_v30 = vadd.f32 %v5537_v22, %v5536_v29  ;;  %v5643_v33 = vpop.f32.mrb[161].mxu0  ;;  %v5539_v60 = vpop.f32.mrb[134].mxu1 }
 0x34a   : > { %v5644_v0 = vadd.f32 %v5643_v33, %v5642_v57  ;;  %v5645_v17 = vpop.f32.mrb[162].mxu0  ;;  %v5540_v15 = vpop.f32.mrb[135].mxu1 }
 0x34b   : > { %v5541_v50 = vadd.f32 %v5540_v15, %v5539_v60  ;;  %v5646_v6 = vpop.f32.mrb[163].mxu0 }
 0x34c   : > { %v7884_v58 = vadd.f32 %v5644_v0, %v7813_v49  ;;  %v5647_v31 = vadd.f32 %v5646_v6, %v5645_v17  ;;  %4292 = vmatmul.mubr.bf16.gmra.mrb[240].mxu1 %v3036_v23  ;;  %v3058_v23 = vld [vmem:[#allocation2 + $0x3a] sm:$0xff] }
 0x34d   : > { %4445 = vmatmul.mubr.bf16.gmra.mrb[12].mxu0 %v7828_v13  ;;  %4299 = vmatprep.mubr.bf16.mxu1 %v7849_v48  ;;  %v3089_v17 = vpack.c.bf16 %v3058_v23, %v3057_v52  ;;  %v3068_v52 = vld [vmem:[#allocation2 + $0xb2] sm:$0xff] }
 0x34e   : > { %v7889_v54 = vadd.f32 %v5647_v31, %v7815_v19  ;;  %4452 = vmatprep.mubr.bf16.mxu0 %v3037_v2  ;;  %v3038_v19 = vpack.c.bf16 %v3020_v11, %v3019_v7  ;;  %v6304_v11 = vld [vmem:[#allocation2 + $0x8] sm:$0xff] }
 0x34f   : > { %v5542_v63 = vpop.f32.mrb[136].mxu1 }
 0x350   : > { %v5648_v27 = vpop.f32.mrb[164].mxu0  ;;  %v5543_v25 = vpop.f32.mrb[137].mxu1 }
 0x351   : > { %v5544_v20 = vadd.f32 %v5543_v25, %v5542_v63  ;;  %v5649_v5 = vpop.f32.mrb[165].mxu0  ;;  %v5545_v12 = vpop.f32.mrb[138].mxu1  ;;  %v3062_v25 = vld [vmem:[#allocation2 + $0x6a] sm:$0xff] }
 0x352   : > { %v5650_v49 = vadd.f32 %v5649_v5, %v5648_v27  ;;  %v5651_v26 = vpop.f32.mrb[166].mxu0  ;;  %v5546_v38 = vpop.f32.mrb[139].mxu1  ;;  %v3061_v27 = vld [vmem:[#allocation2 + $0x62] sm:$0xff] }
 0x353   : > { %v5547_v45 = vadd.f32 %v5546_v38, %v5545_v12  ;;  %v5652_v61 = vpop.f32.mrb[167].mxu0  ;;  %v3091_v7 = vpack.c.bf16 %v3062_v25, %v3061_v27 }
 0x354   : > { %v7891_v13 = vadd.f32 %v5650_v49, %v5538_v30  ;;  %v5653_v48 = vadd.f32 %v5652_v61, %v5651_v26  ;;  %4300 = vmatmul.mubr.bf16.gmra.mrb[244].mxu1 %v3037_v2  ;;  %v2976_v49 = vpack.c.bf16 %v6304_v11, %v2959_v16 }
 0x355   : > { %4453 = vmatmul.mubr.bf16.gmra.mrb[16].mxu0 %v7836_v10  ;;  %4307 = vmatprep.mubr.bf16.mxu1 %v7857_v9  ;;  %v7897_v10 = vpack.c.bf16 %v2895_v55, %v2894_v35  ;;  %v3021_v9 = vld [vmem:[#allocation2 + $0x181] sm:$0xff] }
 0x356   : > { %v7895_v37 = vadd.f32 %v5653_v48, %v5541_v50  ;;  %4460 = vmatprep.mubr.bf16.mxu0 %v3038_v19  ;;  %v3039_v53 = vpack.c.bf16 %v3022_v36, %v3021_v9  ;;  %v3064_v35 = vld [vmem:[#allocation2 + $0x82] sm:$0xff] }
 0x357   : > { %v5548_v56 = vpop.f32.mrb[140].mxu1 }
 0x358   : > { %v5654_v46 = vpop.f32.mrb[168].mxu0  ;;  %v5549_v42 = vpop.f32.mrb[141].mxu1 }
 0x359   : > { %v5550_v43 = vadd.f32 %v5549_v42, %v5548_v56  ;;  %v5655_v1 = vpop.f32.mrb[169].mxu0  ;;  %v5551_v34 = vpop.f32.mrb[142].mxu1  ;;  %v3063_v42 = vld [vmem:[#allocation2 + $0x7a] sm:$0xff] }
 0x35a   : > { %v5656_v47 = vadd.f32 %v5655_v1, %v5654_v46  ;;  %v5657_v62 = vpop.f32.mrb[170].mxu0  ;;  %v5552_v8 = vpop.f32.mrb[143].mxu1  ;;  %v3065_v1 = vld [vmem:[#allocation2 + $0x92] sm:$0xff]  ;;  %v3092_v9 = vpack.c.bf16 %v3064_v35, %v3063_v42 }
 0x35b   : > { %v5553_v14 = vadd.f32 %v5552_v8, %v5551_v34  ;;  %v5658_v18 = vpop.f32.mrb[171].mxu0  ;;  %v3066_v34 = vld [vmem:[#allocation2 + $0x9a] sm:$0xff] }
 0x35c   : > { %v7899_v32 = vadd.f32 %v5656_v47, %v5544_v20  ;;  %v5659_v59 = vadd.f32 %v5658_v18, %v5657_v62  ;;  %4308 = vmatmul.mubr.bf16.gmra.mrb[248].mxu1 %v3038_v19 }
 0x35d   : > { %4461 = vmatmul.mubr.bf16.gmra.mrb[20].mxu0 %v7844_v21  ;;  %4315 = vmatprep.mubr.bf16.mxu1 %v7897_v10 }
 0x35e   : > { %v7903_v24 = vadd.f32 %v5659_v59, %v5547_v45  ;;  %4468 = vmatprep.mubr.bf16.mxu0 %v3039_v53 }
 0x35f   : > { %v5554_v51 = vpop.f32.mrb[144].mxu1 }
 0x360   : > { %v5660_v39 = vpop.f32.mrb[172].mxu0  ;;  %v5555_v44 = vpop.f32.mrb[145].mxu1 }
 0x361   : > { %v5556_v29 = vadd.f32 %v5555_v44, %v5554_v51  ;;  %v5661_v57 = vpop.f32.mrb[173].mxu0  ;;  %v5557_v22 = vpop.f32.mrb[146].mxu1  ;;  %v3067_v44 = vld [vmem:[#allocation2 + $0xaa] sm:$0xff] }
 0x362   : > { %v5662_v30 = vadd.f32 %v5661_v57, %v5660_v39  ;;  %v5663_v33 = vpop.f32.mrb[174].mxu0  ;;  %v5558_v60 = vpop.f32.mrb[147].mxu1  ;;  %v3069_v57 = vld [vmem:[#allocation2 + $0xc2] sm:$0xff] }
 0x363   : > { %v5559_v21 = vadd.f32 %v5558_v60, %v5557_v22  ;;  %v5664_v0 = vpop.f32.mrb[175].mxu0  ;;  %v3070_v22 = vld [vmem:[#allocation2 + $0xca] sm:$0xff] }
 0x364   : > { %v7905_v15 = vadd.f32 %v5662_v30, %v5550_v43  ;;  %v5665_v50 = vadd.f32 %v5664_v0, %v5663_v33  ;;  %4316 = vmatmul.mubr.bf16.gmra.mrb[252].mxu1 %v3039_v53  ;;  %v3093_v53 = vpack.c.bf16 %v3066_v34, %v3065_v1 }
 0x365   : > { %4469 = vmatmul.mubr.bf16.gmra.mrb[24].mxu0 %v7852_v40  ;;  %6050 = vmatprep.mubr.bf16.mxu1 %v3089_v17  ;;  %v3094_v17 = vpack.c.bf16 %v3068_v52, %v3067_v44 }
 0x366   : > { %v7908_v6 = vadd.f32 %v5665_v50, %v5553_v14  ;;  %4476 = vmatprep.mubr.bf16.mxu0 %v3040_v28 }
 0x367   : > { %v5560_v31 = vpop.f32.mrb[148].mxu1 }
 0x368   : > { %v5666_v2 = vpop.f32.mrb[176].mxu0  ;;  %v5561_v63 = vpop.f32.mrb[149].mxu1 }
 0x369   : > { %v5562_v20 = vadd.f32 %v5561_v63, %v5560_v31  ;;  %v5667_v5 = vpop.f32.mrb[177].mxu0  ;;  %v5563_v12 = vpop.f32.mrb[150].mxu1  ;;  %v3095_v31 = vpack.c.bf16 %v3070_v22, %v3069_v57 }
 0x36a   : > { %v5668_v26 = vadd.f32 %v5667_v5, %v5666_v2  ;;  %v5669_v38 = vpop.f32.mrb[178].mxu0  ;;  %v5564_v45 = vpop.f32.mrb[151].mxu1  ;;  %v3072_v5 = vld [vmem:[#allocation2 + $0xe2] sm:$0xff] }
 0x36b   : > { %v5565_v61 = vadd.f32 %v5564_v45, %v5563_v12  ;;  %v5670_v40 = vpop.f32.mrb[179].mxu0 }
 0x36c   : > { %v7910_v48 = vadd.f32 %v5668_v26, %v5556_v29  ;;  %v5671_v19 = vadd.f32 %v5670_v40, %v5669_v38  ;;  %6051 = vmatmul.mubr.bf16.vlgmr.msra.gmra.mrb[0].mxu1 %v7735_v41  ;;  %v3074_v26 = vld [vmem:[#allocation2 + $0xfa] sm:$0xff] }
 0x36d   : > { %4477 = vmatmul.mubr.bf16.gmra.mrb[28].mxu0 %v2976_v49  ;;  %6054 = vmatprep.mubr.bf16.mxu1 %v3091_v7  ;;  %v3073_v49 = vld [vmem:[#allocation2 + $0xf2] sm:$0xff] }
 0x36e   : > { %v7913_v56 = vadd.f32 %v5671_v19, %v5559_v21 }
 0x36f   : > { %v5566_v46 = vpop.f32.mrb[152].mxu1 }
 0x370   : > { %v5672_v55 = vpop.f32.mrb[180].mxu0  ;;  %v5567_v43 = vpop.f32.mrb[153].mxu1 }
 0x371   : > { %v5568_v36 = vadd.f32 %v5567_v43, %v5566_v46  ;;  %v5673_v47 = vpop.f32.mrb[181].mxu0  ;;  %v5569_v62 = vpop.f32.mrb[154].mxu1 }
 0x372   : > { %v5674_v8 = vadd.f32 %v5673_v47, %v5672_v55  ;;  %v5675_v14 = vpop.f32.mrb[182].mxu0  ;;  %v5570_v18 = vpop.f32.mrb[155].mxu1  ;;  %v3097_v55 = vpack.c.bf16 %v3074_v26, %v3073_v49  ;;  %v3075_v47 = vld [vmem:[#allocation2 + $0x10a] sm:$0xff] }
 0x373   : > { %v5571_v59 = vadd.f32 %v5570_v18, %v5569_v62  ;;  %v5676_v41 = vpop.f32.mrb[183].mxu0  ;;  %v3076_v62 = vld [vmem:[#allocation2 + $0x112] sm:$0xff]  ;;  %v3077_v18 = vld [vmem:[#allocation2 + $0x122] sm:$0xff] }
 0x374   : > { %v7915_v51 = vadd.f32 %v5674_v8, %v5562_v20  ;;  %v5677_v3 = vadd.f32 %v5676_v41, %v5675_v14  ;;  %6055 = vmatmul.mubr.bf16.gmra.mrb[4].mxu1 %v3092_v9  ;;  %v3071_v20 = vld [vmem:[#allocation2 + $0xda] sm:$0xff]  ;;  %v3078_v9 = vld [vmem:[#allocation2 + $0x12a] sm:$0xff]  ;;  %v3098_v52 = vpack.c.bf16 %v3076_v62, %v3075_v47 }
 0x375   : > { %6058 = vmatprep.mubr.bf16.mxu1 %v3093_v53  ;;  %v3096_v46 = vpack.c.bf16 %v3072_v5, %v3071_v20  ;;  %v3099_v57 = vpack.c.bf16 %v3078_v9, %v3077_v18 }
 0x376   : > { %v7917_v4 = vadd.f32 %v5677_v3, %v5565_v61 }
 0x377   : > { %v5572_v39 = vpop.f32.mrb[156].mxu1 }
 0x378   : > { %v5678_v23 = vpop.f32.mrb[184].mxu0  ;;  %v5573_v29 = vpop.f32.mrb[157].mxu1 }
 0x379   : > { %v5574_v30 = vadd.f32 %v5573_v29, %v5572_v39  ;;  %v5679_v33 = vpop.f32.mrb[185].mxu0  ;;  %v5575_v60 = vpop.f32.mrb[158].mxu1 }
 0x37a   : > { %v5680_v28 = vadd.f32 %v5679_v33, %v5678_v23  ;;  %v5681_v21 = vpop.f32.mrb[186].mxu0  ;;  %v5576_v0 = vpop.f32.mrb[159].mxu1 }
 0x37b   : > { %v5577_v50 = vadd.f32 %v5576_v0, %v5575_v60  ;;  %v5682_v16 = vpop.f32.mrb[187].mxu0 }
 0x37c   : > { %v7919_v2 = vadd.f32 %v5680_v28, %v5568_v36  ;;  %v5683_v63 = vadd.f32 %v5682_v16, %v5681_v21  ;;  %6059 = vmatmul.mubr.bf16.gmra.mrb[8].mxu1 %v3094_v17  ;;  %v3079_v28 = vld [vmem:[#allocation2 + $0x13a] sm:$0xff]  ;;  %v3080_v21 = vld [vmem:[#allocation2 + $0x142] sm:$0xff] }
 0x37d   : > { %6062 = vmatprep.mubr.bf16.mxu1 %v3095_v31  ;;  %v3082_v16 = vld [vmem:[#allocation2 + $0x15a] sm:$0xff] }
 0x37e   : > { %v7921_v27 = vadd.f32 %v5683_v63, %v5571_v59 }
 0x37f   : > { %v5578_v25 = vpop.f32.mrb[160].mxu1 }
 0x380   : > { %v5684_v12 = vpop.f32.mrb[188].mxu0  ;;  %v5579_v11 = vpop.f32.mrb[161].mxu1 }
 0x381   : > { %v5580_v38 = vadd.f32 %v5579_v11, %v5578_v25  ;;  %v5685_v45 = vpop.f32.mrb[189].mxu0  ;;  %v5581_v61 = vpop.f32.mrb[162].mxu1  ;;  %v3100_v11 = vpack.c.bf16 %v3080_v21, %v3079_v28 }
 0x382   : > { %v5686_v40 = vadd.f32 %v5685_v45, %v5684_v12  ;;  %v5687_v7 = vpop.f32.mrb[190].mxu0  ;;  %v5582_v19 = vpop.f32.mrb[163].mxu1 }
 0x383   : > { %v5583_v42 = vadd.f32 %v5582_v19, %v5581_v61  ;;  %v5688_v35 = vpop.f32.mrb[191].mxu0  ;;  %v3083_v19 = vld [vmem:[#allocation2 + $0x16a] sm:$0xff] }
 0x384   : > { %v7923_v43 = vadd.f32 %v5686_v40, %v5574_v30  ;;  %v5689_v1 = vadd.f32 %v5688_v35, %v5687_v7  ;;  %6063 = vmatmul.mubr.bf16.gmra.mrb[12].mxu1 %v3096_v46  ;;  %v3084_v46 = vld [vmem:[#allocation2 + $0x172] sm:$0xff] }
 0x385   : > { %6066 = vmatprep.mubr.bf16.mxu1 %v3097_v55 }
 0x386   : > { %v7925_v34 = vadd.f32 %v5689_v1, %v5577_v50  ;;  %v3081_v50 = vld [vmem:[#allocation2 + $0x152] sm:$0xff] }
 0x387   : > { %v5584_v36 = vpop.f32.mrb[164].mxu1 }
 0x388   : > { %v5690_v8 = vpop.f32.mrb[192].mxu0  ;;  %v5585_v14 = vpop.f32.mrb[165].mxu1 }
 0x389   : > { %v5586_v59 = vadd.f32 %v5585_v14, %v5584_v36  ;;  %v5691_v41 = vpop.f32.mrb[193].mxu0  ;;  %v5587_v53 = vpop.f32.mrb[166].mxu1  ;;  %v3102_v14 = vpack.c.bf16 %v3084_v46, %v3083_v19 }
 0x38a   : > { %v5692_v3 = vadd.f32 %v5691_v41, %v5690_v8  ;;  %v5693_v39 = vpop.f32.mrb[194].mxu0  ;;  %v5588_v44 = vpop.f32.mrb[167].mxu1 }
 0x38b   : > { %v5589_v23 = vadd.f32 %v5588_v44, %v5587_v53  ;;  %v5694_v29 = vpop.f32.mrb[195].mxu0  ;;  %v3087_v53 = vld [vmem:[#allocation2 + $0x19a] sm:$0xff] }
 0x38c   : > { %v7927_v22 = vadd.f32 %v5692_v3, %v5580_v38  ;;  %v5695_v30 = vadd.f32 %v5694_v29, %v5693_v39  ;;  %6067 = vmatmul.mubr.bf16.gmra.mrb[16].mxu1 %v3098_v52  ;;  %v3101_v38 = vpack.c.bf16 %v3082_v16, %v3081_v50  ;;  %v3088_v3 = vld [vmem:[#allocation2 + $0x1a2] sm:$0xff] }
 0x38d   : > { %6070 = vmatprep.mubr.bf16.mxu1 %v3099_v57  ;;  %v3104_v29 = vpack.c.bf16 %v3088_v3, %v3087_v53 }
 0x38e   : > { %v7929_v33 = vadd.f32 %v5695_v30, %v5583_v42 }
 0x38f   : > { %v5590_v60 = vpop.f32.mrb[168].mxu1 }
 0x390   : > { %v5696_v0 = vpop.f32.mrb[196].mxu0  ;;  %v5591_v17 = vpop.f32.mrb[169].mxu1 }
 0x391   : > { %v5592_v31 = vadd.f32 %v5591_v17, %v5590_v60  ;;  %v5697_v63 = vpop.f32.mrb[197].mxu0  ;;  %v5593_v25 = vpop.f32.mrb[170].mxu1 }
 0x392   : > { %v5698_v20 = vadd.f32 %v5697_v63, %v5696_v0  ;;  %v5699_v5 = vpop.f32.mrb[198].mxu0  ;;  %v5594_v12 = vpop.f32.mrb[171].mxu1 }
 0x393   : > { %v5595_v49 = vadd.f32 %v5594_v12, %v5593_v25  ;;  %v5700_v26 = vpop.f32.mrb[199].mxu0 }
 0x394   : > { %v7931_v45 = vadd.f32 %v5698_v20, %v5586_v59  ;;  %v5701_v61 = vadd.f32 %v5700_v26, %v5699_v5  ;;  %6071 = vmatmul.mubr.bf16.gmra.mrb[20].mxu1 %v3100_v11 }
 0x395   : > { %6074 = vmatprep.mubr.bf16.mxu1 %v3101_v38 }
 0x396   : > { %v7933_v40 = vadd.f32 %v5701_v61, %v5589_v23 }
 0x397   : > { %v5596_v7 = vpop.f32.mrb[172].mxu1 }
 0x398   : > { %v5702_v42 = vpop.f32.mrb[200].mxu0  ;;  %v5597_v35 = vpop.f32.mrb[173].mxu1 }
 0x399   : > { %v5598_v55 = vadd.f32 %v5597_v35, %v5596_v7  ;;  %v5703_v1 = vpop.f32.mrb[201].mxu0  ;;  %v5599_v36 = vpop.f32.mrb[174].mxu1 }
 0x39a   : > { %v5704_v47 = vadd.f32 %v5703_v1, %v5702_v42  ;;  %v5705_v62 = vpop.f32.mrb[202].mxu0  ;;  %v5600_v8 = vpop.f32.mrb[175].mxu1 }
 0x39b   : > { %v5601_v18 = vadd.f32 %v5600_v8, %v5599_v36  ;;  %v5706_v9 = vpop.f32.mrb[203].mxu0 }
 0x39c   : > { %v7935_v59 = vadd.f32 %v5704_v47, %v5592_v31  ;;  %v5707_v41 = vadd.f32 %v5706_v9, %v5705_v62  ;;  %6075 = vmatmul.mubr.bf16.gmra.mrb[24].mxu1 %v3102_v14 }
 0x39d   : > { %6078 = vmatprep.mubr.bf16.mxu1 %v7897_v10 }
 0x39e   : > { %v7938_v39 = vadd.f32 %v5707_v41, %v5595_v49 }
 0x39f   : > { %v5602_v44 = vpop.f32.mrb[176].mxu1 }
 0x3a0   : > { %v5708_v52 = vpop.f32.mrb[204].mxu0  ;;  %v5603_v23 = vpop.f32.mrb[177].mxu1 }
 0x3a1   : > { %v5604_v57 = vadd.f32 %v5603_v23, %v5602_v44  ;;  %v5709_v30 = vpop.f32.mrb[205].mxu0  ;;  %v5605_v60 = vpop.f32.mrb[178].mxu1 }
 0x3a2   : > { %v5710_v28 = vadd.f32 %v5709_v30, %v5708_v52  ;;  %v5711_v21 = vpop.f32.mrb[206].mxu0  ;;  %v5606_v0 = vpop.f32.mrb[179].mxu1 }
 0x3a3   : > { %v5607_v17 = vadd.f32 %v5606_v0, %v5605_v60  ;;  %v5712_v50 = vpop.f32.mrb[207].mxu0 }
 0x3a4   : > { %v7940_v16 = vadd.f32 %v5710_v28, %v5598_v55  ;;  %v5713_v31 = vadd.f32 %v5712_v50, %v5711_v21  ;;  %6079 = vmatmul.mubr.bf16.gmra.mrb[28].mxu1 %v3104_v29 }
 0x3a6   : > { %v7942_v10 = vadd.f32 %v5713_v31, %v5601_v18 }
 0x3a7   : > { %v5608_v63 = vpop.f32.mrb[180].mxu1 }
 0x3a8   : > { %v5714_v25 = vpop.f32.mrb[208].mxu0  ;;  %v5609_v20 = vpop.f32.mrb[181].mxu1 }
 0x3a9   : > { %v5610_v5 = vadd.f32 %v5609_v20, %v5608_v63  ;;  %v5715_v12 = vpop.f32.mrb[209].mxu0  ;;  %v5611_v11 = vpop.f32.mrb[182].mxu1 }
 0x3aa   : > { %v5716_v49 = vadd.f32 %v5715_v12, %v5714_v25  ;;  %v5717_v26 = vpop.f32.mrb[210].mxu0  ;;  %v5612_v38 = vpop.f32.mrb[183].mxu1 }
 0x3ab   : > { %v5613_v61 = vadd.f32 %v5612_v38, %v5611_v11  ;;  %v5718_v7 = vpop.f32.mrb[211].mxu0 }
 0x3ac   : > { %v7944_v19 = vadd.f32 %v5716_v49, %v5604_v57  ;;  %v5719_v46 = vadd.f32 %v5718_v7, %v5717_v26 }
 0x3ae   : > { %v7946_v42 = vadd.f32 %v5719_v46, %v5607_v17 }
 0x3af   : > { %v5614_v35 = vpop.f32.mrb[184].mxu1 }
 0x3b0   : > { %v5720_v55 = vpop.f32.mrb[212].mxu0  ;;  %v5615_v1 = vpop.f32.mrb[185].mxu1 }
 0x3b1   : > { %v5616_v36 = vadd.f32 %v5615_v1, %v5614_v35  ;;  %v5721_v47 = vpop.f32.mrb[213].mxu0  ;;  %v5617_v62 = vpop.f32.mrb[186].mxu1 }
 0x3b2   : > { %v5722_v8 = vadd.f32 %v5721_v47, %v5720_v55  ;;  %v5723_v14 = vpop.f32.mrb[214].mxu0  ;;  %v5618_v18 = vpop.f32.mrb[187].mxu1 }
 0x3b3   : > { %v5619_v9 = vadd.f32 %v5618_v18, %v5617_v62  ;;  %v5724_v41 = vpop.f32.mrb[215].mxu0 }
 0x3b4   : > { %v7948_v53 = vadd.f32 %v5722_v8, %v5610_v5  ;;  %v5725_v3 = vadd.f32 %v5724_v41, %v5723_v14 }
 0x3b6   : > { %v7950_v44 = vadd.f32 %v5725_v3, %v5613_v61 }
 0x3b7   : > { %v5620_v52 = vpop.f32.mrb[188].mxu1 }
 0x3b8   : > { %v5726_v23 = vpop.f32.mrb[216].mxu0  ;;  %v5621_v29 = vpop.f32.mrb[189].mxu1 }
 0x3b9   : > { %v5622_v57 = vadd.f32 %v5621_v29, %v5620_v52  ;;  %v5727_v30 = vpop.f32.mrb[217].mxu0  ;;  %v5623_v60 = vpop.f32.mrb[190].mxu1 }
 0x3ba   : > { %v5728_v28 = vadd.f32 %v5727_v30, %v5726_v23  ;;  %v5729_v21 = vpop.f32.mrb[218].mxu0  ;;  %v5624_v0 = vpop.f32.mrb[191].mxu1 }
 0x3bb   : > { %v5625_v17 = vadd.f32 %v5624_v0, %v5623_v60  ;;  %v5730_v50 = vpop.f32.mrb[219].mxu0 }
 0x3bc   : > { %v7952_v31 = vadd.f32 %v5728_v28, %v5616_v36  ;;  %v5731_v63 = vadd.f32 %v5730_v50, %v5729_v21 }
 0x3be   : > { %v7954_v25 = vadd.f32 %v5731_v63, %v5619_v9 }
 0x3bf   : > { %v5754_v20 = vpop.f32.mrb[192].mxu1 }
 0x3c0   : > { %v5732_v5 = vpop.f32.mrb[220].mxu0  ;;  %v5755_v12 = vpop.f32.mrb[193].mxu1 }
 0x3c1   : > { %v5733_v11 = vpop.f32.mrb[221].mxu0  ;;  %v5756_v49 = vadd.f32 %v5755_v12, %v5754_v20  ;;  %v5757_v26 = vpop.f32.mrb[194].mxu1 }
 0x3c2   : > { %v5734_v38 = vadd.f32 %v5733_v11, %v5732_v5  ;;  %v5735_v61 = vpop.f32.mrb[222].mxu0  ;;  %v5758_v7 = vpop.f32.mrb[195].mxu1 }
 0x3c3   : > { %v4198_v46 = vadd.f32 %v5756_v49, %v7884_v58  ;;  %v5736_v35 = vpop.f32.mrb[223].mxu0  ;;  %v5759_v55 = vadd.f32 %v5758_v7, %v5757_v26 }
 0x3c4   : > { %v7957_v1 = vadd.f32 %v5734_v38, %v5622_v57  ;;  %v5737_v36 = vadd.f32 %v5736_v35, %v5735_v61 }
 0x3c5   : > { %v4201_v47 = vadd.f32 %v5759_v55, %v7889_v54 }
 0x3c6   : > { %v7960_v62 = vadd.f32 %v5737_v36, %v5625_v17 }
 0x3c7   : > { %v5760_v8 = vpop.f32.mrb[196].mxu1 }
 0x3c8   : > { %v5866_v14 = vpop.f32.mrb[224].mxu0  ;;  %v5761_v18 = vpop.f32.mrb[197].mxu1 }
 0x3c9   : > { %v5762_v9 = vadd.f32 %v5761_v18, %v5760_v8  ;;  %v5867_v41 = vpop.f32.mrb[225].mxu0  ;;  %v5763_v3 = vpop.f32.mrb[198].mxu1 }
 0x3ca   : > { %v5868_v52 = vadd.f32 %v5867_v41, %v5866_v14  ;;  %v5869_v23 = vpop.f32.mrb[226].mxu0  ;;  %v5764_v29 = vpop.f32.mrb[199].mxu1 }
 0x3cb   : > { %v4206_v58 = vadd.f32 %v5762_v9, %v7891_v13  ;;  %v5765_v30 = vadd.f32 %v5764_v29, %v5763_v3  ;;  %v5870_v60 = vpop.f32.mrb[227].mxu0 }
 0x3cc   : > { %v5871_v57 = vadd.f32 %v5870_v60, %v5869_v23  ;;  %v7963_v28 = vadd.f32 %v5868_v52, %v4198_v46 }
 0x3cd   : > { %v4209_v54 = vadd.f32 %v5765_v30, %v7895_v37 }
 0x3ce   : > { %v7966_v21 = vadd.f32 %v5871_v57, %v4201_v47 }
 0x3cf   : > { %v5766_v0 = vpop.f32.mrb[200].mxu1 }
 0x3d0   : > { %v5872_v17 = vpop.f32.mrb[228].mxu0  ;;  %v5767_v50 = vpop.f32.mrb[201].mxu1 }
 0x3d1   : > { %v5768_v63 = vadd.f32 %v5767_v50, %v5766_v0  ;;  %v5873_v20 = vpop.f32.mrb[229].mxu0  ;;  %v5769_v5 = vpop.f32.mrb[202].mxu1 }
 0x3d2   : > { %v5874_v12 = vadd.f32 %v5873_v20, %v5872_v17  ;;  %v5875_v11 = vpop.f32.mrb[230].mxu0  ;;  %v5770_v49 = vpop.f32.mrb[203].mxu1 }
 0x3d3   : > { %v4214_v13 = vadd.f32 %v5768_v63, %v7899_v32  ;;  %v5771_v26 = vadd.f32 %v5770_v49, %v5769_v5  ;;  %v5876_v38 = vpop.f32.mrb[231].mxu0 }
 0x3d4   : > { %v5877_v61 = vadd.f32 %v5876_v38, %v5875_v11  ;;  %v7969_v7 = vadd.f32 %v5874_v12, %v4206_v58 }
 0x3d5   : > { %v4217_v37 = vadd.f32 %v5771_v26, %v7903_v24 }
 0x3d6   : > { %v7972_v46 = vadd.f32 %v5877_v61, %v4209_v54 }
 0x3d7   : > { %v5772_v35 = vpop.f32.mrb[204].mxu1 }
 0x3d8   : > { %v5878_v55 = vpop.f32.mrb[232].mxu0  ;;  %v5773_v36 = vpop.f32.mrb[205].mxu1 }
 0x3d9   : > { %v5774_v47 = vadd.f32 %v5773_v36, %v5772_v35  ;;  %v5879_v8 = vpop.f32.mrb[233].mxu0  ;;  %v5775_v14 = vpop.f32.mrb[206].mxu1 }
 0x3da   : > { %v5880_v18 = vadd.f32 %v5879_v8, %v5878_v55  ;;  %v5881_v9 = vpop.f32.mrb[234].mxu0  ;;  %v5776_v41 = vpop.f32.mrb[207].mxu1 }
 0x3db   : > { %v4222_v32 = vadd.f32 %v5774_v47, %v7905_v15  ;;  %v5777_v3 = vadd.f32 %v5776_v41, %v5775_v14  ;;  %v5882_v52 = vpop.f32.mrb[235].mxu0 }
 0x3dc   : > { %v5883_v23 = vadd.f32 %v5882_v52, %v5881_v9  ;;  %v7975_v29 = vadd.f32 %v5880_v18, %v4214_v13 }
 0x3dd   : > { %v4225_v24 = vadd.f32 %v5777_v3, %v7908_v6 }
 0x3de   : > { %v7978_v58 = vadd.f32 %v5883_v23, %v4217_v37 }
 0x3df   : > { %v5778_v30 = vpop.f32.mrb[208].mxu1 }
 0x3e0   : > { %v5884_v60 = vpop.f32.mrb[236].mxu0  ;;  %v5779_v57 = vpop.f32.mrb[209].mxu1 }
 0x3e1   : > { %v5780_v54 = vadd.f32 %v5779_v57, %v5778_v30  ;;  %v5885_v0 = vpop.f32.mrb[237].mxu0  ;;  %v5781_v17 = vpop.f32.mrb[210].mxu1 }
 0x3e2   : > { %v5886_v50 = vadd.f32 %v5885_v0, %v5884_v60  ;;  %v5887_v63 = vpop.f32.mrb[238].mxu0  ;;  %v5782_v20 = vpop.f32.mrb[211].mxu1 }
 0x3e3   : > { %v4230_v15 = vadd.f32 %v5780_v54, %v7910_v48  ;;  %v5783_v5 = vadd.f32 %v5782_v20, %v5781_v17  ;;  %v5888_v12 = vpop.f32.mrb[239].mxu0 }
 0x3e4   : > { %v5889_v11 = vadd.f32 %v5888_v12, %v5887_v63  ;;  %v7981_v49 = vadd.f32 %v5886_v50, %v4222_v32 }
 0x3e5   : > { %v4233_v6 = vadd.f32 %v5783_v5, %v7913_v56 }
 0x3e6   : > { %v7984_v13 = vadd.f32 %v5889_v11, %v4225_v24 }
 0x3e7   : > { %v5784_v26 = vpop.f32.mrb[212].mxu1 }
 0x3e8   : > { %v5890_v38 = vpop.f32.mrb[240].mxu0  ;;  %v5785_v61 = vpop.f32.mrb[213].mxu1 }
 0x3e9   : > { %v5786_v37 = vadd.f32 %v5785_v61, %v5784_v26  ;;  %v5891_v35 = vpop.f32.mrb[241].mxu0  ;;  %v5787_v55 = vpop.f32.mrb[214].mxu1 }
 0x3ea   : > { %v5892_v36 = vadd.f32 %v5891_v35, %v5890_v38  ;;  %v5893_v47 = vpop.f32.mrb[242].mxu0  ;;  %v5788_v8 = vpop.f32.mrb[215].mxu1 }
 0x3eb   : > { %v4238_v48 = vadd.f32 %v5786_v37, %v7915_v51  ;;  %v5789_v14 = vadd.f32 %v5788_v8, %v5787_v55  ;;  %v5894_v18 = vpop.f32.mrb[243].mxu0 }
 0x3ec   : > { %v5895_v9 = vadd.f32 %v5894_v18, %v5893_v47  ;;  %v7987_v41 = vadd.f32 %v5892_v36, %v4230_v15 }
 0x3ed   : > { %v4241_v56 = vadd.f32 %v5789_v14, %v7917_v4 }
 0x3ee   : > { %v7990_v32 = vadd.f32 %v5895_v9, %v4233_v6 }
 0x3ef   : > { %v5790_v3 = vpop.f32.mrb[216].mxu1 }
 0x3f0   : > { %v5896_v52 = vpop.f32.mrb[244].mxu0  ;;  %v5791_v23 = vpop.f32.mrb[217].mxu1 }
 0x3f1   : > { %v5792_v24 = vadd.f32 %v5791_v23, %v5790_v3  ;;  %v5897_v30 = vpop.f32.mrb[245].mxu0  ;;  %v5793_v60 = vpop.f32.mrb[218].mxu1 }
 0x3f2   : > { %v5898_v57 = vadd.f32 %v5897_v30, %v5896_v52  ;;  %v5899_v54 = vpop.f32.mrb[246].mxu0  ;;  %v5794_v0 = vpop.f32.mrb[219].mxu1 }
 0x3f3   : > { %v4246_v51 = vadd.f32 %v5792_v24, %v7919_v2  ;;  %v5795_v17 = vadd.f32 %v5794_v0, %v5793_v60  ;;  %v5900_v50 = vpop.f32.mrb[247].mxu0 }
 0x3f4   : > { %v5901_v63 = vadd.f32 %v5900_v50, %v5899_v54  ;;  %v7993_v20 = vadd.f32 %v5898_v57, %v4238_v48 }
 0x3f5   : > { %v4249_v4 = vadd.f32 %v5795_v17, %v7921_v27 }
 0x3f6   : > { %v7996_v15 = vadd.f32 %v5901_v63, %v4241_v56 }
 0x3f7   : > { %v5796_v5 = vpop.f32.mrb[220].mxu1 }
 0x3f8   : > { %v5902_v12 = vpop.f32.mrb[248].mxu0  ;;  %v5797_v11 = vpop.f32.mrb[221].mxu1 }
 0x3f9   : > { %v5798_v6 = vadd.f32 %v5797_v11, %v5796_v5  ;;  %v5903_v26 = vpop.f32.mrb[249].mxu0  ;;  %v5799_v38 = vpop.f32.mrb[222].mxu1 }
 0x3fa   : > { %v5904_v61 = vadd.f32 %v5903_v26, %v5902_v12  ;;  %v5905_v37 = vpop.f32.mrb[250].mxu0  ;;  %v5800_v35 = vpop.f32.mrb[223].mxu1 }
 0x3fb   : > { %v4254_v2 = vadd.f32 %v5798_v6, %v7923_v43  ;;  %v5801_v55 = vadd.f32 %v5800_v35, %v5799_v38  ;;  %v5906_v36 = vpop.f32.mrb[251].mxu0 }
 0x3fc   : > { %v5907_v47 = vadd.f32 %v5906_v36, %v5905_v37  ;;  %v7999_v8 = vadd.f32 %v5904_v61, %v4246_v51 }
 0x3fd   : > { %v4257_v27 = vadd.f32 %v5801_v55, %v7925_v34 }
 0x3fe   : > { %v8002_v48 = vadd.f32 %v5907_v47, %v4249_v4 }
 0x3ff   : > { %v5802_v14 = vpop.f32.mrb[224].mxu1 }
 0x400   : > { %v5908_v18 = vpop.f32.mrb[252].mxu0  ;;  %v5803_v9 = vpop.f32.mrb[225].mxu1 }
 0x401   : > { %v5804_v56 = vadd.f32 %v5803_v9, %v5802_v14  ;;  %v5909_v3 = vpop.f32.mrb[253].mxu0  ;;  %v5805_v52 = vpop.f32.mrb[226].mxu1 }
 0x402   : > { %v5910_v23 = vadd.f32 %v5909_v3, %v5908_v18  ;;  %v5911_v24 = vpop.f32.mrb[254].mxu0  ;;  %v5806_v30 = vpop.f32.mrb[227].mxu1 }
 0x403   : > { %v4262_v43 = vadd.f32 %v5804_v56, %v7927_v22  ;;  %v5807_v60 = vadd.f32 %v5806_v30, %v5805_v52  ;;  %v5912_v57 = vpop.f32.mrb[255].mxu0 }
 0x404   : > { %v5913_v54 = vadd.f32 %v5912_v57, %v5911_v24  ;;  %v8005_v0 = vadd.f32 %v5910_v23, %v4254_v2 }
 0x405   : > { %v4265_v34 = vadd.f32 %v5807_v60, %v7929_v33 }
 0x406   : > { %v8008_v51 = vadd.f32 %v5913_v54, %v4257_v27 }
 0x407   : > { %v5808_v17 = vpop.f32.mrb[228].mxu1 }
 0x408   : > { %v5914_v50 = vpop.f32.mrb[0].mxu0  ;;  %v5809_v63 = vpop.f32.mrb[229].mxu1 }
 0x409   : > { %v5810_v4 = vadd.f32 %v5809_v63, %v5808_v17  ;;  %v5915_v5 = vpop.f32.mrb[1].mxu0  ;;  %v5811_v12 = vpop.f32.mrb[230].mxu1 }
 0x40a   : > { %v5916_v11 = vadd.f32 %v5915_v5, %v5914_v50  ;;  %v5917_v6 = vpop.f32.mrb[2].mxu0  ;;  %v5812_v26 = vpop.f32.mrb[231].mxu1 }
 0x40b   : > { %v4270_v22 = vadd.f32 %v5810_v4, %v7931_v45  ;;  %v5813_v38 = vadd.f32 %v5812_v26, %v5811_v12  ;;  %v5918_v61 = vpop.f32.mrb[3].mxu0 }
 0x40c   : > { %v5919_v37 = vadd.f32 %v5918_v61, %v5917_v6  ;;  %v8011_v35 = vadd.f32 %v5916_v11, %v4262_v43 }
 0x40d   : > { %v4273_v33 = vadd.f32 %v5813_v38, %v7933_v40 }
 0x40e   : > { %v8014_v2 = vadd.f32 %v5919_v37, %v4265_v34 }
 0x40f   : > { %v5814_v55 = vpop.f32.mrb[232].mxu1 }
 0x410   : > { %v5920_v36 = vpop.f32.mrb[4].mxu0  ;;  %v5815_v47 = vpop.f32.mrb[233].mxu1 }
 0x411   : > { %v5816_v27 = vadd.f32 %v5815_v47, %v5814_v55  ;;  %v5921_v14 = vpop.f32.mrb[5].mxu0  ;;  %v5817_v18 = vpop.f32.mrb[234].mxu1 }
 0x412   : > { %v5922_v9 = vadd.f32 %v5921_v14, %v5920_v36  ;;  %v5923_v56 = vpop.f32.mrb[6].mxu0  ;;  %v5818_v3 = vpop.f32.mrb[235].mxu1 }
 0x413   : > { %v4278_v45 = vadd.f32 %v5816_v27, %v7935_v59  ;;  %v5819_v52 = vadd.f32 %v5818_v3, %v5817_v18  ;;  %v5924_v23 = vpop.f32.mrb[7].mxu0 }
 0x414   : > { %v5925_v24 = vadd.f32 %v5924_v23, %v5923_v56  ;;  %v8017_v30 = vadd.f32 %v5922_v9, %v4270_v22 }
 0x415   : > { %v4281_v40 = vadd.f32 %v5819_v52, %v7938_v39 }
 0x416   : > { %v8020_v43 = vadd.f32 %v5925_v24, %v4273_v33 }
 0x417   : > { %v5820_v60 = vpop.f32.mrb[236].mxu1 }
 0x418   : > { %v5926_v57 = vpop.f32.mrb[8].mxu0  ;;  %v5821_v54 = vpop.f32.mrb[237].mxu1 }
 0x419   : > { %v5822_v34 = vadd.f32 %v5821_v54, %v5820_v60  ;;  %v5927_v17 = vpop.f32.mrb[9].mxu0  ;;  %v5823_v50 = vpop.f32.mrb[238].mxu1 }
 0x41a   : > { %v5928_v63 = vadd.f32 %v5927_v17, %v5926_v57  ;;  %v5929_v4 = vpop.f32.mrb[10].mxu0  ;;  %v5824_v5 = vpop.f32.mrb[239].mxu1 }
 0x41b   : > { %v4286_v59 = vadd.f32 %v5822_v34, %v7940_v16  ;;  %v5825_v12 = vadd.f32 %v5824_v5, %v5823_v50  ;;  %v5930_v11 = vpop.f32.mrb[11].mxu0 }
 0x41c   : > { %v5931_v6 = vadd.f32 %v5930_v11, %v5929_v4  ;;  %v8023_v26 = vadd.f32 %v5928_v63, %v4278_v45 }
 0x41d   : > { %v4289_v39 = vadd.f32 %v5825_v12, %v7942_v10 }
 0x41e   : > { %v8026_v22 = vadd.f32 %v5931_v6, %v4281_v40 }
 0x41f   : > { %v5826_v38 = vpop.f32.mrb[240].mxu1 }
 0x420   : > { %v5932_v61 = vpop.f32.mrb[12].mxu0  ;;  %v5827_v37 = vpop.f32.mrb[241].mxu1 }
 0x421   : > { %v5828_v33 = vadd.f32 %v5827_v37, %v5826_v38  ;;  %v5933_v55 = vpop.f32.mrb[13].mxu0  ;;  %v5829_v36 = vpop.f32.mrb[242].mxu1 }
 0x422   : > { %v5934_v47 = vadd.f32 %v5933_v55, %v5932_v61  ;;  %v5935_v27 = vpop.f32.mrb[14].mxu0  ;;  %v5830_v14 = vpop.f32.mrb[243].mxu1 }
 0x423   : > { %v4294_v16 = vadd.f32 %v5828_v33, %v7944_v19  ;;  %v5831_v18 = vadd.f32 %v5830_v14, %v5829_v36  ;;  %v5936_v9 = vpop.f32.mrb[15].mxu0 }
 0x424   : > { %v5937_v56 = vadd.f32 %v5936_v9, %v5935_v27  ;;  %v8029_v3 = vadd.f32 %v5934_v47, %v4286_v59 }
 0x425   : > { %v4297_v10 = vadd.f32 %v5831_v18, %v7946_v42 }
 0x426   : > { %v8032_v45 = vadd.f32 %v5937_v56, %v4289_v39 }
 0x427   : > { %v5832_v52 = vpop.f32.mrb[244].mxu1 }
 0x428   : > { %v5938_v23 = vpop.f32.mrb[16].mxu0  ;;  %v5833_v24 = vpop.f32.mrb[245].mxu1 }
 0x429   : > { %v5834_v40 = vadd.f32 %v5833_v24, %v5832_v52  ;;  %v5939_v60 = vpop.f32.mrb[17].mxu0  ;;  %v5835_v57 = vpop.f32.mrb[246].mxu1 }
 0x42a   : > { %v5940_v54 = vadd.f32 %v5939_v60, %v5938_v23  ;;  %v5941_v34 = vpop.f32.mrb[18].mxu0  ;;  %v5836_v17 = vpop.f32.mrb[247].mxu1 }
 0x42b   : > { %v4302_v19 = vadd.f32 %v5834_v40, %v7948_v53  ;;  %v5837_v50 = vadd.f32 %v5836_v17, %v5835_v57  ;;  %v5942_v63 = vpop.f32.mrb[19].mxu0 }
 0x42c   : > { %v5943_v4 = vadd.f32 %v5942_v63, %v5941_v34  ;;  %v8035_v5 = vadd.f32 %v5940_v54, %v4294_v16  ;;  %v4648_v63 = vld [vmem:[%s6737_s9 + $0x10] sm:$0xff] }
 0x42d   : > { %v4305_v42 = vadd.f32 %v5837_v50, %v7950_v44 }
 0x42e   : > { %v8038_v59 = vadd.f32 %v5943_v4, %v4297_v10 }
 0x42f   : > { %v5838_v12 = vpop.f32.mrb[248].mxu1 }
 0x430   : > { %v5944_v11 = vpop.f32.mrb[20].mxu0  ;;  %v5839_v6 = vpop.f32.mrb[249].mxu1 }
 0x431   : > { %v5840_v39 = vadd.f32 %v5839_v6, %v5838_v12  ;;  %v5945_v38 = vpop.f32.mrb[21].mxu0  ;;  %v5841_v61 = vpop.f32.mrb[250].mxu1 }
 0x432   : > { %v5946_v37 = vadd.f32 %v5945_v38, %v5944_v11  ;;  %v5947_v33 = vpop.f32.mrb[22].mxu0  ;;  %v5842_v55 = vpop.f32.mrb[251].mxu1  ;;  %v4646_v11 = vld [vmem:[%s6737_s9] sm:$0xff]  ;;  %v4649_v38 = vld [vmem:[%s6737_s9 + $0x18] sm:$0xff] }
 0x433   : > { %v4310_v53 = vadd.f32 %v5840_v39, %v7952_v31  ;;  %v5843_v36 = vadd.f32 %v5842_v55, %v5841_v61  ;;  %v5948_v47 = vpop.f32.mrb[23].mxu0 }
 0x434   : > { %v5949_v27 = vadd.f32 %v5948_v47, %v5947_v33  ;;  %v8041_v14 = vadd.f32 %v5946_v37, %v4302_v19 }
 0x435   : > { %v4313_v44 = vadd.f32 %v5843_v36, %v7954_v25 }
 0x436   : > { %v8044_v16 = vadd.f32 %v5949_v27, %v4305_v42 }
 0x437   : > { %v5844_v18 = vpop.f32.mrb[252].mxu1 }
 0x438   : > { %v5950_v9 = vpop.f32.mrb[24].mxu0  ;;  %v5845_v56 = vpop.f32.mrb[253].mxu1 }
 0x439   : > { %v5846_v10 = vadd.f32 %v5845_v56, %v5844_v18  ;;  %v5951_v52 = vpop.f32.mrb[25].mxu0  ;;  %v5847_v23 = vpop.f32.mrb[254].mxu1 }
 0x43a   : > { %v5952_v24 = vadd.f32 %v5951_v52, %v5950_v9  ;;  %v5953_v40 = vpop.f32.mrb[26].mxu0  ;;  %v5848_v31 = vpop.f32.mrb[255].mxu1 }
 0x43b   : > { %v4318_v60 = vadd.f32 %v5846_v10, %v7957_v1  ;;  %v5849_v57 = vadd.f32 %v5848_v31, %v5847_v23  ;;  %v5954_v54 = vpop.f32.mrb[27].mxu0  ;;  %v4650_v31 = vld [vmem:[%s6737_s9 + $0x20] sm:$0xff] }
 0x43c   : > { %v5955_v34 = vadd.f32 %v5954_v54, %v5953_v40  ;;  %v8047_v25 = vadd.f32 %v5952_v24, %v4310_v53  ;;  %v4647_v53 = vld [vmem:[%s6737_s9 + $0x8] sm:$0xff]  ;;  %v4652_v24 = vld [vmem:[%s6737_s9 + $0x30] sm:$0xff]  ;;  %v4653_v54 = vld [vmem:[%s6737_s9 + $0x38] sm:$0xff] }
 0x43d   : > { %v4321_v17 = vadd.f32 %v5849_v57, %v7960_v62 }
 0x43e   : > { %v8050_v19 = vadd.f32 %v5955_v34, %v4313_v44 }
 0x43f   : > { %v6052_v50 = vpop.f32.mrb[0].mxu1 }
 0x440   : > { %v5956_v4 = vpop.f32.mrb[28].mxu0  ;;  %v4528_v42 = vadd.f32 %v6052_v50, %v7969_v7  ;;  %v4519_v12 = vpop.f32.mrb[1].mxu1 }
 0x441   : > { %v5957_v6 = vpop.f32.mrb[29].mxu0  ;;  %v4520_v1 = vadd.f32 %v4519_v12, %v7963_v28  ;;  %v6053_v39 = vpop.f32.mrb[2].mxu1 }
 0x442   : > { %v4680_v61 = vadd.f32 %v4648_v63, %v4528_v42  ;;  %v5958_v37 = vadd.f32 %v5957_v6, %v5956_v4  ;;  %v5959_v33 = vpop.f32.mrb[30].mxu0  ;;  %v4531_v62 = vadd.f32 %v6053_v39, %v7972_v46  ;;  %v4522_v55 = vpop.f32.mrb[3].mxu1  ;;  %v4651_v63 = vld [vmem:[%s6737_s9 + $0x28] sm:$0xff] }
 0x443   : > { %v4678_v36 = vadd.f32 %v4646_v11, %v4520_v1  ;;  %v5960_v7 = vpop.f32.mrb[31].mxu0  ;;  %v4523_v47 = vadd.f32 %v4522_v55, %v7966_v21 }
 0x444   : > { %v4712_v27 = vmax.f32 %v4680_v61, 0.0  ;;  %v4681_v28 = vadd.f32 %v4649_v38, %v4531_v62  ;;  %v5961_v44 = vadd.f32 %v5960_v7, %v5959_v33  ;;  %v8060_v18 = vadd.f32 %v5958_v37, %v4318_v60  ;;  %v4656_v38 = vld [vmem:[%s6737_s9 + $0x50] sm:$0xff]  ;;  %v4654_v37 = vld [vmem:[%s6737_s9 + $0x40] sm:$0xff]  ;;  %v4657_v62 = vld [vmem:[%s6737_s9 + $0x58] sm:$0xff] }
 0x445   : > { %v4710_v9 = vmax.f32 %v4678_v36, 0.0  ;;  %v4679_v56 = vadd.f32 %v4647_v53, %v4523_v47  ;;  %v4655_v7 = vld [vmem:[%s6737_s9 + $0x48] sm:$0xff] }
 0x446   : > { %4744 = vst [vmem:[%s6737_s9 + $0x10] sm:$0xff] %v4712_v27  ;;  %v4713_v46 = vmax.f32 %v4681_v28, 0.0  ;;  %v8063_v10 = vadd.f32 %v5961_v44, %v4321_v17 }
 0x447   : > { %4742 = vst [vmem:[%s6737_s9] sm:$0xff] %v4710_v9  ;;  %v4711_v52 = vmax.f32 %v4679_v56, 0.0  ;;  %v6056_v23 = vpop.f32.mrb[4].mxu1 }
 0x448   : > { %4745 = vst [vmem:[%s6737_s9 + $0x18] sm:$0xff] %v4713_v46  ;;  %v4544_v21 = vadd.f32 %v6056_v23, %v7981_v49  ;;  %v4535_v40 = vpop.f32.mrb[5].mxu1 }
 0x449   : > { %4743 = vst [vmem:[%s6737_s9 + $0x8] sm:$0xff] %v4711_v52  ;;  %v4536_v60 = vadd.f32 %v4535_v40, %v7975_v29  ;;  %v6057_v57 = vpop.f32.mrb[6].mxu1  ;;  %v4660_v52 = vld [vmem:[%s6737_s9 + $0x70] sm:$0xff]  ;;  %v4661_v40 = vld [vmem:[%s6737_s9 + $0x78] sm:$0xff] }
 0x44a   : > { %v4684_v34 = vadd.f32 %v4652_v24, %v4544_v21  ;;  %v4547_v17 = vadd.f32 %v6057_v57, %v7984_v13  ;;  %v4538_v50 = vpop.f32.mrb[7].mxu1  ;;  %v4658_v24 = vld [vmem:[%s6737_s9 + $0x60] sm:$0xff] }
 0x44b   : > { %v4682_v4 = vadd.f32 %v4650_v31, %v4536_v60  ;;  %v4539_v49 = vadd.f32 %v4538_v50, %v7978_v58 }
 0x44c   : > { %v4716_v42 = vmax.f32 %v4684_v34, 0.0  ;;  %v4685_v12 = vadd.f32 %v4653_v54, %v4547_v17  ;;  %v4659_v54 = vld [vmem:[%s6737_s9 + $0x68] sm:$0xff] }
 0x44d   : > { %v4714_v11 = vmax.f32 %v4682_v4, 0.0  ;;  %v4683_v6 = vadd.f32 %v4651_v63, %v4539_v49 }
 0x44e   : > { %4748 = vst [vmem:[%s6737_s9 + $0x30] sm:$0xff] %v4716_v42  ;;  %v4717_v29 = vmax.f32 %v4685_v12, 0.0  ;;  %v4664_v12 = vld [vmem:[%s6737_s9 + $0x90] sm:$0xff] }
 0x44f   : > { %4746 = vst [vmem:[%s6737_s9 + $0x20] sm:$0xff] %v4714_v11  ;;  %v4715_v1 = vmax.f32 %v4683_v6, 0.0  ;;  %v6060_v39 = vpop.f32.mrb[8].mxu1  ;;  %v4662_v6 = vld [vmem:[%s6737_s9 + $0x80] sm:$0xff] }
 0x450   : > { %4749 = vst [vmem:[%s6737_s9 + $0x38] sm:$0xff] %v4717_v29  ;;  %v4560_v13 = vadd.f32 %v6060_v39, %v7993_v20  ;;  %v4551_v61 = vpop.f32.mrb[9].mxu1 }
 0x451   : > { %4747 = vst [vmem:[%s6737_s9 + $0x28] sm:$0xff] %v4715_v1  ;;  %v4552_v58 = vadd.f32 %v4551_v61, %v7987_v41  ;;  %v6061_v33 = vpop.f32.mrb[10].mxu1  ;;  %v4665_v1 = vld [vmem:[%s6737_s9 + $0x98] sm:$0xff]  ;;  %v4663_v61 = vld [vmem:[%s6737_s9 + $0x88] sm:$0xff] }
 0x452   : > { %v4688_v55 = vadd.f32 %v4656_v38, %v4560_v13  ;;  %v4563_v53 = vadd.f32 %v6061_v33, %v7996_v15  ;;  %v4554_v36 = vpop.f32.mrb[11].mxu1 }
 0x453   : > { %v4686_v47 = vadd.f32 %v4654_v37, %v4552_v58  ;;  %v4555_v20 = vadd.f32 %v4554_v36, %v7990_v32 }
 0x454   : > { %v4720_v27 = vmax.f32 %v4688_v55, 0.0  ;;  %v4689_v28 = vadd.f32 %v4657_v62, %v4563_v53 }
 0x455   : > { %v4718_v44 = vmax.f32 %v4686_v47, 0.0  ;;  %v4687_v9 = vadd.f32 %v4655_v7, %v4555_v20  ;;  %v4668_v7 = vld [vmem:[%s6737_s9 + $0xb0] sm:$0xff]  ;;  %v4666_v20 = vld [vmem:[%s6737_s9 + $0xa0] sm:$0xff] }
 0x456   : > { %4752 = vst [vmem:[%s6737_s9 + $0x50] sm:$0xff] %v4720_v27  ;;  %v4721_v41 = vmax.f32 %v4689_v28, 0.0  ;;  %v4669_v28 = vld [vmem:[%s6737_s9 + $0xb8] sm:$0xff] }
 0x457   : > { %4750 = vst [vmem:[%s6737_s9 + $0x40] sm:$0xff] %v4718_v44  ;;  %v4719_v56 = vmax.f32 %v4687_v9, 0.0  ;;  %v6064_v46 = vpop.f32.mrb[12].mxu1 }
 0x458   : > { %4753 = vst [vmem:[%s6737_s9 + $0x58] sm:$0xff] %v4721_v41  ;;  %v4576_v15 = vadd.f32 %v6064_v46, %v8005_v0  ;;  %v4567_v23 = vpop.f32.mrb[13].mxu1 }
 0x459   : > { %4751 = vst [vmem:[%s6737_s9 + $0x48] sm:$0xff] %v4719_v56  ;;  %v4568_v32 = vadd.f32 %v4567_v23, %v7999_v8  ;;  %v6065_v21 = vpop.f32.mrb[14].mxu1  ;;  %v4667_v56 = vld [vmem:[%s6737_s9 + $0xa8] sm:$0xff] }
 0x45a   : > { %v4692_v31 = vadd.f32 %v4660_v52, %v4576_v15  ;;  %v4579_v60 = vadd.f32 %v6065_v21, %v8008_v51  ;;  %v4570_v57 = vpop.f32.mrb[15].mxu1 }
 0x45b   : > { %v4690_v34 = vadd.f32 %v4658_v24, %v4568_v32  ;;  %v4571_v0 = vadd.f32 %v4570_v57, %v8002_v48 }
 0x45c   : > { %v4724_v17 = vmax.f32 %v4692_v31, 0.0  ;;  %v4693_v50 = vadd.f32 %v4661_v40, %v4579_v60  ;;  %v4672_v40 = vld [vmem:[%s6737_s9 + $0xd0] sm:$0xff]  ;;  %v4670_v60 = vld [vmem:[%s6737_s9 + $0xc0] sm:$0xff] }
 0x45d   : > { %v4722_v63 = vmax.f32 %v4690_v34, 0.0  ;;  %v4691_v4 = vadd.f32 %v4659_v54, %v4571_v0  ;;  %v4673_v54 = vld [vmem:[%s6737_s9 + $0xd8] sm:$0xff] }
 0x45e   : > { %4756 = vst [vmem:[%s6737_s9 + $0x70] sm:$0xff] %v4724_v17  ;;  %v4725_v8 = vmax.f32 %v4693_v50, 0.0  ;;  %v4671_v50 = vld [vmem:[%s6737_s9 + $0xc8] sm:$0xff] }
 0x45f   : > { %4754 = vst [vmem:[%s6737_s9 + $0x60] sm:$0xff] %v4722_v63  ;;  %v4723_v49 = vmax.f32 %v4691_v4, 0.0  ;;  %v6068_v42 = vpop.f32.mrb[16].mxu1 }
 0x460   : > { %4757 = vst [vmem:[%s6737_s9 + $0x78] sm:$0xff] %v4725_v8  ;;  %v4592_v51 = vadd.f32 %v6068_v42, %v8017_v30  ;;  %v4583_v11 = vpop.f32.mrb[17].mxu1 }
 0x461   : > { %4755 = vst [vmem:[%s6737_s9 + $0x68] sm:$0xff] %v4723_v49  ;;  %v4584_v48 = vadd.f32 %v4583_v11, %v8011_v35  ;;  %v6069_v29 = vpop.f32.mrb[18].mxu1 }
 0x462   : > { %v4696_v39 = vadd.f32 %v4664_v12, %v4592_v51  ;;  %v4595_v38 = vadd.f32 %v6069_v29, %v8020_v43  ;;  %v4586_v13 = vpop.f32.mrb[19].mxu1 }
 0x463   : > { %v4694_v37 = vadd.f32 %v4662_v6, %v4584_v48  ;;  %v4587_v30 = vadd.f32 %v4586_v13, %v8014_v2  ;;  %v4674_v48 = vld [vmem:[%s6737_s9 + $0xe0] sm:$0xff] }
 0x464   : > { %v4728_v58 = vmax.f32 %v4696_v39, 0.0  ;;  %v4697_v33 = vadd.f32 %v4665_v1, %v4595_v38  ;;  %v4677_v1 = vld [vmem:[%s6737_s9 + $0xf8] sm:$0xff] }
 0x465   : > { %v4726_v62 = vmax.f32 %v4694_v37, 0.0  ;;  %v4695_v55 = vadd.f32 %v4663_v61, %v4587_v30  ;;  %v4675_v61 = vld [vmem:[%s6737_s9 + $0xe8] sm:$0xff] }
 0x466   : > { %4760 = vst [vmem:[%s6737_s9 + $0x90] sm:$0xff] %v4728_v58  ;;  %v4729_v35 = vmax.f32 %v4697_v33, 0.0 }
 0x467   : > { %4758 = vst [vmem:[%s6737_s9 + $0x80] sm:$0xff] %v4726_v62  ;;  %v4727_v53 = vmax.f32 %v4695_v55, 0.0  ;;  %v6072_v36 = vpop.f32.mrb[20].mxu1 }
 0x468   : > { %4761 = vst [vmem:[%s6737_s9 + $0x98] sm:$0xff] %v4729_v35  ;;  %v4608_v43 = vadd.f32 %v6072_v36, %v8029_v3  ;;  %v4599_v47 = vpop.f32.mrb[21].mxu1 }
 0x469   : > { %4759 = vst [vmem:[%s6737_s9 + $0x88] sm:$0xff] %v4727_v53  ;;  %v4600_v2 = vadd.f32 %v4599_v47, %v8023_v26  ;;  %v6073_v27 = vpop.f32.mrb[22].mxu1 }
 0x46a   : > { %v4700_v44 = vadd.f32 %v4668_v7, %v4608_v43  ;;  %v4611_v9 = vadd.f32 %v6073_v27, %v8032_v45  ;;  %v4602_v41 = vpop.f32.mrb[23].mxu1 }
 0x46b   : > { %v4698_v46 = vadd.f32 %v4666_v20, %v4600_v2  ;;  %v4603_v3 = vadd.f32 %v4602_v41, %v8026_v22 }
 0x46c   : > { %v4732_v52 = vmax.f32 %v4700_v44, 0.0  ;;  %v4701_v15 = vadd.f32 %v4669_v28, %v4611_v9 }
 0x46d   : > { %v4730_v23 = vmax.f32 %v4698_v46, 0.0  ;;  %v4699_v24 = vadd.f32 %v4667_v56, %v4603_v3 }
 0x46e   : > { %4764 = vst [vmem:[%s6737_s9 + $0xb0] sm:$0xff] %v4732_v52  ;;  %v4733_v26 = vmax.f32 %v4701_v15, 0.0 }
 0x46f   : > { %4762 = vst [vmem:[%s6737_s9 + $0xa0] sm:$0xff] %v4730_v23  ;;  %v4731_v32 = vmax.f32 %v4699_v24, 0.0  ;;  %v6076_v21 = vpop.f32.mrb[24].mxu1 }
 0x470   : > { %4765 = vst [vmem:[%s6737_s9 + $0xb8] sm:$0xff] %v4733_v26  ;;  %v4624_v45 = vadd.f32 %v6076_v21, %v8041_v14  ;;  %v4615_v31 = vpop.f32.mrb[25].mxu1 }
 0x471   : > { %4763 = vst [vmem:[%s6737_s9 + $0xa8] sm:$0xff] %v4731_v32  ;;  %v4616_v22 = vadd.f32 %v4615_v31, %v8035_v5  ;;  %v6077_v57 = vpop.f32.mrb[26].mxu1 }
 0x472   : > { %v4704_v34 = vadd.f32 %v4672_v40, %v4624_v45  ;;  %v4627_v0 = vadd.f32 %v6077_v57, %v8044_v16  ;;  %v4618_v17 = vpop.f32.mrb[27].mxu1  ;;  %v4676_v16 = vld [vmem:[%s6737_s9 + $0xf0] sm:$0xff] }
 0x473   : > { %v4702_v63 = vadd.f32 %v4670_v60, %v4616_v22  ;;  %v4619_v14 = vadd.f32 %v4618_v17, %v8038_v59 }
 0x474   : > { %v4736_v4 = vmax.f32 %v4704_v34, 0.0  ;;  %v4705_v8 = vadd.f32 %v4673_v54, %v4627_v0 }
 0x475   : > { %v4734_v49 = vmax.f32 %v4702_v63, 0.0  ;;  %v4703_v42 = vadd.f32 %v4671_v50, %v4619_v14 }
 0x476   : > { %4768 = vst [vmem:[%s6737_s9 + $0xd0] sm:$0xff] %v4736_v4  ;;  %v4737_v5 = vmax.f32 %v4705_v8, 0.0 }
 0x477   : > { %4766 = vst [vmem:[%s6737_s9 + $0xc0] sm:$0xff] %v4734_v49  ;;  %v4735_v12 = vmax.f32 %v4703_v42, 0.0  ;;  %v6080_v51 = vpop.f32.mrb[28].mxu1 }
 0x478   : > { %4769 = vst [vmem:[%s6737_s9 + $0xd8] sm:$0xff] %v4737_v5  ;;  %v4640_v11 = vadd.f32 %v6080_v51, %v8060_v18  ;;  %v4631_v6 = vpop.f32.mrb[29].mxu1 }
 0x479   : > { %4767 = vst [vmem:[%s6737_s9 + $0xc8] sm:$0xff] %v4735_v12  ;;  %v4632_v59 = vadd.f32 %v4631_v6, %v8047_v25  ;;  %v6081_v29 = vpop.f32.mrb[30].mxu1 }
 0x47a   : > { %v4708_v39 = vadd.f32 %v4676_v16, %v4640_v11  ;;  %v4643_v38 = vadd.f32 %v6081_v29, %v8063_v10  ;;  %v4634_v13 = vpop.f32.mrb[31].mxu1 }
 0x47b   : > { %v4706_v37 = vadd.f32 %v4674_v48, %v4632_v59  ;;  %v4635_v18 = vadd.f32 %v4634_v13, %v8050_v19 }
 0x47c   : > { %v4740_v30 = vmax.f32 %v4708_v39, 0.0  ;;  %v4709_v58 = vadd.f32 %v4677_v1, %v4643_v38 }
 0x47d   : > { %v4738_v25 = vmax.f32 %v4706_v37, 0.0  ;;  %v4707_v33 = vadd.f32 %v4675_v61, %v4635_v18 }
 0x47e   : > { %4772 = vst [vmem:[%s6737_s9 + $0xf0] sm:$0xff] %v4740_v30  ;;  %v4741_v62 = vmax.f32 %v4709_v58, 0.0 }
 0x47f   : > { %4770 = vst [vmem:[%s6737_s9 + $0xe0] sm:$0xff] %v4738_v25  ;;  %v4739_v19 = vmax.f32 %v4707_v33, 0.0 }
 0x480   : > { %4773 = vst [vmem:[%s6737_s9 + $0xf8] sm:$0xff] %v4741_v62 }
 0x481   : > { %4771 = vst [vmem:[%s6737_s9 + $0xe8] sm:$0xff] %v4739_v19 }
 0x482   : > { %6404 = shalt.err (!%p6401_p2)
}
 0x483   : > { %s6405_s15 = scalar_lea.hbm %s8154_s17, 4096  ;;  %s6409_s28 = scalar_lea.hbm %s8208_s5, 8192 }
 0x484   : > { %p6406_p13 = scmp.ne.s32.totalorder %s8154_s17, %s6405_s15  ;;  %p6410_p4 = scmp.lt.u32.totalorder %s8154_s17, %s8208_s5 }
 0x485   : > { %p6411_p5 = scmp.lt.u32.totalorder %s6409_s28, %s6405_s15  ;;  %p6413_p11 = scmp.lt.u32.totalorder %s6405_s15, %s8154_s17 }
 0x486   : > { %p6407_p6 = pnand %p6406_p13, %p8286_p0 }
 0x487   : > { %p6412_p8 = por %p6411_p5, %p6410_p4 }
 0x488   : > { %p6408_p10 = pneg %p6407_p6 }
 0x489   : > { %p6414_p1 = por %p6413_p11, %p6412_p8 }
 0x48b   : > { %p6415_p3 = pnand %p6414_p1, %p6408_p10 }
 0x48d   : > { %6418 = shalt.err (!%p6415_p3)
}
 0x48e   : > { %s6472_s8 = smov 128   ;;  %s6473_s12 = smov 8  }
 0x48f   : > { %6095 = dma.vmem_to_hbm [thread:$0]  (%p8286_p0), %s8156_s10, 4096, %s8154_s17, %s4775_s22, %s6472_s8, %s6472_s8, %s6473_s12  }
 0x490 PF: > { %s4803_s13 = sand.u32 1, %s6449_s18   ;;  %p8287_p7 = scmp.ne.s32.totalorder %s8239_s25, 0 }
 0x491   : > { %p8288_p9 = scmp.ge.s32.totalorder %s6461_s21, 2  ;;  %s4804_s6 = scalar_lea.sflag [#allocation6], %s4803_s13 }
 0x493   : > { %p6109_p12 = pnand %p8288_p9, %p8287_p7 }
 0x495   : > { %6444 = dma.done.wait (!%p6109_p12), %s4804_s6, 4096  }
 0x496   : > { %6446 = vsyncadd (!%p6109_p12), %s4804_s6, 4294963200  ;;  %p19_p2 = scmp.ge.s32.totalorder %s6614_s14, 4   ;;  %s8289_s18 = smov %s6453_s19 }
 0x497   : > { %s8290_s19 = smov %s6457_s20  ;;  %s8291_s20 = smov %s6630_s27 }
 0x498   : > { %s8292_s21 = smov %s6614_s14  ;;  %21 = sbr.rel (!%p19_p2) target bundleno = 6 (0x6), region = 96 }
 0x49f   :  { %4809 = vsyncpa [#allocation5], 1 }
 0x4a0   :  { %4811 = vsyncpa [#allocation5 + $0x1], 1 }
 0x4a1   :  { %4812 = vsyncpa [#allocation8], 1 }
 0x4a2   :  { %4813 = vsyncpa [#allocation6], 1 }
 0x4a3   :  { %4815 = vsyncpa [#allocation6 + $0x1], 1 }

</bundles_post_ra>
